<compile_context>
chip_gen: v7x
topology: tpu7x:2x2x1
jax: 0.10.0
libtpu: 0.0.40
codegen_flags: <defaults>
</compile_context>

<pallas_src>
import numpy as np
import jax
import jax.numpy as jnp
from jax.experimental import pallas as pl
from jax.experimental.pallas import tpu as pltpu

IMAGE_NUM = 1
N_ACTIONS = 17
N_STATE_LOW = 5
LINEAR_N = (7744, 128, 32)
N_KERNEL = (32, 64, 64)
SIZE_FILTER = (8, 4, 3)
STRIDE = (4, 2, 1)
PAD = 2
IMG_HW = 64                      # forced by linear_n[0] = 7744 = 64 * 11 * 11

# Static conv geometry.
OH1 = 16                         # conv1 output spatial (16x16)
OH2 = 9                          # conv2 output spatial (9x9)
OH3 = 11                         # conv3 output spatial (11x11)
M2 = OH2 * OH2                   # 81
M3 = OH3 * OH3                   # 121
BLK2 = 96                        # 81 rows padded to a multiple of 16 (bf16 tile)
BLK3 = 128                       # 121 rows padded to a multiple of 16
FEAT_ROWS = BLK3                 # per-sample conv features stored as (128, 64)
FEAT_DIM = FEAT_ROWS * N_KERNEL[2]   # 8192 (7744 valid + zero-weight pad rows)
HEAD_K_TILE = 2048               # w1 streamed as 4 x (2048, 256) bf16 tiles


# ----------------------------------------------------------------------------
# Constant 0/1 im2col selection matrices (built once at init).
#   S @ act gives, for kernel-offset block p, rows [p*blk + m] = act[src(m,p)]
#   (or 0 for zero-padding / unused pad slots).
# ----------------------------------------------------------------------------
def make_select(oh, ow, in_h, in_w, k, stride, pad, src_cols, blk):
    s = np.zeros((k * k * blk, src_cols), np.float32)
    for kh in range(k):
        for kw in range(k):
            p = kh * k + kw
            for i in range(oh):
                ih = i * stride + kh - pad
                if ih < 0 or ih >= in_h:
                    continue
                for j in range(ow):
                    iw = j * stride + kw - pad
                    if 0 <= iw < in_w:
                        s[p * blk + i * ow + j, ih * in_w + iw] = 1.0
    return s


# ----------------------------------------------------------------------------
# Kernel 1: fused conv stack (per-sample grid step, everything VMEM-resident).
# ----------------------------------------------------------------------------
def _conv_stack_kernel(p1_ref, w1c_ref, b1c_ref, g2_ref, w2_ref, b2_ref,
                       g3_ref, w3_ref, b3_ref, feat_ref):
    # conv1: plain im2col GEMM  (256, 64) @ (64, 32)
    a1 = jnp.dot(p1_ref[0], w1c_ref[...], preferred_element_type=jnp.float32)
    a1 = jnp.maximum(a1 + b1c_ref[...], 0.0).astype(jnp.bfloat16)        # (256, 32)

    # conv2: one selection matmul gathers all patches, then 16 offset GEMMs.
    p2 = jnp.dot(g2_ref[...], a1,
                 preferred_element_type=jnp.float32).astype(jnp.bfloat16)  # (1536, 32)
    acc2 = jnp.zeros((BLK2, N_KERNEL[1]), jnp.float32)
    for p in range(SIZE_FILTER[1] * SIZE_FILTER[1]):
        acc2 = acc2 + jnp.dot(p2[p * BLK2:(p + 1) * BLK2, :], w2_ref[p],
                              preferred_element_type=jnp.float32)
    a2 = jnp.maximum(acc2 + b2_ref[...], 0.0).astype(jnp.bfloat16)       # (96, 64)

    # conv3: same pattern with 9 offsets.
    p3 = jnp.dot(g3_ref[...], a2,
                 preferred_element_type=jnp.float32).astype(jnp.bfloat16)  # (1152, 64)
    acc3 = jnp.zeros((BLK3, N_KERNEL[2]), jnp.float32)
    for p in range(SIZE_FILTER[2] * SIZE_FILTER[2]):
        acc3 = acc3 + jnp.dot(p3[p * BLK3:(p + 1) * BLK3, :], w3_ref[p],
                              preferred_element_type=jnp.float32)
    a3 = jnp.maximum(acc3 + b3_ref[...], 0.0)                            # (128, 64)
    # Rows 121..127 are junk (ReLU(bias)); w1 has zero rows there so they can
    # never leak into the head.  16 KB/sample writeback -> negligible even
    # though only 64 lanes wide.
    feat_ref[0] = a3.astype(feat_ref.dtype)


def conv_stack(patches1, kp):
    B = patches1.shape[0]

    def const_spec(arr):
        nd = arr.ndim
        return pl.BlockSpec(arr.shape, lambda b, _nd=nd: (0,) * _nd)

    return pl.pallas_call(
        _conv_stack_kernel,
        out_shape=jax.ShapeDtypeStruct((B, FEAT_ROWS, N_KERNEL[2]), jnp.bfloat16),
        grid_spec=pltpu.PrefetchScalarGridSpec(
            num_scalar_prefetch=0,
            grid=(B,),
            in_specs=[pl.BlockSpec((1, OH1 * OH1, SIZE_FILTER[0] ** 2),
                                   lambda b: (b, 0, 0)),
                      const_spec(kp["c1w"]), const_spec(kp["c1b"]),
                      const_spec(kp["g2"]), const_spec(kp["c2w"]),
                      const_spec(kp["c2b"]),
                      const_spec(kp["g3"]), const_spec(kp["c3w"]),
                      const_spec(kp["c3b"])],
            out_specs=pl.BlockSpec((1, FEAT_ROWS, N_KERNEL[2]),
                                   lambda b: (b, 0, 0))),
        compiler_params=pltpu.CompilerParams(
            dimension_semantics=("parallel",)),
    )(patches1, kp["c1w"], kp["c1b"], kp["g2"], kp["c2w"], kp["c2b"],
      kp["g3"], kp["c3w"], kp["c3b"])


# ----------------------------------------------------------------------------
# Kernel 2: fused dueling head, K-tiled over the big first linear so w1 is
# streamed/double-buffered instead of one serialized 4 MB VMEM copy.
# ----------------------------------------------------------------------------
def _head_kernel(feat_ref, xl_ref, w1_ref, w1l_ref, b1_ref,
                 w2a_ref, b2a_ref, w2v_ref, b2v_ref,
                 w3a_ref, b3a_ref, w3v_ref, b3v_ref,
                 q_ref, qmax_ref, h1_acc):
    k = pl.program_id(0)

    @pl.when(k == 0)
    def _():
        # x_low contribution (tiny K=5 GEMM, f32) + bias seed the accumulator.
        h1_acc[...] = (jnp.dot(xl_ref[...], w1l_ref[...],
                               preferred_element_type=jnp.float32)
                       + b1_ref[...])

    h1_acc[...] += jnp.dot(feat_ref[...], w1_ref[...],
                           preferred_element_type=jnp.float32)

    @pl.when(k == pl.num_programs(0) - 1)
    def _():
        h1 = jnp.maximum(h1_acc[...], 0.0).astype(jnp.bfloat16)   # (B, 256)
        a1 = h1[:, :LINEAR_N[1]]            # adv branch features (B, 128)
        v1 = h1[:, LINEAR_N[1]:]            # val branch features (B, 128)

        a2 = jnp.maximum(
            jnp.dot(a1, w2a_ref[...], preferred_element_type=jnp.float32)
            + b2a_ref[...], 0.0).astype(jnp.bfloat16)
        v2 = jnp.maximum(
            jnp.dot(v1, w2v_ref[...], preferred_element_type=jnp.float32)
            + b2v_ref[...], 0.0).astype(jnp.bfloat16)

        adv = jnp.dot(a2, w3a_ref[...],
                      preferred_element_type=jnp.float32) + b3a_ref[...]
        val = jnp.dot(v2, w3v_ref[...],
                      preferred_element_type=jnp.float32) + b3v_ref[...]

        # Dueling combine, matching torch exactly: adv.mean() and torch.max(Q)
        # are GLOBAL reductions over (batch x actions).  Constant reciprocal.
        adv_mean = jnp.sum(adv) * (1.0 / float(adv.size))
        q = val + adv - adv_mean
        q_ref[...] = q
        qmax_ref[...] = jnp.max(jnp.max(q, axis=1, keepdims=True),
                                axis=0, keepdims=True)


def fused_head(feats, x_low, kp):
    B = feats.shape[0]
    nk = FEAT_DIM // HEAD_K_TILE

    def const_spec(arr):
        nd = arr.ndim
        return pl.BlockSpec(arr.shape, lambda k, _nd=nd: (0,) * _nd)

    return pl.pallas_call(
        _head_kernel,
        out_shape=(jax.ShapeDtypeStruct((B, N_ACTIONS), jnp.float32),
                   jax.ShapeDtypeStruct((1, 1), jnp.float32)),
        grid_spec=pltpu.PrefetchScalarGridSpec(
            num_scalar_prefetch=0,
            grid=(nk,),
            in_specs=[pl.BlockSpec((B, HEAD_K_TILE), lambda k: (0, k)),
                      const_spec(x_low),
                      pl.BlockSpec((HEAD_K_TILE, 2 * LINEAR_N[1]),
                                   lambda k: (k, 0)),
                      const_spec(kp["w1l"]), const_spec(kp["b1"]),
                      const_spec(kp["w2a"]), const_spec(kp["b2a"]),
                      const_spec(kp["w2v"]), const_spec(kp["b2v"]),
                      const_spec(kp["w3a"]), const_spec(kp["b3a"]),
                      const_spec(kp["w3v"]), const_spec(kp["b3v"])],
            out_specs=(pl.BlockSpec((B, N_ACTIONS), lambda k: (0, 0)),
                       pl.BlockSpec((1, 1), lambda k: (0, 0))),
            scratch_shapes=[pltpu.VMEM((B, 2 * LINEAR_N[1]), jnp.float32)]),
        compiler_params=pltpu.CompilerParams(
            dimension_semantics=("arbitrary",)),
    )(feats, x_low, kp["w1"], kp["w1l"], kp["b1"],
      kp["w2a"], kp["b2a"], kp["w2v"], kp["b2v"],
      kp["w3a"], kp["b3a"], kp["w3v"], kp["b3v"])


# ----------------------------------------------------------------------------
# Parameters: torch layouts -> kernel layouts (one-time init transform).
# ----------------------------------------------------------------------------
def init_torch_params(key):
    """PyTorch layouts (Conv2d: (Cout,Cin,KH,KW); Linear: (out,in)).
    weights_init semantics: weights ~ N(0, 0.02); Linear biases = 0; Conv
    biases keep PyTorch's default U(-1/sqrt(fan_in), 1/sqrt(fan_in))."""
    ks = jax.random.split(key, 12)
    nrm = lambda k, s: 0.02 * jax.random.normal(k, s, jnp.float32)
    z = lambda s: jnp.zeros(s, jnp.float32)

    def conv_bias(k, cout, fan_in):
        bound = 1.0 / (fan_in ** 0.5)
        return jax.random.uniform(k, (cout,), jnp.float32, -bound, bound)

    return {
        "conv1_w": nrm(ks[0], (N_KERNEL[0], IMAGE_NUM, SIZE_FILTER[0], SIZE_FILTER[0])),
        "conv1_b": conv_bias(ks[1], N_KERNEL[0], IMAGE_NUM * SIZE_FILTER[0] ** 2),
        "conv2_w": nrm(ks[2], (N_KERNEL[1], N_KERNEL[0], SIZE_FILTER[1], SIZE_FILTER[1])),
        "conv2_b": conv_bias(ks[3], N_KERNEL[1], N_KERNEL[0] * SIZE_FILTER[1] ** 2),
        "conv3_w": nrm(ks[4], (N_KERNEL[2], N_KERNEL[1], SIZE_FILTER[2], SIZE_FILTER[2])),
        "conv3_b": conv_bias(ks[5], N_KERNEL[2], N_KERNEL[1] * SIZE_FILTER[2] ** 2),
        "adv1_w": nrm(ks[6], (LINEAR_N[1], LINEAR_N[0] + N_STATE_LOW)),
        "adv1_b": z((LINEAR_N[1],)),
        "adv2a_w": nrm(ks[7], (LINEAR_N[2], LINEAR_N[1])), "adv2a_b": z((LINEAR_N[2],)),
        "adv2b_w": nrm(ks[8], (N_ACTIONS, LINEAR_N[2])),   "adv2b_b": z((N_ACTIONS,)),
        "val1_w": nrm(ks[9], (LINEAR_N[1], LINEAR_N[0] + N_STATE_LOW)),
        "val1_b": z((LINEAR_N[1],)),
        "val2a_w": nrm(ks[10], (LINEAR_N[2], LINEAR_N[1])), "val2a_b": z((LINEAR_N[2],)),
        "val2b_w": nrm(ks[11], (1, LINEAR_N[2])),           "val2b_b": z((1,)),
    }


def pack_kernel_params(tp):
    bf = jnp.bfloat16
    f32 = jnp.float32

    def conv_offsets(w):  # (Cout,Cin,K,K) -> (K*K, Cin, Cout), p = kh*K + kw
        k = w.shape[-1]
        return jnp.transpose(w, (2, 3, 1, 0)).reshape(k * k, w.shape[1], w.shape[0])

    # conv1 stays a plain im2col GEMM; patch-channel order (Cin,KH,KW) matches
    # torch_w.reshape(Cout,-1).T (Cin == 1 so it is just (KH,KW)).
    c1w = jnp.asarray(tp["conv1_w"].reshape(N_KERNEL[0], -1).T, bf)     # (64, 32)

    # im2col selection matrices for conv2 / conv3 (zero rows encode padding,
    # columns never reference the junk pad rows of the previous activation).
    g2 = jnp.asarray(make_select(OH2, OH2, OH1, OH1, SIZE_FILTER[1], STRIDE[1],
                                 PAD, OH1 * OH1, BLK2), bf)             # (1536, 256)
    g3 = jnp.asarray(make_select(OH3, OH3, OH2, OH2, SIZE_FILTER[2], STRIDE[2],
                                 PAD, BLK2, BLK3), bf)                  # (1152, 96)

    # Head first layer: fold the torch NCHW x.view(B,-1) permutation and the
    # 121->128 feature-row padding into the weight rows; merge adv|val along N.
    rr, cc = np.meshgrid(np.arange(FEAT_ROWS), np.arange(N_KERNEL[2]), indexing="ij")
    valid_np = (rr < M3).reshape(-1)                                    # (8192,)
    tcol = np.where(valid_np, (cc * M3 + rr).reshape(-1), 0)
    valid = jnp.asarray(valid_np)

    def expand_w1(w_img):  # torch (out, 7744) -> kernel (8192, out)
        rows = jnp.asarray(w_img)[:, tcol].T
        return jnp.where(valid[:, None], rows, 0.0)

    w1 = jnp.concatenate(
        [expand_w1(tp["adv1_w"][:, :LINEAR_N[0]]),
         expand_w1(tp["val1_w"][:, :LINEAR_N[0]])], axis=1).astype(bf)  # (8192, 256)
    w1l = jnp.concatenate([tp["adv1_w"][:, LINEAR_N[0]:].T,
                           tp["val1_w"][:, LINEAR_N[0]:].T], axis=1).astype(f32)  # (5, 256)
    b1 = jnp.concatenate([tp["adv1_b"], tp["val1_b"]])[None, :].astype(f32)       # (1, 256)

    return {
        "c1w": c1w, "c1b": tp["conv1_b"][None, :].astype(f32),
        "c2w": conv_offsets(tp["conv2_w"]).astype(bf),
        "c2b": tp["conv2_b"][None, :].astype(f32),
        "c3w": conv_offsets(tp["conv3_w"]).astype(bf),
        "c3b": tp["conv3_b"][None, :].astype(f32),
        "g2": g2, "g3": g3,
        "w1": w1, "w1l": w1l, "b1": b1,
        "w2a": jnp.asarray(tp["adv2a_w"].T, bf), "b2a": tp["adv2a_b"][None, :].astype(f32),
        "w2v": jnp.asarray(tp["val2a_w"].T, bf), "b2v": tp["val2a_b"][None, :].astype(f32),
        "w3a": jnp.asarray(tp["adv2b_w"].T, bf), "b3a": tp["adv2b_b"][None, :].astype(f32),
        "w3v": jnp.asarray(tp["val2b_w"].T, bf), "b3v": tp["val2b_b"][None, :].astype(f32),
    }


# ----------------------------------------------------------------------------
# Forward pass.
# ----------------------------------------------------------------------------
@jax.jit
def cnn_forward(kp, x_image, x_low):
    # x_image: NCHW (B, 1, 64, 64); x_low: (B, 5)
    B = x_image.shape[0]
    # Cin == 1, so NCHW -> NHWC is a pure (free) reshape, not a transpose copy.
    x_nhwc = x_image.reshape(B, IMG_HW, IMG_HW, 1)
    # conv1 im2col is the single XLA prologue op (Cin=1 makes in-kernel
    # patching awkward); fused with the bf16 cast.
    patches = jax.lax.conv_general_dilated_patches(
        x_nhwc,
        filter_shape=(SIZE_FILTER[0], SIZE_FILTER[0]),
        window_strides=(STRIDE[0], STRIDE[0]),
        padding=[(PAD, PAD), (PAD, PAD)],
        dimension_numbers=("NHWC", "HWIO", "NHWC"))          # (B, 16, 16, 64)
    patches = patches.reshape(B, OH1 * OH1, SIZE_FILTER[0] ** 2).astype(jnp.bfloat16)

    feats = conv_stack(patches, kp)                          # (B, 128, 64) bf16
    feats = feats.reshape(B, FEAT_DIM)                       # free row-major reshape
    return fused_head(feats, x_low.astype(jnp.float32), kp)


if __name__ == "__main__":
    key = jax.random.PRNGKey(0)
    k_param, k_img, k_low = jax.random.split(key, 3)

    torch_params = init_torch_params(k_param)
    kp = pack_kernel_params(torch_params)

    B = 2
    # 64x64 input is required so that the conv stack flattens to 7744 features.
    x_image = jax.random.normal(k_img, (B, IMAGE_NUM, IMG_HW, IMG_HW), jnp.float32)
    x_low = jax.random.normal(k_low, (B, N_STATE_LOW), jnp.float32)

    Q, qmax = cnn_forward(kp, x_image, x_low)
    jax.block_until_ready((Q, qmax))
    assert Q.shape == (B, N_ACTIONS) and qmax.shape == (1, 1)
    assert bool(jnp.isfinite(Q).all()) and bool(jnp.isfinite(qmax).all())
    print("KERNEL_OK")
</pallas_src>

<mosaic_0001>
module attributes {stable_mosaic.version = 11 : i64} {
  func.func @_conv_stack_kernel(%arg0: i32, %arg1: memref<1x256x64xbf16, #tpu.memory_space<vmem>>, %arg2: memref<64x32xbf16, #tpu.memory_space<vmem>>, %arg3: memref<1x32xf32, #tpu.memory_space<vmem>>, %arg4: memref<1536x256xbf16, #tpu.memory_space<vmem>>, %arg5: memref<16x32x64xbf16, #tpu.memory_space<vmem>>, %arg6: memref<1x64xf32, #tpu.memory_space<vmem>>, %arg7: memref<1152x96xbf16, #tpu.memory_space<vmem>>, %arg8: memref<9x64x64xbf16, #tpu.memory_space<vmem>>, %arg9: memref<1x64xf32, #tpu.memory_space<vmem>>, %arg10: memref<1x128x64xbf16, #tpu.memory_space<vmem>>) attributes {dimension_semantics = [#tpu.dimension_semantics<parallel>], iteration_bounds = array<i64: 2>, scalar_prefetch = 0 : i64, scratch_operands = 0 : i64, tpu.core_type = #tpu.core_type<tc>, window_params = [{transform_indices = @transform_0, window_bounds = array<i64: 1, 256, 64>}, {pipeline_mode = #tpu.pipeline_mode<synchronous>, transform_indices = @transform_1, window_bounds = array<i64: 64, 32>}, {pipeline_mode = #tpu.pipeline_mode<synchronous>, transform_indices = @transform_2, window_bounds = array<i64: 1, 32>}, {pipeline_mode = #tpu.pipeline_mode<synchronous>, transform_indices = @transform_3, window_bounds = array<i64: 1536, 256>}, {pipeline_mode = #tpu.pipeline_mode<synchronous>, transform_indices = @transform_4, window_bounds = array<i64: 16, 32, 64>}, {pipeline_mode = #tpu.pipeline_mode<synchronous>, transform_indices = @transform_5, window_bounds = array<i64: 1, 64>}, {pipeline_mode = #tpu.pipeline_mode<synchronous>, transform_indices = @transform_6, window_bounds = array<i64: 1152, 96>}, {pipeline_mode = #tpu.pipeline_mode<synchronous>, transform_indices = @transform_7, window_bounds = array<i64: 9, 64, 64>}, {pipeline_mode = #tpu.pipeline_mode<synchronous>, transform_indices = @transform_8, window_bounds = array<i64: 1, 64>}, {transform_indices = @transform_9, window_bounds = array<i64: 1, 128, 64>}]} {
    %c0 = arith.constant 0 : index
    %c0_0 = arith.constant 0 : index
    %c0_1 = arith.constant 0 : index
    %0 = vector.load %arg1[%c0, %c0_0, %c0_1] : memref<1x256x64xbf16, #tpu.memory_space<vmem>>, vector<1x256x64xbf16>
    %1 = vector.shape_cast %0 : vector<1x256x64xbf16> to vector<256x64xbf16>
    %c0_2 = arith.constant 0 : index
    %c0_3 = arith.constant 0 : index
    %2 = vector.load %arg2[%c0_2, %c0_3] : memref<64x32xbf16, #tpu.memory_space<vmem>>, vector<64x32xbf16>
    %cst = arith.constant dense<0.000000e+00> : vector<256x32xf32>
    %3 = tpu.matmul %1, %2, %cst {dimension_numbers = #tpu.dot_dimension_numbers<[1], [0], [0], [1], [0, 0, 1, 1], [], []>} : vector<256x64xbf16>, vector<64x32xbf16>, vector<256x32xf32> -> vector<256x32xf32>
    %c0_4 = arith.constant 0 : index
    %c0_5 = arith.constant 0 : index
    %4 = vector.load %arg3[%c0_4, %c0_5] : memref<1x32xf32, #tpu.memory_space<vmem>>, vector<1x32xf32>
    %5 = vector.broadcast %4 : vector<1x32xf32> to vector<256x32xf32>
    %6 = arith.addf %3, %5 : vector<256x32xf32>
    %cst_6 = arith.constant 0.000000e+00 : f32
    %7 = vector.broadcast %cst_6 : f32 to vector<256x32xf32>
    %8 = arith.maximumf %6, %7 : vector<256x32xf32>
    %9 = arith.truncf %8 : vector<256x32xf32> to vector<256x32xbf16>
    %c0_7 = arith.constant 0 : index
    %c0_8 = arith.constant 0 : index
    %10 = vector.load %arg4[%c0_7, %c0_8] : memref<1536x256xbf16, #tpu.memory_space<vmem>>, vector<1536x256xbf16>
    %cst_9 = arith.constant dense<0.000000e+00> : vector<1536x32xf32>
    %11 = tpu.matmul %10, %9, %cst_9 {dimension_numbers = #tpu.dot_dimension_numbers<[1], [0], [0], [1], [0, 0, 1, 1], [], []>} : vector<1536x256xbf16>, vector<256x32xbf16>, vector<1536x32xf32> -> vector<1536x32xf32>
    %12 = arith.truncf %11 : vector<1536x32xf32> to vector<1536x32xbf16>
    %cst_10 = arith.constant 0.000000e+00 : f32
    %13 = vector.broadcast %cst_10 : f32 to vector<96x64xf32>
    %14 = vector.extract_strided_slice %12 {offsets = [0, 0], sizes = [96, 32], strides = [1, 1]} : vector<1536x32xbf16> to vector<96x32xbf16>
    %c0_11 = arith.constant 0 : index
    %c0_12 = arith.constant 0 : index
    %c0_13 = arith.constant 0 : index
    %15 = vector.load %arg5[%c0_11, %c0_12, %c0_13] : memref<16x32x64xbf16, #tpu.memory_space<vmem>>, vector<1x32x64xbf16>
    %16 = vector.shape_cast %15 : vector<1x32x64xbf16> to vector<32x64xbf16>
    %cst_14 = arith.constant dense<0.000000e+00> : vector<96x64xf32>
    %17 = tpu.matmul %14, %16, %cst_14 {dimension_numbers = #tpu.dot_dimension_numbers<[1], [0], [0], [1], [0, 0, 1, 1], [], []>} : vector<96x32xbf16>, vector<32x64xbf16>, vector<96x64xf32> -> vector<96x64xf32>
    %18 = arith.addf %13, %17 : vector<96x64xf32>
    %19 = vector.extract_strided_slice %12 {offsets = [96, 0], sizes = [96, 32], strides = [1, 1]} : vector<1536x32xbf16> to vector<96x32xbf16>
    %c1 = arith.constant 1 : index
    %c0_15 = arith.constant 0 : index
    %c0_16 = arith.constant 0 : index
    %20 = vector.load %arg5[%c1, %c0_15, %c0_16] : memref<16x32x64xbf16, #tpu.memory_space<vmem>>, vector<1x32x64xbf16>
    %21 = vector.shape_cast %20 : vector<1x32x64xbf16> to vector<32x64xbf16>
    %cst_17 = arith.constant dense<0.000000e+00> : vector<96x64xf32>
    %22 = tpu.matmul %19, %21, %cst_17 {dimension_numbers = #tpu.dot_dimension_numbers<[1], [0], [0], [1], [0, 0, 1, 1], [], []>} : vector<96x32xbf16>, vector<32x64xbf16>, vector<96x64xf32> -> vector<96x64xf32>
    %23 = arith.addf %18, %22 : vector<96x64xf32>
    %24 = vector.extract_strided_slice %12 {offsets = [192, 0], sizes = [96, 32], strides = [1, 1]} : vector<1536x32xbf16> to vector<96x32xbf16>
    %c2 = arith.constant 2 : index
    %c0_18 = arith.constant 0 : index
    %c0_19 = arith.constant 0 : index
    %25 = vector.load %arg5[%c2, %c0_18, %c0_19] : memref<16x32x64xbf16, #tpu.memory_space<vmem>>, vector<1x32x64xbf16>
    %26 = vector.shape_cast %25 : vector<1x32x64xbf16> to vector<32x64xbf16>
    %cst_20 = arith.constant dense<0.000000e+00> : vector<96x64xf32>
    %27 = tpu.matmul %24, %26, %cst_20 {dimension_numbers = #tpu.dot_dimension_numbers<[1], [0], [0], [1], [0, 0, 1, 1], [], []>} : vector<96x32xbf16>, vector<32x64xbf16>, vector<96x64xf32> -> vector<96x64xf32>
    %28 = arith.addf %23, %27 : vector<96x64xf32>
    %29 = vector.extract_strided_slice %12 {offsets = [288, 0], sizes = [96, 32], strides = [1, 1]} : vector<1536x32xbf16> to vector<96x32xbf16>
    %c3 = arith.constant 3 : index
    %c0_21 = arith.constant 0 : index
    %c0_22 = arith.constant 0 : index
    %30 = vector.load %arg5[%c3, %c0_21, %c0_22] : memref<16x32x64xbf16, #tpu.memory_space<vmem>>, vector<1x32x64xbf16>
    %31 = vector.shape_cast %30 : vector<1x32x64xbf16> to vector<32x64xbf16>
    %cst_23 = arith.constant dense<0.000000e+00> : vector<96x64xf32>
    %32 = tpu.matmul %29, %31, %cst_23 {dimension_numbers = #tpu.dot_dimension_numbers<[1], [0], [0], [1], [0, 0, 1, 1], [], []>} : vector<96x32xbf16>, vector<32x64xbf16>, vector<96x64xf32> -> vector<96x64xf32>
    %33 = arith.addf %28, %32 : vector<96x64xf32>
    %34 = vector.extract_strided_slice %12 {offsets = [384, 0], sizes = [96, 32], strides = [1, 1]} : vector<1536x32xbf16> to vector<96x32xbf16>
    %c4 = arith.constant 4 : index
    %c0_24 = arith.constant 0 : index
    %c0_25 = arith.constant 0 : index
    %35 = vector.load %arg5[%c4, %c0_24, %c0_25] : memref<16x32x64xbf16, #tpu.memory_space<vmem>>, vector<1x32x64xbf16>
    %36 = vector.shape_cast %35 : vector<1x32x64xbf16> to vector<32x64xbf16>
    %cst_26 = arith.constant dense<0.000000e+00> : vector<96x64xf32>
    %37 = tpu.matmul %34, %36, %cst_26 {dimension_numbers = #tpu.dot_dimension_numbers<[1], [0], [0], [1], [0, 0, 1, 1], [], []>} : vector<96x32xbf16>, vector<32x64xbf16>, vector<96x64xf32> -> vector<96x64xf32>
    %38 = arith.addf %33, %37 : vector<96x64xf32>
    %39 = vector.extract_strided_slice %12 {offsets = [480, 0], sizes = [96, 32], strides = [1, 1]} : vector<1536x32xbf16> to vector<96x32xbf16>
    %c5 = arith.constant 5 : index
    %c0_27 = arith.constant 0 : index
    %c0_28 = arith.constant 0 : index
    %40 = vector.load %arg5[%c5, %c0_27, %c0_28] : memref<16x32x64xbf16, #tpu.memory_space<vmem>>, vector<1x32x64xbf16>
    %41 = vector.shape_cast %40 : vector<1x32x64xbf16> to vector<32x64xbf16>
    %cst_29 = arith.constant dense<0.000000e+00> : vector<96x64xf32>
    %42 = tpu.matmul %39, %41, %cst_29 {dimension_numbers = #tpu.dot_dimension_numbers<[1], [0], [0], [1], [0, 0, 1, 1], [], []>} : vector<96x32xbf16>, vector<32x64xbf16>, vector<96x64xf32> -> vector<96x64xf32>
    %43 = arith.addf %38, %42 : vector<96x64xf32>
    %44 = vector.extract_strided_slice %12 {offsets = [576, 0], sizes = [96, 32], strides = [1, 1]} : vector<1536x32xbf16> to vector<96x32xbf16>
    %c6 = arith.constant 6 : index
    %c0_30 = arith.constant 0 : index
    %c0_31 = arith.constant 0 : index
    %45 = vector.load %arg5[%c6, %c0_30, %c0_31] : memref<16x32x64xbf16, #tpu.memory_space<vmem>>, vector<1x32x64xbf16>
    %46 = vector.shape_cast %45 : vector<1x32x64xbf16> to vector<32x64xbf16>
    %cst_32 = arith.constant dense<0.000000e+00> : vector<96x64xf32>
    %47 = tpu.matmul %44, %46, %cst_32 {dimension_numbers = #tpu.dot_dimension_numbers<[1], [0], [0], [1], [0, 0, 1, 1], [], []>} : vector<96x32xbf16>, vector<32x64xbf16>, vector<96x64xf32> -> vector<96x64xf32>
    %48 = arith.addf %43, %47 : vector<96x64xf32>
    %49 = vector.extract_strided_slice %12 {offsets = [672, 0], sizes = [96, 32], strides = [1, 1]} : vector<1536x32xbf16> to vector<96x32xbf16>
    %c7 = arith.constant 7 : index
    %c0_33 = arith.constant 0 : index
    %c0_34 = arith.constant 0 : index
    %50 = vector.load %arg5[%c7, %c0_33, %c0_34] : memref<16x32x64xbf16, #tpu.memory_space<vmem>>, vector<1x32x64xbf16>
    %51 = vector.shape_cast %50 : vector<1x32x64xbf16> to vector<32x64xbf16>
    %cst_35 = arith.constant dense<0.000000e+00> : vector<96x64xf32>
    %52 = tpu.matmul %49, %51, %cst_35 {dimension_numbers = #tpu.dot_dimension_numbers<[1], [0], [0], [1], [0, 0, 1, 1], [], []>} : vector<96x32xbf16>, vector<32x64xbf16>, vector<96x64xf32> -> vector<96x64xf32>
    %53 = arith.addf %48, %52 : vector<96x64xf32>
    %54 = vector.extract_strided_slice %12 {offsets = [768, 0], sizes = [96, 32], strides = [1, 1]} : vector<1536x32xbf16> to vector<96x32xbf16>
    %c8 = arith.constant 8 : index
    %c0_36 = arith.constant 0 : index
    %c0_37 = arith.constant 0 : index
    %55 = vector.load %arg5[%c8, %c0_36, %c0_37] : memref<16x32x64xbf16, #tpu.memory_space<vmem>>, vector<1x32x64xbf16>
    %56 = vector.shape_cast %55 : vector<1x32x64xbf16> to vector<32x64xbf16>
    %cst_38 = arith.constant dense<0.000000e+00> : vector<96x64xf32>
    %57 = tpu.matmul %54, %56, %cst_38 {dimension_numbers = #tpu.dot_dimension_numbers<[1], [0], [0], [1], [0, 0, 1, 1], [], []>} : vector<96x32xbf16>, vector<32x64xbf16>, vector<96x64xf32> -> vector<96x64xf32>
    %58 = arith.addf %53, %57 : vector<96x64xf32>
    %59 = vector.extract_strided_slice %12 {offsets = [864, 0], sizes = [96, 32], strides = [1, 1]} : vector<1536x32xbf16> to vector<96x32xbf16>
    %c9 = arith.constant 9 : index
    %c0_39 = arith.constant 0 : index
    %c0_40 = arith.constant 0 : index
    %60 = vector.load %arg5[%c9, %c0_39, %c0_40] : memref<16x32x64xbf16, #tpu.memory_space<vmem>>, vector<1x32x64xbf16>
    %61 = vector.shape_cast %60 : vector<1x32x64xbf16> to vector<32x64xbf16>
    %cst_41 = arith.constant dense<0.000000e+00> : vector<96x64xf32>
    %62 = tpu.matmul %59, %61, %cst_41 {dimension_numbers = #tpu.dot_dimension_numbers<[1], [0], [0], [1], [0, 0, 1, 1], [], []>} : vector<96x32xbf16>, vector<32x64xbf16>, vector<96x64xf32> -> vector<96x64xf32>
    %63 = arith.addf %58, %62 : vector<96x64xf32>
    %64 = vector.extract_strided_slice %12 {offsets = [960, 0], sizes = [96, 32], strides = [1, 1]} : vector<1536x32xbf16> to vector<96x32xbf16>
    %c10 = arith.constant 10 : index
    %c0_42 = arith.constant 0 : index
    %c0_43 = arith.constant 0 : index
    %65 = vector.load %arg5[%c10, %c0_42, %c0_43] : memref<16x32x64xbf16, #tpu.memory_space<vmem>>, vector<1x32x64xbf16>
    %66 = vector.shape_cast %65 : vector<1x32x64xbf16> to vector<32x64xbf16>
    %cst_44 = arith.constant dense<0.000000e+00> : vector<96x64xf32>
    %67 = tpu.matmul %64, %66, %cst_44 {dimension_numbers = #tpu.dot_dimension_numbers<[1], [0], [0], [1], [0, 0, 1, 1], [], []>} : vector<96x32xbf16>, vector<32x64xbf16>, vector<96x64xf32> -> vector<96x64xf32>
    %68 = arith.addf %63, %67 : vector<96x64xf32>
    %69 = vector.extract_strided_slice %12 {offsets = [1056, 0], sizes = [96, 32], strides = [1, 1]} : vector<1536x32xbf16> to vector<96x32xbf16>
    %c11 = arith.constant 11 : index
    %c0_45 = arith.constant 0 : index
    %c0_46 = arith.constant 0 : index
    %70 = vector.load %arg5[%c11, %c0_45, %c0_46] : memref<16x32x64xbf16, #tpu.memory_space<vmem>>, vector<1x32x64xbf16>
    %71 = vector.shape_cast %70 : vector<1x32x64xbf16> to vector<32x64xbf16>
    %cst_47 = arith.constant dense<0.000000e+00> : vector<96x64xf32>
    %72 = tpu.matmul %69, %71, %cst_47 {dimension_numbers = #tpu.dot_dimension_numbers<[1], [0], [0], [1], [0, 0, 1, 1], [], []>} : vector<96x32xbf16>, vector<32x64xbf16>, vector<96x64xf32> -> vector<96x64xf32>
    %73 = arith.addf %68, %72 : vector<96x64xf32>
    %74 = vector.extract_strided_slice %12 {offsets = [1152, 0], sizes = [96, 32], strides = [1, 1]} : vector<1536x32xbf16> to vector<96x32xbf16>
    %c12 = arith.constant 12 : index
    %c0_48 = arith.constant 0 : index
    %c0_49 = arith.constant 0 : index
    %75 = vector.load %arg5[%c12, %c0_48, %c0_49] : memref<16x32x64xbf16, #tpu.memory_space<vmem>>, vector<1x32x64xbf16>
    %76 = vector.shape_cast %75 : vector<1x32x64xbf16> to vector<32x64xbf16>
    %cst_50 = arith.constant dense<0.000000e+00> : vector<96x64xf32>
    %77 = tpu.matmul %74, %76, %cst_50 {dimension_numbers = #tpu.dot_dimension_numbers<[1], [0], [0], [1], [0, 0, 1, 1], [], []>} : vector<96x32xbf16>, vector<32x64xbf16>, vector<96x64xf32> -> vector<96x64xf32>
    %78 = arith.addf %73, %77 : vector<96x64xf32>
    %79 = vector.extract_strided_slice %12 {offsets = [1248, 0], sizes = [96, 32], strides = [1, 1]} : vector<1536x32xbf16> to vector<96x32xbf16>
    %c13 = arith.constant 13 : index
    %c0_51 = arith.constant 0 : index
    %c0_52 = arith.constant 0 : index
    %80 = vector.load %arg5[%c13, %c0_51, %c0_52] : memref<16x32x64xbf16, #tpu.memory_space<vmem>>, vector<1x32x64xbf16>
    %81 = vector.shape_cast %80 : vector<1x32x64xbf16> to vector<32x64xbf16>
    %cst_53 = arith.constant dense<0.000000e+00> : vector<96x64xf32>
    %82 = tpu.matmul %79, %81, %cst_53 {dimension_numbers = #tpu.dot_dimension_numbers<[1], [0], [0], [1], [0, 0, 1, 1], [], []>} : vector<96x32xbf16>, vector<32x64xbf16>, vector<96x64xf32> -> vector<96x64xf32>
    %83 = arith.addf %78, %82 : vector<96x64xf32>
    %84 = vector.extract_strided_slice %12 {offsets = [1344, 0], sizes = [96, 32], strides = [1, 1]} : vector<1536x32xbf16> to vector<96x32xbf16>
    %c14 = arith.constant 14 : index
    %c0_54 = arith.constant 0 : index
    %c0_55 = arith.constant 0 : index
    %85 = vector.load %arg5[%c14, %c0_54, %c0_55] : memref<16x32x64xbf16, #tpu.memory_space<vmem>>, vector<1x32x64xbf16>
    %86 = vector.shape_cast %85 : vector<1x32x64xbf16> to vector<32x64xbf16>
    %cst_56 = arith.constant dense<0.000000e+00> : vector<96x64xf32>
    %87 = tpu.matmul %84, %86, %cst_56 {dimension_numbers = #tpu.dot_dimension_numbers<[1], [0], [0], [1], [0, 0, 1, 1], [], []>} : vector<96x32xbf16>, vector<32x64xbf16>, vector<96x64xf32> -> vector<96x64xf32>
    %88 = arith.addf %83, %87 : vector<96x64xf32>
    %89 = vector.extract_strided_slice %12 {offsets = [1440, 0], sizes = [96, 32], strides = [1, 1]} : vector<1536x32xbf16> to vector<96x32xbf16>
    %c15 = arith.constant 15 : index
    %c0_57 = arith.constant 0 : index
    %c0_58 = arith.constant 0 : index
    %90 = vector.load %arg5[%c15, %c0_57, %c0_58] : memref<16x32x64xbf16, #tpu.memory_space<vmem>>, vector<1x32x64xbf16>
    %91 = vector.shape_cast %90 : vector<1x32x64xbf16> to vector<32x64xbf16>
    %cst_59 = arith.constant dense<0.000000e+00> : vector<96x64xf32>
    %92 = tpu.matmul %89, %91, %cst_59 {dimension_numbers = #tpu.dot_dimension_numbers<[1], [0], [0], [1], [0, 0, 1, 1], [], []>} : vector<96x32xbf16>, vector<32x64xbf16>, vector<96x64xf32> -> vector<96x64xf32>
    %93 = arith.addf %88, %92 : vector<96x64xf32>
    %c0_60 = arith.constant 0 : index
    %c0_61 = arith.constant 0 : index
    %94 = vector.load %arg6[%c0_60, %c0_61] : memref<1x64xf32, #tpu.memory_space<vmem>>, vector<1x64xf32>
    %95 = vector.broadcast %94 : vector<1x64xf32> to vector<96x64xf32>
    %96 = arith.addf %93, %95 : vector<96x64xf32>
    %cst_62 = arith.constant 0.000000e+00 : f32
    %97 = vector.broadcast %cst_62 : f32 to vector<96x64xf32>
    %98 = arith.maximumf %96, %97 : vector<96x64xf32>
    %99 = arith.truncf %98 : vector<96x64xf32> to vector<96x64xbf16>
    %c0_63 = arith.constant 0 : index
    %c0_64 = arith.constant 0 : index
    %100 = vector.load %arg7[%c0_63, %c0_64] : memref<1152x96xbf16, #tpu.memory_space<vmem>>, vector<1152x96xbf16>
    %cst_65 = arith.constant dense<0.000000e+00> : vector<1152x64xf32>
    %101 = tpu.matmul %100, %99, %cst_65 {dimension_numbers = #tpu.dot_dimension_numbers<[1], [0], [0], [1], [0, 0, 1, 1], [], []>} : vector<1152x96xbf16>, vector<96x64xbf16>, vector<1152x64xf32> -> vector<1152x64xf32>
    %102 = arith.truncf %101 : vector<1152x64xf32> to vector<1152x64xbf16>
    %cst_66 = arith.constant 0.000000e+00 : f32
    %103 = vector.broadcast %cst_66 : f32 to vector<128x64xf32>
    %104 = vector.extract_strided_slice %102 {offsets = [0, 0], sizes = [128, 64], strides = [1, 1]} : vector<1152x64xbf16> to vector<128x64xbf16>
    %c0_67 = arith.constant 0 : index
    %c0_68 = arith.constant 0 : index
    %c0_69 = arith.constant 0 : index
    %105 = vector.load %arg8[%c0_67, %c0_68, %c0_69] : memref<9x64x64xbf16, #tpu.memory_space<vmem>>, vector<1x64x64xbf16>
    %106 = vector.shape_cast %105 : vector<1x64x64xbf16> to vector<64x64xbf16>
    %cst_70 = arith.constant dense<0.000000e+00> : vector<128x64xf32>
    %107 = tpu.matmul %104, %106, %cst_70 {dimension_numbers = #tpu.dot_dimension_numbers<[1], [0], [0], [1], [0, 0, 1, 1], [], []>} : vector<128x64xbf16>, vector<64x64xbf16>, vector<128x64xf32> -> vector<128x64xf32>
    %108 = arith.addf %103, %107 : vector<128x64xf32>
    %109 = vector.extract_strided_slice %102 {offsets = [128, 0], sizes = [128, 64], strides = [1, 1]} : vector<1152x64xbf16> to vector<128x64xbf16>
    %c1_71 = arith.constant 1 : index
    %c0_72 = arith.constant 0 : index
    %c0_73 = arith.constant 0 : index
    %110 = vector.load %arg8[%c1_71, %c0_72, %c0_73] : memref<9x64x64xbf16, #tpu.memory_space<vmem>>, vector<1x64x64xbf16>
    %111 = vector.shape_cast %110 : vector<1x64x64xbf16> to vector<64x64xbf16>
    %cst_74 = arith.constant dense<0.000000e+00> : vector<128x64xf32>
    %112 = tpu.matmul %109, %111, %cst_74 {dimension_numbers = #tpu.dot_dimension_numbers<[1], [0], [0], [1], [0, 0, 1, 1], [], []>} : vector<128x64xbf16>, vector<64x64xbf16>, vector<128x64xf32> -> vector<128x64xf32>
    %113 = arith.addf %108, %112 : vector<128x64xf32>
    %114 = vector.extract_strided_slice %102 {offsets = [256, 0], sizes = [128, 64], strides = [1, 1]} : vector<1152x64xbf16> to vector<128x64xbf16>
    %c2_75 = arith.constant 2 : index
    %c0_76 = arith.constant 0 : index
    %c0_77 = arith.constant 0 : index
    %115 = vector.load %arg8[%c2_75, %c0_76, %c0_77] : memref<9x64x64xbf16, #tpu.memory_space<vmem>>, vector<1x64x64xbf16>
    %116 = vector.shape_cast %115 : vector<1x64x64xbf16> to vector<64x64xbf16>
    %cst_78 = arith.constant dense<0.000000e+00> : vector<128x64xf32>
    %117 = tpu.matmul %114, %116, %cst_78 {dimension_numbers = #tpu.dot_dimension_numbers<[1], [0], [0], [1], [0, 0, 1, 1], [], []>} : vector<128x64xbf16>, vector<64x64xbf16>, vector<128x64xf32> -> vector<128x64xf32>
    %118 = arith.addf %113, %117 : vector<128x64xf32>
    %119 = vector.extract_strided_slice %102 {offsets = [384, 0], sizes = [128, 64], strides = [1, 1]} : vector<1152x64xbf16> to vector<128x64xbf16>
    %c3_79 = arith.constant 3 : index
    %c0_80 = arith.constant 0 : index
    %c0_81 = arith.constant 0 : index
    %120 = vector.load %arg8[%c3_79, %c0_80, %c0_81] : memref<9x64x64xbf16, #tpu.memory_space<vmem>>, vector<1x64x64xbf16>
    %121 = vector.shape_cast %120 : vector<1x64x64xbf16> to vector<64x64xbf16>
    %cst_82 = arith.constant dense<0.000000e+00> : vector<128x64xf32>
    %122 = tpu.matmul %119, %121, %cst_82 {dimension_numbers = #tpu.dot_dimension_numbers<[1], [0], [0], [1], [0, 0, 1, 1], [], []>} : vector<128x64xbf16>, vector<64x64xbf16>, vector<128x64xf32> -> vector<128x64xf32>
    %123 = arith.addf %118, %122 : vector<128x64xf32>
    %124 = vector.extract_strided_slice %102 {offsets = [512, 0], sizes = [128, 64], strides = [1, 1]} : vector<1152x64xbf16> to vector<128x64xbf16>
    %c4_83 = arith.constant 4 : index
    %c0_84 = arith.constant 0 : index
    %c0_85 = arith.constant 0 : index
    %125 = vector.load %arg8[%c4_83, %c0_84, %c0_85] : memref<9x64x64xbf16, #tpu.memory_space<vmem>>, vector<1x64x64xbf16>
    %126 = vector.shape_cast %125 : vector<1x64x64xbf16> to vector<64x64xbf16>
    %cst_86 = arith.constant dense<0.000000e+00> : vector<128x64xf32>
    %127 = tpu.matmul %124, %126, %cst_86 {dimension_numbers = #tpu.dot_dimension_numbers<[1], [0], [0], [1], [0, 0, 1, 1], [], []>} : vector<128x64xbf16>, vector<64x64xbf16>, vector<128x64xf32> -> vector<128x64xf32>
    %128 = arith.addf %123, %127 : vector<128x64xf32>
    %129 = vector.extract_strided_slice %102 {offsets = [640, 0], sizes = [128, 64], strides = [1, 1]} : vector<1152x64xbf16> to vector<128x64xbf16>
    %c5_87 = arith.constant 5 : index
    %c0_88 = arith.constant 0 : index
    %c0_89 = arith.constant 0 : index
    %130 = vector.load %arg8[%c5_87, %c0_88, %c0_89] : memref<9x64x64xbf16, #tpu.memory_space<vmem>>, vector<1x64x64xbf16>
    %131 = vector.shape_cast %130 : vector<1x64x64xbf16> to vector<64x64xbf16>
    %cst_90 = arith.constant dense<0.000000e+00> : vector<128x64xf32>
    %132 = tpu.matmul %129, %131, %cst_90 {dimension_numbers = #tpu.dot_dimension_numbers<[1], [0], [0], [1], [0, 0, 1, 1], [], []>} : vector<128x64xbf16>, vector<64x64xbf16>, vector<128x64xf32> -> vector<128x64xf32>
    %133 = arith.addf %128, %132 : vector<128x64xf32>
    %134 = vector.extract_strided_slice %102 {offsets = [768, 0], sizes = [128, 64], strides = [1, 1]} : vector<1152x64xbf16> to vector<128x64xbf16>
    %c6_91 = arith.constant 6 : index
    %c0_92 = arith.constant 0 : index
    %c0_93 = arith.constant 0 : index
    %135 = vector.load %arg8[%c6_91, %c0_92, %c0_93] : memref<9x64x64xbf16, #tpu.memory_space<vmem>>, vector<1x64x64xbf16>
    %136 = vector.shape_cast %135 : vector<1x64x64xbf16> to vector<64x64xbf16>
    %cst_94 = arith.constant dense<0.000000e+00> : vector<128x64xf32>
    %137 = tpu.matmul %134, %136, %cst_94 {dimension_numbers = #tpu.dot_dimension_numbers<[1], [0], [0], [1], [0, 0, 1, 1], [], []>} : vector<128x64xbf16>, vector<64x64xbf16>, vector<128x64xf32> -> vector<128x64xf32>
    %138 = arith.addf %133, %137 : vector<128x64xf32>
    %139 = vector.extract_strided_slice %102 {offsets = [896, 0], sizes = [128, 64], strides = [1, 1]} : vector<1152x64xbf16> to vector<128x64xbf16>
    %c7_95 = arith.constant 7 : index
    %c0_96 = arith.constant 0 : index
    %c0_97 = arith.constant 0 : index
    %140 = vector.load %arg8[%c7_95, %c0_96, %c0_97] : memref<9x64x64xbf16, #tpu.memory_space<vmem>>, vector<1x64x64xbf16>
    %141 = vector.shape_cast %140 : vector<1x64x64xbf16> to vector<64x64xbf16>
    %cst_98 = arith.constant dense<0.000000e+00> : vector<128x64xf32>
    %142 = tpu.matmul %139, %141, %cst_98 {dimension_numbers = #tpu.dot_dimension_numbers<[1], [0], [0], [1], [0, 0, 1, 1], [], []>} : vector<128x64xbf16>, vector<64x64xbf16>, vector<128x64xf32> -> vector<128x64xf32>
    %143 = arith.addf %138, %142 : vector<128x64xf32>
    %144 = vector.extract_strided_slice %102 {offsets = [1024, 0], sizes = [128, 64], strides = [1, 1]} : vector<1152x64xbf16> to vector<128x64xbf16>
    %c8_99 = arith.constant 8 : index
    %c0_100 = arith.constant 0 : index
    %c0_101 = arith.constant 0 : index
    %145 = vector.load %arg8[%c8_99, %c0_100, %c0_101] : memref<9x64x64xbf16, #tpu.memory_space<vmem>>, vector<1x64x64xbf16>
    %146 = vector.shape_cast %145 : vector<1x64x64xbf16> to vector<64x64xbf16>
    %cst_102 = arith.constant dense<0.000000e+00> : vector<128x64xf32>
    %147 = tpu.matmul %144, %146, %cst_102 {dimension_numbers = #tpu.dot_dimension_numbers<[1], [0], [0], [1], [0, 0, 1, 1], [], []>} : vector<128x64xbf16>, vector<64x64xbf16>, vector<128x64xf32> -> vector<128x64xf32>
    %148 = arith.addf %143, %147 : vector<128x64xf32>
    %c0_103 = arith.constant 0 : index
    %c0_104 = arith.constant 0 : index
    %149 = vector.load %arg9[%c0_103, %c0_104] : memref<1x64xf32, #tpu.memory_space<vmem>>, vector<1x64xf32>
    %150 = vector.broadcast %149 : vector<1x64xf32> to vector<128x64xf32>
    %151 = arith.addf %148, %150 : vector<128x64xf32>
    %cst_105 = arith.constant 0.000000e+00 : f32
    %152 = vector.broadcast %cst_105 : f32 to vector<128x64xf32>
    %153 = arith.maximumf %151, %152 : vector<128x64xf32>
    %154 = arith.truncf %153 : vector<128x64xf32> to vector<128x64xbf16>
    %c0_106 = arith.constant 0 : index
    %c0_107 = arith.constant 0 : index
    %c0_108 = arith.constant 0 : index
    %155 = vector.load %arg10[%c0_106, %c0_107, %c0_108] : memref<1x128x64xbf16, #tpu.memory_space<vmem>>, vector<1x128x64xbf16>
    %156 = vector.shape_cast %155 : vector<1x128x64xbf16> to vector<128x64xbf16>
    %157 = vector.shape_cast %154 : vector<128x64xbf16> to vector<1x128x64xbf16>
    tpu.vector_store %arg10[%c0_106, %c0_107, %c0_108], %157 {strides = array<i32>} : memref<1x128x64xbf16, #tpu.memory_space<vmem>>, vector<1x128x64xbf16>,
    return
  }
  func.func @transform_0(%arg0: i32) -> (i32, i32, i32) {
    %c0_i32 = arith.constant 0 : i32
    %c0_i32_0 = arith.constant 0 : i32
    %c0_i32_1 = arith.constant 0 : i32
    return %arg0, %c0_i32, %c0_i32_0 : i32, i32, i32
  }
  func.func @transform_1(%arg0: i32) -> (i32, i32) {
    %c0_i32 = arith.constant 0 : i32
    %c0_i32_0 = arith.constant 0 : i32
    %c0_i32_1 = arith.constant 0 : i32
    return %c0_i32, %c0_i32_0 : i32, i32
  }
  func.func @transform_2(%arg0: i32) -> (i32, i32) {
    %c0_i32 = arith.constant 0 : i32
    %c0_i32_0 = arith.constant 0 : i32
    %c0_i32_1 = arith.constant 0 : i32
    return %c0_i32, %c0_i32_0 : i32, i32
  }
  func.func @transform_3(%arg0: i32) -> (i32, i32) {
    %c0_i32 = arith.constant 0 : i32
    %c0_i32_0 = arith.constant 0 : i32
    %c0_i32_1 = arith.constant 0 : i32
    return %c0_i32, %c0_i32_0 : i32, i32
  }
  func.func @transform_4(%arg0: i32) -> (i32, i32, i32) {
    %c0_i32 = arith.constant 0 : i32
    %c0_i32_0 = arith.constant 0 : i32
    %c0_i32_1 = arith.constant 0 : i32
    %c0_i32_2 = arith.constant 0 : i32
    return %c0_i32, %c0_i32_0, %c0_i32_1 : i32, i32, i32
  }
  func.func @transform_5(%arg0: i32) -> (i32, i32) {
    %c0_i32 = arith.constant 0 : i32
    %c0_i32_0 = arith.constant 0 : i32
    %c0_i32_1 = arith.constant 0 : i32
    return %c0_i32, %c0_i32_0 : i32, i32
  }
  func.func @transform_6(%arg0: i32) -> (i32, i32) {
    %c0_i32 = arith.constant 0 : i32
    %c0_i32_0 = arith.constant 0 : i32
    %c0_i32_1 = arith.constant 0 : i32
    return %c0_i32, %c0_i32_0 : i32, i32
  }
  func.func @transform_7(%arg0: i32) -> (i32, i32, i32) {
    %c0_i32 = arith.constant 0 : i32
    %c0_i32_0 = arith.constant 0 : i32
    %c0_i32_1 = arith.constant 0 : i32
    %c0_i32_2 = arith.constant 0 : i32
    return %c0_i32, %c0_i32_0, %c0_i32_1 : i32, i32, i32
  }
  func.func @transform_8(%arg0: i32) -> (i32, i32) {
    %c0_i32 = arith.constant 0 : i32
    %c0_i32_0 = arith.constant 0 : i32
    %c0_i32_1 = arith.constant 0 : i32
    return %c0_i32, %c0_i32_0 : i32, i32
  }
  func.func @transform_9(%arg0: i32) -> (i32, i32, i32) {
    %c0_i32 = arith.constant 0 : i32
    %c0_i32_0 = arith.constant 0 : i32
    %c0_i32_1 = arith.constant 0 : i32
    return %arg0, %c0_i32, %c0_i32_0 : i32, i32, i32
  }
}

module attributes {stable_mosaic.version = 11 : i64} {
  func.func @_head_kernel(%arg0: i32, %arg1: memref<2x2048xbf16, #tpu.memory_space<vmem>>, %arg2: memref<2x5xf32, #tpu.memory_space<vmem>>, %arg3: memref<2048x256xbf16, #tpu.memory_space<vmem>>, %arg4: memref<5x256xf32, #tpu.memory_space<vmem>>, %arg5: memref<1x256xf32, #tpu.memory_space<vmem>>, %arg6: memref<128x32xbf16, #tpu.memory_space<vmem>>, %arg7: memref<1x32xf32, #tpu.memory_space<vmem>>, %arg8: memref<128x32xbf16, #tpu.memory_space<vmem>>, %arg9: memref<1x32xf32, #tpu.memory_space<vmem>>, %arg10: memref<32x17xbf16, #tpu.memory_space<vmem>>, %arg11: memref<1x17xf32, #tpu.memory_space<vmem>>, %arg12: memref<32x1xbf16, #tpu.memory_space<vmem>>, %arg13: memref<1x1xf32, #tpu.memory_space<vmem>>, %arg14: memref<2x17xf32, #tpu.memory_space<vmem>>, %arg15: memref<1x1xf32, #tpu.memory_space<vmem>>, %arg16: memref<2x256xf32, #tpu.memory_space<vmem>>) attributes {dimension_semantics = [#tpu.dimension_semantics<arbitrary>], iteration_bounds = array<i64: 4>, scalar_prefetch = 0 : i64, scratch_operands = 1 : i64, tpu.core_type = #tpu.core_type<tc>, window_params = [{transform_indices = @transform_0, window_bounds = array<i64: 2, 2048>}, {pipeline_mode = #tpu.pipeline_mode<synchronous>, transform_indices = @transform_1, window_bounds = array<i64: 2, 5>}, {transform_indices = @transform_2, window_bounds = array<i64: 2048, 256>}, {pipeline_mode = #tpu.pipeline_mode<synchronous>, transform_indices = @transform_3, window_bounds = array<i64: 5, 256>}, {pipeline_mode = #tpu.pipeline_mode<synchronous>, transform_indices = @transform_4, window_bounds = array<i64: 1, 256>}, {pipeline_mode = #tpu.pipeline_mode<synchronous>, transform_indices = @transform_5, window_bounds = array<i64: 128, 32>}, {pipeline_mode = #tpu.pipeline_mode<synchronous>, transform_indices = @transform_6, window_bounds = array<i64: 1, 32>}, {pipeline_mode = #tpu.pipeline_mode<synchronous>, transform_indices = @transform_7, window_bounds = array<i64: 128, 32>}, {pipeline_mode = #tpu.pipeline_mode<synchronous>, transform_indices = @transform_8, window_bounds = array<i64: 1, 32>}, {pipeline_mode = #tpu.pipeline_mode<synchronous>, transform_indices = @transform_9, window_bounds = array<i64: 32, 17>}, {pipeline_mode = #tpu.pipeline_mode<synchronous>, transform_indices = @transform_10, window_bounds = array<i64: 1, 17>}, {pipeline_mode = #tpu.pipeline_mode<synchronous>, transform_indices = @transform_11, window_bounds = array<i64: 32, 1>}, {pipeline_mode = #tpu.pipeline_mode<synchronous>, transform_indices = @transform_12, window_bounds = array<i64: 1, 1>}, {pipeline_mode = #tpu.pipeline_mode<synchronous>, transform_indices = @transform_13, window_bounds = array<i64: 2, 17>}, {pipeline_mode = #tpu.pipeline_mode<synchronous>, transform_indices = @transform_14, window_bounds = array<i64: 1, 1>}]} {
    %c0_i32 = arith.constant 0 : i32
    %0 = arith.cmpi eq, %arg0, %c0_i32 : i32
    %1 = arith.extui %0 : i1 to i32
    %c0_i32_0 = arith.constant 0 : i32
    %2 = arith.cmpi ne, %1, %c0_i32_0 : i32
    scf.if %2 {
      %c0_9 = arith.constant 0 : index
      %c0_10 = arith.constant 0 : index
      %12 = vector.load %arg2[%c0_9, %c0_10] : memref<2x5xf32, #tpu.memory_space<vmem>>, vector<2x5xf32>
      %c0_11 = arith.constant 0 : index
      %c0_12 = arith.constant 0 : index
      %13 = vector.load %arg4[%c0_11, %c0_12] : memref<5x256xf32, #tpu.memory_space<vmem>>, vector<5x256xf32>
      %cst_13 = arith.constant dense<0.000000e+00> : vector<2x256xf32>
      %14 = tpu.matmul %12, %13, %cst_13 {dimension_numbers = #tpu.dot_dimension_numbers<[1], [0], [0], [1], [0, 0, 1, 1], [], []>} : vector<2x5xf32>, vector<5x256xf32>, vector<2x256xf32> -> vector<2x256xf32>
      %c0_14 = arith.constant 0 : index
      %c0_15 = arith.constant 0 : index
      %15 = vector.load %arg5[%c0_14, %c0_15] : memref<1x256xf32, #tpu.memory_space<vmem>>, vector<1x256xf32>
      %16 = vector.broadcast %15 : vector<1x256xf32> to vector<2x256xf32>
      %17 = arith.addf %14, %16 : vector<2x256xf32>
      %c0_16 = arith.constant 0 : index
      %c0_17 = arith.constant 0 : index
      %18 = vector.load %arg16[%c0_16, %c0_17] : memref<2x256xf32, #tpu.memory_space<vmem>>, vector<2x256xf32>
      tpu.vector_store %arg16[%c0_16, %c0_17], %17 {strides = array<i32>} : memref<2x256xf32, #tpu.memory_space<vmem>>, vector<2x256xf32>,
    } else {
    }
    %c0 = arith.constant 0 : index
    %c0_1 = arith.constant 0 : index
    %3 = vector.load %arg16[%c0, %c0_1] : memref<2x256xf32, #tpu.memory_space<vmem>>, vector<2x256xf32>
    %c0_2 = arith.constant 0 : index
    %c0_3 = arith.constant 0 : index
    %4 = vector.load %arg1[%c0_2, %c0_3] : memref<2x2048xbf16, #tpu.memory_space<vmem>>, vector<2x2048xbf16>
    %c0_4 = arith.constant 0 : index
    %c0_5 = arith.constant 0 : index
    %5 = vector.load %arg3[%c0_4, %c0_5] : memref<2048x256xbf16, #tpu.memory_space<vmem>>, vector<2048x256xbf16>
    %cst = arith.constant dense<0.000000e+00> : vector<2x256xf32>
    %6 = tpu.matmul %4, %5, %cst {dimension_numbers = #tpu.dot_dimension_numbers<[1], [0], [0], [1], [0, 0, 1, 1], [], []>} : vector<2x2048xbf16>, vector<2048x256xbf16>, vector<2x256xf32> -> vector<2x256xf32>
    %7 = arith.addf %3, %6 : vector<2x256xf32>
    %c0_6 = arith.constant 0 : index
    %c0_7 = arith.constant 0 : index
    %8 = vector.load %arg16[%c0_6, %c0_7] : memref<2x256xf32, #tpu.memory_space<vmem>>, vector<2x256xf32>
    tpu.vector_store %arg16[%c0_6, %c0_7], %7 {strides = array<i32>} : memref<2x256xf32, #tpu.memory_space<vmem>>, vector<2x256xf32>,
    %c3_i32 = arith.constant 3 : i32
    %9 = arith.cmpi eq, %arg0, %c3_i32 : i32
    %10 = arith.extui %9 : i1 to i32
    %c0_i32_8 = arith.constant 0 : i32
    %11 = arith.cmpi ne, %10, %c0_i32_8 : i32
    scf.if %11 {
      %c0_9 = arith.constant 0 : index
      %c0_10 = arith.constant 0 : index
      %12 = vector.load %arg16[%c0_9, %c0_10] : memref<2x256xf32, #tpu.memory_space<vmem>>, vector<2x256xf32>
      %cst_11 = arith.constant 0.000000e+00 : f32
      %13 = vector.broadcast %cst_11 : f32 to vector<2x256xf32>
      %14 = arith.maximumf %12, %13 : vector<2x256xf32>
      %15 = arith.truncf %14 : vector<2x256xf32> to vector<2x256xbf16>
      %16 = vector.extract_strided_slice %15 {offsets = [0, 0], sizes = [2, 128], strides = [1, 1]} : vector<2x256xbf16> to vector<2x128xbf16>
      %17 = vector.extract_strided_slice %15 {offsets = [0, 128], sizes = [2, 128], strides = [1, 1]} : vector<2x256xbf16> to vector<2x128xbf16>
      %c0_12 = arith.constant 0 : index
      %c0_13 = arith.constant 0 : index
      %18 = vector.load %arg6[%c0_12, %c0_13] : memref<128x32xbf16, #tpu.memory_space<vmem>>, vector<128x32xbf16>
      %cst_14 = arith.constant dense<0.000000e+00> : vector<2x32xf32>
      %19 = tpu.matmul %16, %18, %cst_14 {dimension_numbers = #tpu.dot_dimension_numbers<[1], [0], [0], [1], [0, 0, 1, 1], [], []>} : vector<2x128xbf16>, vector<128x32xbf16>, vector<2x32xf32> -> vector<2x32xf32>
      %c0_15 = arith.constant 0 : index
      %c0_16 = arith.constant 0 : index
      %20 = vector.load %arg7[%c0_15, %c0_16] : memref<1x32xf32, #tpu.memory_space<vmem>>, vector<1x32xf32>
      %21 = vector.broadcast %20 : vector<1x32xf32> to vector<2x32xf32>
      %22 = arith.addf %19, %21 : vector<2x32xf32>
      %cst_17 = arith.constant 0.000000e+00 : f32
      %23 = vector.broadcast %cst_17 : f32 to vector<2x32xf32>
      %24 = arith.maximumf %22, %23 : vector<2x32xf32>
      %25 = arith.truncf %24 : vector<2x32xf32> to vector<2x32xbf16>
      %c0_18 = arith.constant 0 : index
      %c0_19 = arith.constant 0 : index
      %26 = vector.load %arg8[%c0_18, %c0_19] : memref<128x32xbf16, #tpu.memory_space<vmem>>, vector<128x32xbf16>
      %cst_20 = arith.constant dense<0.000000e+00> : vector<2x32xf32>
      %27 = tpu.matmul %17, %26, %cst_20 {dimension_numbers = #tpu.dot_dimension_numbers<[1], [0], [0], [1], [0, 0, 1, 1], [], []>} : vector<2x128xbf16>, vector<128x32xbf16>, vector<2x32xf32> -> vector<2x32xf32>
      %c0_21 = arith.constant 0 : index
      %c0_22 = arith.constant 0 : index
      %28 = vector.load %arg9[%c0_21, %c0_22] : memref<1x32xf32, #tpu.memory_space<vmem>>, vector<1x32xf32>
      %29 = vector.broadcast %28 : vector<1x32xf32> to vector<2x32xf32>
      %30 = arith.addf %27, %29 : vector<2x32xf32>
      %cst_23 = arith.constant 0.000000e+00 : f32
      %31 = vector.broadcast %cst_23 : f32 to vector<2x32xf32>
      %32 = arith.maximumf %30, %31 : vector<2x32xf32>
      %33 = arith.truncf %32 : vector<2x32xf32> to vector<2x32xbf16>
      %c0_24 = arith.constant 0 : index
      %c0_25 = arith.constant 0 : index
      %34 = vector.load %arg10[%c0_24, %c0_25] : memref<32x17xbf16, #tpu.memory_space<vmem>>, vector<32x17xbf16>
      %cst_26 = arith.constant dense<0.000000e+00> : vector<2x17xf32>
      %35 = tpu.matmul %25, %34, %cst_26 {dimension_numbers = #tpu.dot_dimension_numbers<[1], [0], [0], [1], [0, 0, 1, 1], [], []>} : vector<2x32xbf16>, vector<32x17xbf16>, vector<2x17xf32> -> vector<2x17xf32>
      %c0_27 = arith.constant 0 : index
      %c0_28 = arith.constant 0 : index
      %36 = vector.load %arg11[%c0_27, %c0_28] : memref<1x17xf32, #tpu.memory_space<vmem>>, vector<1x17xf32>
      %37 = vector.broadcast %36 : vector<1x17xf32> to vector<2x17xf32>
      %38 = arith.addf %35, %37 : vector<2x17xf32>
      %c0_29 = arith.constant 0 : index
      %c0_30 = arith.constant 0 : index
      %39 = vector.load %arg12[%c0_29, %c0_30] : memref<32x1xbf16, #tpu.memory_space<vmem>>, vector<32x1xbf16>
      %cst_31 = arith.constant dense<0.000000e+00> : vector<2x1xf32>
      %40 = tpu.matmul %33, %39, %cst_31 {dimension_numbers = #tpu.dot_dimension_numbers<[1], [0], [0], [1], [0, 0, 1, 1], [], []>} : vector<2x32xbf16>, vector<32x1xbf16>, vector<2x1xf32> -> vector<2x1xf32>
      %c0_32 = arith.constant 0 : index
      %c0_33 = arith.constant 0 : index
      %41 = vector.load %arg13[%c0_32, %c0_33] : memref<1x1xf32, #tpu.memory_space<vmem>>, vector<1x1xf32>
      %42 = vector.broadcast %41 : vector<1x1xf32> to vector<2x1xf32>
      %43 = arith.addf %40, %42 : vector<2x1xf32>
      %44 = vector.shape_cast %38 : vector<2x17xf32> to vector<1x2x17xf32>
      %cst_34 = arith.constant dense<0.000000e+00> : vector<1xf32>
      %45 = vector.multi_reduction <add>, %44, %cst_34 [1, 2] : vector<1x2x17xf32> to vector<1xf32>
      %46 = vector.shape_cast %45 : vector<1xf32> to vector<1x1x1xf32>
      %47 = vector.extract %46[0, 0, 0] : f32 from vector<1x1x1xf32>
      %cst_35 = arith.constant 0.0294117648 : f32
      %48 = arith.mulf %47, %cst_35 : f32
      %49 = vector.broadcast %43 : vector<2x1xf32> to vector<2x17xf32>
      %50 = arith.addf %49, %38 : vector<2x17xf32>
      %51 = vector.broadcast %48 : f32 to vector<2x17xf32>
      %52 = arith.subf %50, %51 : vector<2x17xf32>
      %c0_36 = arith.constant 0 : index
      %c0_37 = arith.constant 0 : index
      %53 = vector.load %arg14[%c0_36, %c0_37] : memref<2x17xf32, #tpu.memory_space<vmem>>, vector<2x17xf32>
      tpu.vector_store %arg14[%c0_36, %c0_37], %52 {strides = array<i32>} : memref<2x17xf32, #tpu.memory_space<vmem>>, vector<2x17xf32>,
      %cst_38 = arith.constant dense<0xFF800000> : vector<2xf32>
      %54 = vector.multi_reduction <maximumf>, %52, %cst_38 [1] : vector<2x17xf32> to vector<2xf32>
      %55 = vector.shape_cast %54 : vector<2xf32> to vector<2x1xf32>
      %cst_39 = arith.constant dense<0xFF800000> : vector<1xf32>
      %56 = vector.multi_reduction <maximumf>, %55, %cst_39 [0] : vector<2x1xf32> to vector<1xf32>
      %57 = vector.shape_cast %56 : vector<1xf32> to vector<1x1xf32>
      %c0_40 = arith.constant 0 : index
      %c0_41 = arith.constant 0 : index
      %58 = vector.load %arg15[%c0_40, %c0_41] : memref<1x1xf32, #tpu.memory_space<vmem>>, vector<1x1xf32>
      tpu.vector_store %arg15[%c0_40, %c0_41], %57 {strides = array<i32>} : memref<1x1xf32, #tpu.memory_space<vmem>>, vector<1x1xf32>,
    } else {
    }
    return
  }
  func.func @transform_0(%arg0: i32) -> (i32, i32) {
    %c0_i32 = arith.constant 0 : i32
    %c0_i32_0 = arith.constant 0 : i32
    return %c0_i32, %arg0 : i32, i32
  }
  func.func @transform_1(%arg0: i32) -> (i32, i32) {
    %c0_i32 = arith.constant 0 : i32
    %c0_i32_0 = arith.constant 0 : i32
    %c0_i32_1 = arith.constant 0 : i32
    return %c0_i32, %c0_i32_0 : i32, i32
  }
  func.func @transform_2(%arg0: i32) -> (i32, i32) {
    %c0_i32 = arith.constant 0 : i32
    %c0_i32_0 = arith.constant 0 : i32
    return %arg0, %c0_i32 : i32, i32
  }
  func.func @transform_3(%arg0: i32) -> (i32, i32) {
    %c0_i32 = arith.constant 0 : i32
    %c0_i32_0 = arith.constant 0 : i32
    %c0_i32_1 = arith.constant 0 : i32
    return %c0_i32, %c0_i32_0 : i32, i32
  }
  func.func @transform_4(%arg0: i32) -> (i32, i32) {
    %c0_i32 = arith.constant 0 : i32
    %c0_i32_0 = arith.constant 0 : i32
    %c0_i32_1 = arith.constant 0 : i32
    return %c0_i32, %c0_i32_0 : i32, i32
  }
  func.func @transform_5(%arg0: i32) -> (i32, i32) {
    %c0_i32 = arith.constant 0 : i32
    %c0_i32_0 = arith.constant 0 : i32
    %c0_i32_1 = arith.constant 0 : i32
    return %c0_i32, %c0_i32_0 : i32, i32
  }
  func.func @transform_6(%arg0: i32) -> (i32, i32) {
    %c0_i32 = arith.constant 0 : i32
    %c0_i32_0 = arith.constant 0 : i32
    %c0_i32_1 = arith.constant 0 : i32
    return %c0_i32, %c0_i32_0 : i32, i32
  }
  func.func @transform_7(%arg0: i32) -> (i32, i32) {
    %c0_i32 = arith.constant 0 : i32
    %c0_i32_0 = arith.constant 0 : i32
    %c0_i32_1 = arith.constant 0 : i32
    return %c0_i32, %c0_i32_0 : i32, i32
  }
  func.func @transform_8(%arg0: i32) -> (i32, i32) {
    %c0_i32 = arith.constant 0 : i32
    %c0_i32_0 = arith.constant 0 : i32
    %c0_i32_1 = arith.constant 0 : i32
    return %c0_i32, %c0_i32_0 : i32, i32
  }
  func.func @transform_9(%arg0: i32) -> (i32, i32) {
    %c0_i32 = arith.constant 0 : i32
    %c0_i32_0 = arith.constant 0 : i32
    %c0_i32_1 = arith.constant 0 : i32
    return %c0_i32, %c0_i32_0 : i32, i32
  }
  func.func @transform_10(%arg0: i32) -> (i32, i32) {
    %c0_i32 = arith.constant 0 : i32
    %c0_i32_0 = arith.constant 0 : i32
    %c0_i32_1 = arith.constant 0 : i32
    return %c0_i32, %c0_i32_0 : i32, i32
  }
  func.func @transform_11(%arg0: i32) -> (i32, i32) {
    %c0_i32 = arith.constant 0 : i32
    %c0_i32_0 = arith.constant 0 : i32
    %c0_i32_1 = arith.constant 0 : i32
    return %c0_i32, %c0_i32_0 : i32, i32
  }
  func.func @transform_12(%arg0: i32) -> (i32, i32) {
    %c0_i32 = arith.constant 0 : i32
    %c0_i32_0 = arith.constant 0 : i32
    %c0_i32_1 = arith.constant 0 : i32
    return %c0_i32, %c0_i32_0 : i32, i32
  }
  func.func @transform_13(%arg0: i32) -> (i32, i32) {
    %c0_i32 = arith.constant 0 : i32
    %c0_i32_0 = arith.constant 0 : i32
    %c0_i32_1 = arith.constant 0 : i32
    return %c0_i32, %c0_i32_0 : i32, i32
  }
  func.func @transform_14(%arg0: i32) -> (i32, i32) {
    %c0_i32 = arith.constant 0 : i32
    %c0_i32_0 = arith.constant 0 : i32
    %c0_i32_1 = arith.constant 0 : i32
    return %c0_i32, %c0_i32_0 : i32, i32
  }
}

</mosaic_0001>

<bundles_post_ra>
// kernel: cnn_forward.3
= control target key start
LH: loop header
LB: loop body
LE: loop exit
PB: predicated region body
PF: predicated region fallthrough
CT: control target
= control target key end

     0   :  { %s4573_s0 = inlined_call_operand.vmem [shape: bf16[2,8192], index: 0, kind: input, shape index: {}]   ;;  %s4574_s1 = inlined_call_operand.vmem [shape: f32[2,5], index: 1, kind: input, shape index: {}]   ;;  %s4575_s2 = inlined_call_operand.vmem [shape: bf16[8192,256], index: 2, kind: input, shape index: {}]   ;;  %s4576_s3 = inlined_call_operand.vmem [shape: f32[5,256], index: 3, kind: input, shape index: {}]   ;;  %s4577_s4 = inlined_call_operand.vmem [shape: f32[1,256], index: 4, kind: input, shape index: {}]   ;;  %s4578_s5 = inlined_call_operand.vmem [shape: bf16[128,32], index: 5, kind: input, shape index: {}]   ;;  %s4579_s6 = inlined_call_operand.vmem [shape: f32[1,32], index: 6, kind: input, shape index: {}]   ;;  %s4580_s7 = inlined_call_operand.vmem [shape: bf16[128,32], index: 7, kind: input, shape index: {}]   ;;  %s4581_s8 = inlined_call_operand.vmem [shape: f32[1,32], index: 8, kind: input, shape index: {}]   ;;  %s4582_s9 = inlined_call_operand.vmem [shape: bf16[32,17], index: 9, kind: input, shape index: {}]   ;;  %s4583_s10 = inlined_call_operand.vmem [shape: f32[1,17], index: 10, kind: input, shape index: {}]   ;;  %s4584_s11 = inlined_call_operand.vmem [shape: bf16[32,1], index: 11, kind: input, shape index: {}]   ;;  %s4585_s12 = inlined_call_operand.<no memory space> [shape: f32[1,1], index: 12, kind: input, shape index: {}]   ;;  %s4586_s13 = inlined_call_operand.hbm [shape: f32[2,17], index: 13, kind: output, shape index: {0}]   ;;  %s4587_s14 = inlined_call_operand.hbm [shape: f32[1,1], index: 14, kind: output, shape index: {1}]  }
   0x1   :  { %v20_v0 = vstv %s4585_s12 }
   0x2   :  { %21 = vst [vmem:[#allocation3] sm:$0x1] %v20_v0 }
   0x3   :  { %22 = vsyncpa [#allocation5], 0 }
   0x4   :  { %23 = vsyncpa [#allocation7], 0  ;;  %s4078_s15 = smov 0  }
   0x5 LB: > { %s4084_s16 = sadd.s32 4294967295, %s3990_s15   ;;  %p3081_p0 = scmp.ge.s32.totalorder %s3990_s15, 1  ;;  %s3990_s15 = sphi %s4078_s15, %s29_s15  }
   0x6   : > { %p421_p1 = scmp.lt.s32.totalorder %s3990_s15, 5 }
   0x8   : > { %p422_p2 = pnand %p3081_p0, %p421_p1 }
   0x9   : > { %s3082_s12 = sshll.u32 (!%p422_p2), %s4084_s16, 4  ;;  %s3083_s17 = sshll.u32 (!%p422_p2), %s4084_s16, 8 }
   0xa   : > { %425 = sbr.rel (%p422_p2) target bundleno = 1579 (0x62b), region = 72  ;;  %p468_p3 = scmp.lt.s32.totalorder (!%p422_p2), %s3082_s12, 63 }
   0xb   : > { %p473_p4 = scmp.lt.s32.totalorder (!%p422_p2), %s3083_s17, 1023  ;;  %p3086_p5 = scmp.ne.s32.totalorder (!%p422_p2), %s4084_s16, 0 }
  0x11   : > { %s4589_s12 = smov (!%p468_p3, %s3082_s12), 63  ;;  %s4591_s17 = smov (!%p473_p4, %s3083_s17), 1023 }
  0x12   : > { %s4093_s20 = scalar_lea.vmem %s4573_s0, %s4589_s12  ;;  %s3380_s21 = sshll.u32 %s4591_s17, 3  ;;  %v486_v1 = vld [vmem:[%s4576_s3 + $0x8] sm:$0x1f] (!%p3086_p5)  ;;  %vm503_vm0 = vcmask (!%p3086_p5), 1044480   ;;  %v485_v2 = vld [vmem:[%s4576_s3] sm:$0x1f] (!%p3086_p5)  ;;  %v489_v5 = vlaneseq (!%p3086_p5) }
  0x13   : > { %s4098_s24 = scalar_lea.vmem %s4575_s2, %s3380_s21  ;;  %483 = sbr.rel (%p3086_p5) target bundleno = 239 (0xef), region = 76  ;;  %3087 = vmatprep.subr.msk.mxu0 (!%p3086_p5), %vm503_vm0, %v486_v1  ;;  %v3992_v3 = vmov (!%p3086_p5), 0.0   ;;  %v484_v4 = vld [vmem:[%s4574_s1] sm:$0x3] (!%p3086_p5)  ;;  %vm499_vm1 = vcmask (!%p3086_p5), 39936  }
  0x14   : > { %574 = vmatprep.mubr.f32.mxu0 (!%p3086_p5), %v3992_v3  ;;  %3088 = vmatpush1.msk.msra.mxu0 (!%p3086_p5), %vm503_vm0, %v485_v2  ;;  %v490_v6 = vshrl.u32 (!%p3086_p5), %v489_v5, 7  ;;  %v487_v8 = vld [vmem:[%s4577_s4] sm:$0x3] (!%p3086_p5) }
  0x15   : > { %3089 = vmatmul.mubr.msk.f32.vlgmr.msra.gmra.mrb[0].mxu0 (!%p3086_p5), %vm499_vm1, %v484_v4 }
  0x16   : > { %v491_v7 = vsub.s32 (!%p3086_p5), 0, %v490_v6  ;;  %v495_v9 = vsub.s32 (!%p3086_p5), 1, %v490_v6 }
  0x18   : > { %v492_v10 = vrot.slane (!%p3086_p5), %v487_v8, %v491_v7  ;;  %v496_v11 = vrot.slane (!%p3086_p5), %v487_v8, %v495_v9 }
  0xe8   : > { %v576_v12 = vpop.f32.mrb[0].mxu0 }
  0xe9   : > { %v577_v13 = vadd.f32 %v576_v12, %v492_v10  ;;  %v578_v14 = vpop.f32.mrb[1].mxu0 }
  0xea   : > { %v579_v15 = vadd.f32 %v578_v14, %v496_v11 }
  0xec   : > { %v583_v16 = vcombine.low %v577_v13, %v579_v15 }
  0xee   : > { %3090 = vst.sshfl [vmem:[#allocation2] sm:$0x33 pattern:$0x76325410] %v583_v16 }
  0xef PF: > { %v3517_v17 = vld [vmem:[%s4098_s24 + $0x4] ss:$8 sps:$4 sm:$0xff]   ;;  %v3521_v19 = vld [vmem:[%s4098_s24] ss:$8 sps:$4 sm:$0xff]   ;;  %v3523_v21 = vld [vmem:[%s4098_s24 + $0x14] ss:$8 sps:$4 sm:$0xff]   ;;  %v858_v55 = vlaneseq }
  0xf0   : > { %v3519_v18 = vld [vmem:[%s4098_s24 + $0x404] ss:$8 sps:$4 sm:$0xff]   ;;  %2248 = vmatprep.subr.bf16.mxu1 %v3517_v17  ;;  %v3522_v20 = vld [vmem:[%s4098_s24 + $0x400] ss:$8 sps:$4 sm:$0xff]   ;;  %v3525_v22 = vld [vmem:[%s4098_s24 + $0x414] ss:$8 sps:$4 sm:$0xff]  }
  0xf1   : > { %2412 = vmatprep.subr.bf16.mxu0 %v3519_v18  ;;  %2249 = vmatpush1.bf16.msra.mxu1 %v3521_v19  ;;  %v3527_v23 = vld [vmem:[%s4098_s24 + $0x10] ss:$8 sps:$4 sm:$0xff]   ;;  %v3529_v25 = vld [vmem:[%s4098_s24 + $0x24] ss:$8 sps:$4 sm:$0xff]   ;;  %v3533_v27 = vld [vmem:[%s4098_s24 + $0x20] ss:$8 sps:$4 sm:$0xff]  }
  0xf2   : > { %2413 = vmatpush1.bf16.msra.mxu0 %v3522_v20  ;;  %2250 = vmatprep.subr.bf16.mxu1 %v3523_v21  ;;  %v3528_v24 = vld [vmem:[%s4098_s24 + $0x410] ss:$8 sps:$4 sm:$0xff]   ;;  %v3531_v26 = vld [vmem:[%s4098_s24 + $0x424] ss:$8 sps:$4 sm:$0xff]   ;;  %v3534_v28 = vld [vmem:[%s4098_s24 + $0x420] ss:$8 sps:$4 sm:$0xff]  }
  0xf3   : > { %2414 = vmatprep.subr.bf16.mxu0 %v3525_v22  ;;  %v3535_v29 = vld [vmem:[%s4098_s24 + $0x34] ss:$8 sps:$4 sm:$0xff]   ;;  %v3539_v31 = vld [vmem:[%s4098_s24 + $0x30] ss:$8 sps:$4 sm:$0xff]   ;;  %v3541_v33 = vld [vmem:[%s4098_s24 + $0x44] ss:$8 sps:$4 sm:$0xff]  }
  0xf4   : > { %v3537_v30 = vld [vmem:[%s4098_s24 + $0x434] ss:$8 sps:$4 sm:$0xff]   ;;  %v3540_v32 = vld [vmem:[%s4098_s24 + $0x430] ss:$8 sps:$4 sm:$0xff]   ;;  %v3543_v34 = vld [vmem:[%s4098_s24 + $0x444] ss:$8 sps:$4 sm:$0xff]  }
  0xf5   : > { %2251 = vmatpush1.bf16.msra.mxu1 %v3527_v23  ;;  %v3545_v35 = vld [vmem:[%s4098_s24 + $0x40] ss:$8 sps:$4 sm:$0xff]   ;;  %v3547_v37 = vld [vmem:[%s4098_s24 + $0x54] ss:$8 sps:$4 sm:$0xff]   ;;  %v3551_v39 = vld [vmem:[%s4098_s24 + $0x50] ss:$8 sps:$4 sm:$0xff]  }
  0xf6   : > { %2415 = vmatpush1.bf16.msra.mxu0 %v3528_v24  ;;  %2252 = vmatprep.subr.bf16.mxu1 %v3529_v25  ;;  %v3546_v36 = vld [vmem:[%s4098_s24 + $0x440] ss:$8 sps:$4 sm:$0xff]   ;;  %v3549_v38 = vld [vmem:[%s4098_s24 + $0x454] ss:$8 sps:$4 sm:$0xff]   ;;  %v3552_v40 = vld [vmem:[%s4098_s24 + $0x450] ss:$8 sps:$4 sm:$0xff]  }
  0xf7   : > { %2416 = vmatprep.subr.bf16.mxu0 %v3531_v26  ;;  %v3553_v41 = vld [vmem:[%s4098_s24 + $0x64] ss:$8 sps:$4 sm:$0xff]   ;;  %v3557_v43 = vld [vmem:[%s4098_s24 + $0x60] ss:$8 sps:$4 sm:$0xff]   ;;  %v3559_v45 = vld [vmem:[%s4098_s24 + $0x74] ss:$8 sps:$4 sm:$0xff]  }
  0xf8   : > { %v3555_v42 = vld [vmem:[%s4098_s24 + $0x464] ss:$8 sps:$4 sm:$0xff]   ;;  %v3558_v44 = vld [vmem:[%s4098_s24 + $0x460] ss:$8 sps:$4 sm:$0xff]   ;;  %v3561_v46 = vld [vmem:[%s4098_s24 + $0x474] ss:$8 sps:$4 sm:$0xff]  }
  0xf9   : > { %2253 = vmatpush1.bf16.msra.mxu1 %v3533_v27  ;;  %v3563_v47 = vld [vmem:[%s4098_s24 + $0x70] ss:$8 sps:$4 sm:$0xff]   ;;  %v3565_v49 = vld [vmem:[%s4098_s24 + $0x84] ss:$8 sps:$4 sm:$0xff]   ;;  %v3569_v51 = vld [vmem:[%s4098_s24 + $0x80] ss:$8 sps:$4 sm:$0xff]  }
  0xfa   : > { %2417 = vmatpush1.bf16.msra.mxu0 %v3534_v28  ;;  %2254 = vmatprep.subr.bf16.mxu1 %v3535_v29  ;;  %v3564_v48 = vld [vmem:[%s4098_s24 + $0x470] ss:$8 sps:$4 sm:$0xff]   ;;  %v3567_v50 = vld [vmem:[%s4098_s24 + $0x484] ss:$8 sps:$4 sm:$0xff]   ;;  %v3570_v52 = vld [vmem:[%s4098_s24 + $0x480] ss:$8 sps:$4 sm:$0xff]  }
  0xfb   : > { %2418 = vmatprep.subr.bf16.mxu0 %v3537_v30  ;;  %v3993_v53 = vmov 1966171168   ;;  %v3571_v56 = vld [vmem:[%s4098_s24 + $0x94] ss:$8 sps:$4 sm:$0xff]   ;;  %v3575_v58 = vld [vmem:[%s4098_s24 + $0x90] ss:$8 sps:$4 sm:$0xff]  }
  0xfc   : > { %v856_v54 = vunpack.c.l.s4 %v3993_v53  ;;  %v3573_v57 = vld [vmem:[%s4098_s24 + $0x494] ss:$8 sps:$4 sm:$0xff]   ;;  %v4152_v60 = vshrl.u32 %v858_v55, 7  ;;  %v3576_v61 = vld [vmem:[%s4098_s24 + $0x490] ss:$8 sps:$4 sm:$0xff]   ;;  %v594_v5 = vld [vmem:[%s4093_s20] sm:$0xff] }
  0xfd   : > { %2255 = vmatpush1.bf16.msra.mxu1 %v3539_v31  ;;  %v3577_v62 = vld [vmem:[%s4098_s24 + $0xa4] ss:$8 sps:$4 sm:$0xff]   ;;  %v3581_v0 = vld [vmem:[%s4098_s24 + $0xa0] ss:$8 sps:$4 sm:$0xff]   ;;  %v3583_v3 = vld [vmem:[%s4098_s24 + $0xb4] ss:$8 sps:$4 sm:$0xff]   ;;  %v854_v29 = vcombine.high %v594_v5, %v594_v5 }
  0xfe   : > { %2419 = vmatpush1.bf16.msra.mxu0 %v3540_v32  ;;  %2256 = vmatprep.subr.bf16.mxu1 %v3541_v33  ;;  %v857_v59 = vunpack.c.0.s8 %v856_v54  ;;  %v3579_v63 = vld [vmem:[%s4098_s24 + $0x4a4] ss:$8 sps:$4 sm:$0xff]   ;;  %v3582_v1 = vld [vmem:[%s4098_s24 + $0x4a0] ss:$8 sps:$4 sm:$0xff]   ;;  %v3585_v4 = vld [vmem:[%s4098_s24 + $0x4b4] ss:$8 sps:$4 sm:$0xff]  }
  0xff   : > { %2420 = vmatprep.subr.bf16.mxu0 %v3543_v34  ;;  %v3587_v6 = vld [vmem:[%s4098_s24 + $0xb0] ss:$8 sps:$4 sm:$0xff]   ;;  %v595_v9 = vld [vmem:[%s4093_s20 + $0x8] sm:$0xff]  ;;  %v3595_v18 = vld [vmem:[%s4098_s24 + $0xd4] ss:$8 sps:$4 sm:$0xff]   ;;  %p3347_p6 = scmp.ne.s32.totalorder %s4084_s16, 3 }
 0x100   : > { %v4160_v2 = vsub.s32 %v857_v59, %v4152_v60  ;;  %v3588_v8 = vld [vmem:[%s4098_s24 + $0x4b0] ss:$8 sps:$4 sm:$0xff]   ;;  %v3589_v10 = vld [vmem:[%s4098_s24 + $0xc4] ss:$8 sps:$4 sm:$0xff]   ;;  %v3593_v16 = vld [vmem:[%s4098_s24 + $0xc0] ss:$8 sps:$4 sm:$0xff]   ;;  %v903_v30 = vcombine.high %v595_v9, %v595_v9 }
 0x101   : > { %2257 = vmatpush1.bf16.msra.mxu1 %v3545_v35  ;;  %v3591_v11 = vld [vmem:[%s4098_s24 + $0x4c4] ss:$8 sps:$4 sm:$0xff]   ;;  %v3594_v17 = vld [vmem:[%s4098_s24 + $0x4c0] ss:$8 sps:$4 sm:$0xff]   ;;  %v3597_v19 = vld [vmem:[%s4098_s24 + $0x4d4] ss:$8 sps:$4 sm:$0xff]  }
 0x102   : > { %2421 = vmatpush1.bf16.msra.mxu0 %v3546_v36  ;;  %2258 = vmatprep.subr.bf16.mxu1 %v3547_v37  ;;  %v861_v7 = vrot.slane %v594_v5, %v4160_v2  ;;  %v910_v13 = vrot.slane %v595_v9, %v4160_v2  ;;  %v3599_v21 = vld [vmem:[%s4098_s24 + $0xd0] ss:$8 sps:$4 sm:$0xff]   ;;  %v3601_v23 = vld [vmem:[%s4098_s24 + $0xe4] ss:$8 sps:$4 sm:$0xff]   ;;  %v3605_v25 = vld [vmem:[%s4098_s24 + $0xe0] ss:$8 sps:$4 sm:$0xff]   ;;  %v868_v35 = vrot.slane %v854_v29, %v4160_v2 }
 0x103   : > { %2422 = vmatprep.subr.bf16.mxu0 %v3549_v38  ;;  %v3600_v22 = vld [vmem:[%s4098_s24 + $0x4d0] ss:$8 sps:$4 sm:$0xff]   ;;  %v3603_v24 = vld [vmem:[%s4098_s24 + $0x4e4] ss:$8 sps:$4 sm:$0xff]   ;;  %v3606_v26 = vld [vmem:[%s4098_s24 + $0x4e0] ss:$8 sps:$4 sm:$0xff]   ;;  %v917_v36 = vrot.slane %v903_v30, %v4160_v2 }
 0x104   : > { %v869_v12 = vcombine.high %v861_v7, %v861_v7  ;;  %v918_v15 = vcombine.high %v910_v13, %v910_v13  ;;  %v3607_v27 = vld [vmem:[%s4098_s24 + $0xf4] ss:$8 sps:$4 sm:$0xff]   ;;  %v3611_v31 = vld [vmem:[%s4098_s24 + $0xf0] ss:$8 sps:$4 sm:$0xff]   ;;  %v3616_v33 = vld [vmem:[%s4098_s24 + $0x104] ss:$8 sps:$4 sm:$0xff]   ;;  %v4196_v37 = vrot.slane %v861_v7, %v4160_v2  ;;  %v4199_v38 = vrot.slane %v910_v13, %v4160_v2 }
 0x105   : > { %2259 = vmatpush1.bf16.msra.mxu1 %v3551_v39  ;;  %v3609_v28 = vld [vmem:[%s4098_s24 + $0x4f4] ss:$8 sps:$4 sm:$0xff]   ;;  %v3612_v32 = vld [vmem:[%s4098_s24 + $0x4f0] ss:$8 sps:$4 sm:$0xff]   ;;  %v3620_v34 = vld [vmem:[%s4098_s24 + $0x504] ss:$8 sps:$4 sm:$0xff]   ;;  %v870_v39 = vcombine.high %v868_v35, %v868_v35 }
 0x106   : > { %2423 = vmatpush1.bf16.msra.mxu0 %v3552_v40  ;;  %2260 = vmatprep.subr.bf16.mxu1 %v3553_v41  ;;  %v4173_v14 = vrot.slane %v869_v12, %v4160_v2  ;;  %v940_v20 = vrot.slane %v918_v15, %v4160_v2  ;;  %v919_v40 = vcombine.high %v917_v36, %v917_v36  ;;  %v3614_v41 = vld [vmem:[%s4098_s24 + $0x100] ss:$8 sps:$4 sm:$0xff]   ;;  %v3629_v53 = vld [vmem:[%s4098_s24 + $0x124] ss:$8 sps:$4 sm:$0xff]   ;;  %v3633_v59 = vld [vmem:[%s4098_s24 + $0x130] ss:$8 sps:$4 sm:$0xff]  }
 0x107   : > { %2424 = vmatprep.subr.bf16.mxu0 %v3555_v42  ;;  %v3618_v42 = vld [vmem:[%s4098_s24 + $0x500] ss:$8 sps:$4 sm:$0xff]   ;;  %v3632_v54 = vld [vmem:[%s4098_s24 + $0x524] ss:$8 sps:$4 sm:$0xff]   ;;  %v3648_v5 = vld [vmem:[%s4098_s24 + $0x550] ss:$8 sps:$4 sm:$0xff]  }
 0x108   : > { %2280 = vmatprep.mubr.bf16.mxu1 %v4173_v14  ;;  %2444 = vmatprep.mubr.bf16.mxu0 %v940_v20  ;;  %v3627_v55 = vld [vmem:[%s4098_s24 + $0x120] ss:$8 sps:$4 sm:$0xff]   ;;  %v3656_v7 = vld [vmem:[%s4098_s24 + $0x564] ss:$8 sps:$4 sm:$0xff]   ;;  %v3657_v12 = vld [vmem:[%s4098_s24 + $0x170] ss:$8 sps:$4 sm:$0xff]  }
 0x109   : > { %2261 = vmatpush1.bf16.msra.mxu1 %v3557_v43  ;;  %v3623_v43 = vld [vmem:[%s4098_s24 + $0x114] ss:$8 sps:$4 sm:$0xff]   ;;  %v3654_v9 = vld [vmem:[%s4098_s24 + $0x560] ss:$8 sps:$4 sm:$0xff]   ;;  %v3660_v13 = vld [vmem:[%s4098_s24 + $0x570] ss:$8 sps:$4 sm:$0xff]  }
 0x10a   : > { %2425 = vmatpush1.bf16.msra.mxu0 %v3558_v44  ;;  %2262 = vmatprep.subr.bf16.mxu1 %v3559_v45  ;;  %v3626_v44 = vld [vmem:[%s4098_s24 + $0x514] ss:$8 sps:$4 sm:$0xff]   ;;  %v4206_v45 = vrot.slane %v870_v39, %v4160_v2  ;;  %v3668_v15 = vld [vmem:[%s4098_s24 + $0x584] ss:$8 sps:$4 sm:$0xff]   ;;  %v3684_v29 = vld [vmem:[%s4098_s24 + $0x5b0] ss:$8 sps:$4 sm:$0xff]  }
 0x10b   : > { %2426 = vmatprep.subr.bf16.mxu0 %v3561_v46  ;;  %v4209_v46 = vrot.slane %v919_v40, %v4160_v2  ;;  %v3689_v30 = vld [vmem:[%s4098_s24 + $0x1c4] ss:$8 sps:$4 sm:$0xff]   ;;  %v3696_v39 = vld [vmem:[%s4098_s24 + $0x5d0] ss:$8 sps:$4 sm:$0xff]   ;;  %vm3996_vm2 = vmmov (!%p3347_p6), 0   ;;  %vm2857_vm3 = vcmask (!%p3347_p6), 261120  }
 0x10c   : > { %v3701_v40 = vld [vmem:[%s4098_s24 + $0x1e4] ss:$8 sps:$4 sm:$0xff]   ;;  %vm2967_vm4 = vcmask (!%p3347_p6), 132096   ;;  %vm2991_vm5 = vcmask (!%p3347_p6), 1041408   ;;  %vm2999_vm6 = vcmask (!%p3347_p6), 0  }
 0x10d   : > { %2263 = vmatpush1.bf16.msra.mxu1 %v3563_v47  ;;  %v4212_v47 = vrot.slane %v868_v35, %v4160_v2  ;;  %v3698_v35 = vld [vmem:[%s4098_s24 + $0x5d4] ss:$8 sps:$4 sm:$0xff]  }
 0x10e   : > { %2427 = vmatpush1.bf16.msra.mxu0 %v3564_v48  ;;  %2264 = vmatprep.subr.bf16.mxu1 %v3565_v49  ;;  %v901_v48 = vcombine.high %v4173_v14, %v4173_v14  ;;  %v950_v49 = vcombine.high %v940_v20, %v940_v20  ;;  %v3665_v14 = vld [vmem:[%s4098_s24 + $0x184] ss:$8 sps:$4 sm:$0xff]   ;;  %v3669_v20 = vld [vmem:[%s4098_s24 + $0x190] ss:$8 sps:$4 sm:$0xff]  }
 0x10f   : > { %2428 = vmatprep.subr.bf16.mxu0 %v3567_v50  ;;  %v4217_v50 = vrot.slane %v917_v36, %v4160_v2  ;;  %v3647_v2 = vld [vmem:[%s4098_s24 + $0x154] ss:$8 sps:$4 sm:$0xff]   ;;  %v3693_v36 = vld [vmem:[%s4098_s24 + $0x1d0] ss:$8 sps:$4 sm:$0xff]  }
 0x111   : > { %2265 = vmatpush1.bf16.msra.mxu1 %v3569_v51  ;;  %v3621_v51 = vld [vmem:[%s4098_s24 + $0x110] ss:$8 sps:$4 sm:$0xff]  }
 0x112   : > { %2429 = vmatpush1.bf16.msra.mxu0 %v3570_v52  ;;  %2266 = vmatprep.subr.bf16.mxu1 %v3571_v56  ;;  %v3624_v52 = vld [vmem:[%s4098_s24 + $0x510] ss:$8 sps:$4 sm:$0xff]   ;;  %v3630_v56 = vld [vmem:[%s4098_s24 + $0x520] ss:$8 sps:$4 sm:$0xff]  }
 0x113   : > { %2430 = vmatprep.subr.bf16.mxu0 %v3573_v57  ;;  %v3635_v57 = vld [vmem:[%s4098_s24 + $0x134] ss:$8 sps:$4 sm:$0xff]  }
 0x115   : > { %2267 = vmatpush1.bf16.msra.mxu1 %v3575_v58  ;;  %v3638_v58 = vld [vmem:[%s4098_s24 + $0x534] ss:$8 sps:$4 sm:$0xff]  }
 0x116   : > { %2431 = vmatpush1.bf16.msra.mxu0 %v3576_v61  ;;  %2268 = vmatprep.subr.bf16.mxu1 %v3577_v62  ;;  %v3636_v61 = vld [vmem:[%s4098_s24 + $0x530] ss:$8 sps:$4 sm:$0xff]   ;;  %v3641_v62 = vld [vmem:[%s4098_s24 + $0x144] ss:$8 sps:$4 sm:$0xff]  }
 0x117   : > { %2432 = vmatprep.subr.bf16.mxu0 %v3579_v63  ;;  %v3644_v63 = vld [vmem:[%s4098_s24 + $0x544] ss:$8 sps:$4 sm:$0xff]  }
 0x119   : > { %2269 = vmatpush1.bf16.msra.mxu1 %v3581_v0  ;;  %v3639_v0 = vld [vmem:[%s4098_s24 + $0x140] ss:$8 sps:$4 sm:$0xff]  }
 0x11a   : > { %2433 = vmatpush1.bf16.msra.mxu0 %v3582_v1  ;;  %2270 = vmatprep.subr.bf16.mxu1 %v3583_v3  ;;  %v3642_v1 = vld [vmem:[%s4098_s24 + $0x540] ss:$8 sps:$4 sm:$0xff]   ;;  %v3650_v3 = vld [vmem:[%s4098_s24 + $0x554] ss:$8 sps:$4 sm:$0xff]  }
 0x11b   : > { %2434 = vmatprep.subr.bf16.mxu0 %v3585_v4  ;;  %v3645_v4 = vld [vmem:[%s4098_s24 + $0x150] ss:$8 sps:$4 sm:$0xff]  }
 0x11d   : > { %2271 = vmatpush1.bf16.msra.mxu1 %v3587_v6  ;;  %v3653_v6 = vld [vmem:[%s4098_s24 + $0x164] ss:$8 sps:$4 sm:$0xff]  }
 0x11e   : > { %2435 = vmatpush1.bf16.msra.mxu0 %v3588_v8  ;;  %2272 = vmatprep.subr.bf16.mxu1 %v3589_v10  ;;  %v3651_v8 = vld [vmem:[%s4098_s24 + $0x160] ss:$8 sps:$4 sm:$0xff]   ;;  %v3659_v10 = vld [vmem:[%s4098_s24 + $0x174] ss:$8 sps:$4 sm:$0xff]  }
 0x11f   : > { %2436 = vmatprep.subr.bf16.mxu0 %v3591_v11  ;;  %v3662_v11 = vld [vmem:[%s4098_s24 + $0x574] ss:$8 sps:$4 sm:$0xff]  }
 0x121   : > { %2273 = vmatpush1.bf16.msra.mxu1 %v3593_v16  ;;  %v3663_v16 = vld [vmem:[%s4098_s24 + $0x180] ss:$8 sps:$4 sm:$0xff]  }
 0x122   : > { %2437 = vmatpush1.bf16.msra.mxu0 %v3594_v17  ;;  %2274 = vmatprep.subr.bf16.mxu1 %v3595_v18  ;;  %v3666_v17 = vld [vmem:[%s4098_s24 + $0x580] ss:$8 sps:$4 sm:$0xff]   ;;  %v3671_v18 = vld [vmem:[%s4098_s24 + $0x194] ss:$8 sps:$4 sm:$0xff]  }
 0x123   : > { %2438 = vmatprep.subr.bf16.mxu0 %v3597_v19  ;;  %v3674_v19 = vld [vmem:[%s4098_s24 + $0x594] ss:$8 sps:$4 sm:$0xff]  }
 0x125   : > { %2275 = vmatpush1.bf16.msra.mxu1 %v3599_v21  ;;  %v3672_v21 = vld [vmem:[%s4098_s24 + $0x590] ss:$8 sps:$4 sm:$0xff]  }
 0x126   : > { %2439 = vmatpush1.bf16.msra.mxu0 %v3600_v22  ;;  %2276 = vmatprep.subr.bf16.mxu1 %v3601_v23  ;;  %v3677_v22 = vld [vmem:[%s4098_s24 + $0x1a4] ss:$8 sps:$4 sm:$0xff]  }
 0x127   : > { %2440 = vmatprep.subr.bf16.mxu0 %v3603_v24  ;;  %v3680_v23 = vld [vmem:[%s4098_s24 + $0x5a4] ss:$8 sps:$4 sm:$0xff]   ;;  %v3675_v24 = vld [vmem:[%s4098_s24 + $0x1a0] ss:$8 sps:$4 sm:$0xff]  }
 0x129   : > { %2277 = vmatpush1.bf16.msra.mxu1 %v3605_v25  ;;  %v3678_v25 = vld [vmem:[%s4098_s24 + $0x5a0] ss:$8 sps:$4 sm:$0xff]  }
 0x12a   : > { %2441 = vmatpush1.bf16.msra.mxu0 %v3606_v26  ;;  %2278 = vmatprep.subr.bf16.mxu1 %v3607_v27  ;;  %v3683_v26 = vld [vmem:[%s4098_s24 + $0x1b4] ss:$8 sps:$4 sm:$0xff]  }
 0x12b   : > { %2442 = vmatprep.subr.bf16.mxu0 %v3609_v28  ;;  %v3686_v27 = vld [vmem:[%s4098_s24 + $0x5b4] ss:$8 sps:$4 sm:$0xff]   ;;  %v3681_v28 = vld [vmem:[%s4098_s24 + $0x1b0] ss:$8 sps:$4 sm:$0xff]  }
 0x12d   : > { %2279 = vmatpush1.bf16.msra.mxu1 %v3611_v31  ;;  %v3692_v31 = vld [vmem:[%s4098_s24 + $0x5c4] ss:$8 sps:$4 sm:$0xff]  }
 0x12e   : > { %2443 = vmatpush1.bf16.msra.mxu0 %v3612_v32  ;;  %2289 = vmatprep.subr.bf16.mxu1 %v3616_v33  ;;  %v3687_v32 = vld [vmem:[%s4098_s24 + $0x1c0] ss:$8 sps:$4 sm:$0xff]  }
 0x12f   : > { %2453 = vmatprep.subr.bf16.mxu0 %v3620_v34  ;;  %v3690_v33 = vld [vmem:[%s4098_s24 + $0x5c0] ss:$8 sps:$4 sm:$0xff]   ;;  %v3695_v34 = vld [vmem:[%s4098_s24 + $0x1d4] ss:$8 sps:$4 sm:$0xff]  }
 0x130   : > { %2281 = vmatmul.mubr.bf16.vlgmr.msra.gmra.mrb[0].mxu1 %v4196_v37 }
 0x131   : > { %2445 = vmatmul.mubr.bf16.vlgmr.msra.gmra.mrb[0].mxu0 %v4199_v38  ;;  %2290 = vmatpush1.bf16.msra.mxu1 %v3614_v41  ;;  %v3704_v41 = vld [vmem:[%s4098_s24 + $0x5e4] ss:$8 sps:$4 sm:$0xff]  }
 0x132   : > { %2454 = vmatpush1.bf16.msra.mxu0 %v3618_v42  ;;  %2291 = vmatprep.subr.bf16.mxu1 %v3623_v43  ;;  %v3699_v42 = vld [vmem:[%s4098_s24 + $0x1e0] ss:$8 sps:$4 sm:$0xff]  }
 0x133   : > { %2455 = vmatprep.subr.bf16.mxu0 %v3626_v44  ;;  %2321 = vmatprep.mubr.bf16.mxu1 %v901_v48  ;;  %v3702_v43 = vld [vmem:[%s4098_s24 + $0x5e0] ss:$8 sps:$4 sm:$0xff]   ;;  %v3707_v44 = vld [vmem:[%s4098_s24 + $0x1f4] ss:$8 sps:$4 sm:$0xff]  }
 0x134   : > { %2485 = vmatprep.mubr.bf16.mxu0 %v950_v49  ;;  %v3710_v48 = vld [vmem:[%s4098_s24 + $0x5f4] ss:$8 sps:$4 sm:$0xff]   ;;  %v3705_v49 = vld [vmem:[%s4098_s24 + $0x1f0] ss:$8 sps:$4 sm:$0xff]  }
 0x135   : > { %2292 = vmatpush1.bf16.msra.mxu1 %v3621_v51  ;;  %v3708_v51 = vld [vmem:[%s4098_s24 + $0x5f0] ss:$8 sps:$4 sm:$0xff]  }
 0x136   : > { %2456 = vmatpush1.bf16.msra.mxu0 %v3624_v52  ;;  %2293 = vmatprep.subr.bf16.mxu1 %v3629_v53  ;;  %v3713_v52 = vld [vmem:[%s4098_s24 + $0x204] ss:$8 sps:$4 sm:$0xff]  }
 0x137   : > { %2457 = vmatprep.subr.bf16.mxu0 %v3632_v54  ;;  %v3716_v53 = vld [vmem:[%s4098_s24 + $0x604] ss:$8 sps:$4 sm:$0xff]   ;;  %v899_v54 = vcombine.high %v4196_v37, %v4196_v37  ;;  %v3717_v37 = vld [vmem:[%s4098_s24 + $0x210] ss:$8 sps:$4 sm:$0xff]  }
 0x139   : > { %2294 = vmatpush1.bf16.msra.mxu1 %v3627_v55  ;;  %v948_v55 = vcombine.high %v4199_v38, %v4199_v38  ;;  %v3720_v38 = vld [vmem:[%s4098_s24 + $0x610] ss:$8 sps:$4 sm:$0xff]  }
 0x13a   : > { %2458 = vmatpush1.bf16.msra.mxu0 %v3630_v56  ;;  %2295 = vmatprep.subr.bf16.mxu1 %v3635_v57  ;;  %v3711_v56 = vld [vmem:[%s4098_s24 + $0x200] ss:$8 sps:$4 sm:$0xff]  }
 0x13b   : > { %2459 = vmatprep.subr.bf16.mxu0 %v3638_v58  ;;  %v3714_v57 = vld [vmem:[%s4098_s24 + $0x600] ss:$8 sps:$4 sm:$0xff]   ;;  %v3719_v58 = vld [vmem:[%s4098_s24 + $0x214] ss:$8 sps:$4 sm:$0xff]  }
 0x13d   : > { %2296 = vmatpush1.bf16.msra.mxu1 %v3633_v59  ;;  %v3722_v59 = vld [vmem:[%s4098_s24 + $0x614] ss:$8 sps:$4 sm:$0xff]  }
 0x13e   : > { %2460 = vmatpush1.bf16.msra.mxu0 %v3636_v61  ;;  %2297 = vmatprep.subr.bf16.mxu1 %v3641_v62  ;;  %v3725_v61 = vld [vmem:[%s4098_s24 + $0x224] ss:$8 sps:$4 sm:$0xff]  }
 0x13f   : > { %2461 = vmatprep.subr.bf16.mxu0 %v3644_v63  ;;  %v3728_v62 = vld [vmem:[%s4098_s24 + $0x624] ss:$8 sps:$4 sm:$0xff]   ;;  %v3723_v63 = vld [vmem:[%s4098_s24 + $0x220] ss:$8 sps:$4 sm:$0xff]  }
 0x141   : > { %2298 = vmatpush1.bf16.msra.mxu1 %v3639_v0  ;;  %v3726_v0 = vld [vmem:[%s4098_s24 + $0x620] ss:$8 sps:$4 sm:$0xff]  }
 0x142   : > { %2462 = vmatpush1.bf16.msra.mxu0 %v3642_v1  ;;  %2299 = vmatprep.subr.bf16.mxu1 %v3647_v2  ;;  %v3731_v1 = vld [vmem:[%s4098_s24 + $0x234] ss:$8 sps:$4 sm:$0xff]  }
 0x143   : > { %2463 = vmatprep.subr.bf16.mxu0 %v3650_v3  ;;  %v3734_v2 = vld [vmem:[%s4098_s24 + $0x634] ss:$8 sps:$4 sm:$0xff]   ;;  %v3729_v3 = vld [vmem:[%s4098_s24 + $0x230] ss:$8 sps:$4 sm:$0xff]  }
 0x145   : > { %2300 = vmatpush1.bf16.msra.mxu1 %v3645_v4  ;;  %v3732_v4 = vld [vmem:[%s4098_s24 + $0x630] ss:$8 sps:$4 sm:$0xff]  }
 0x146   : > { %2464 = vmatpush1.bf16.msra.mxu0 %v3648_v5  ;;  %2301 = vmatprep.subr.bf16.mxu1 %v3653_v6  ;;  %v3737_v5 = vld [vmem:[%s4098_s24 + $0x244] ss:$8 sps:$4 sm:$0xff]  }
 0x147   : > { %2465 = vmatprep.subr.bf16.mxu0 %v3656_v7  ;;  %v3740_v6 = vld [vmem:[%s4098_s24 + $0x644] ss:$8 sps:$4 sm:$0xff]   ;;  %v3735_v7 = vld [vmem:[%s4098_s24 + $0x240] ss:$8 sps:$4 sm:$0xff]  }
 0x149   : > { %2302 = vmatpush1.bf16.msra.mxu1 %v3651_v8  ;;  %v3738_v8 = vld [vmem:[%s4098_s24 + $0x640] ss:$8 sps:$4 sm:$0xff]  }
 0x14a   : > { %2466 = vmatpush1.bf16.msra.mxu0 %v3654_v9  ;;  %2303 = vmatprep.subr.bf16.mxu1 %v3659_v10  ;;  %v3743_v9 = vld [vmem:[%s4098_s24 + $0x254] ss:$8 sps:$4 sm:$0xff]  }
 0x14b   : > { %2467 = vmatprep.subr.bf16.mxu0 %v3662_v11  ;;  %v3746_v10 = vld [vmem:[%s4098_s24 + $0x654] ss:$8 sps:$4 sm:$0xff]   ;;  %v3741_v11 = vld [vmem:[%s4098_s24 + $0x250] ss:$8 sps:$4 sm:$0xff]  }
 0x14d   : > { %2304 = vmatpush1.bf16.msra.mxu1 %v3657_v12  ;;  %v3744_v12 = vld [vmem:[%s4098_s24 + $0x650] ss:$8 sps:$4 sm:$0xff]  }
 0x14e   : > { %2468 = vmatpush1.bf16.msra.mxu0 %v3660_v13  ;;  %2305 = vmatprep.subr.bf16.mxu1 %v3665_v14  ;;  %v3749_v13 = vld [vmem:[%s4098_s24 + $0x264] ss:$8 sps:$4 sm:$0xff]  }
 0x14f   : > { %2469 = vmatprep.subr.bf16.mxu0 %v3668_v15  ;;  %v3752_v14 = vld [vmem:[%s4098_s24 + $0x664] ss:$8 sps:$4 sm:$0xff]   ;;  %v3747_v15 = vld [vmem:[%s4098_s24 + $0x260] ss:$8 sps:$4 sm:$0xff]  }
 0x151   : > { %2306 = vmatpush1.bf16.msra.mxu1 %v3663_v16  ;;  %v3750_v16 = vld [vmem:[%s4098_s24 + $0x660] ss:$8 sps:$4 sm:$0xff]  }
 0x152   : > { %2470 = vmatpush1.bf16.msra.mxu0 %v3666_v17  ;;  %2307 = vmatprep.subr.bf16.mxu1 %v3671_v18  ;;  %v3755_v17 = vld [vmem:[%s4098_s24 + $0x274] ss:$8 sps:$4 sm:$0xff]  }
 0x153   : > { %2471 = vmatprep.subr.bf16.mxu0 %v3674_v19  ;;  %v3758_v18 = vld [vmem:[%s4098_s24 + $0x674] ss:$8 sps:$4 sm:$0xff]   ;;  %v3753_v19 = vld [vmem:[%s4098_s24 + $0x270] ss:$8 sps:$4 sm:$0xff]  }
 0x155   : > { %2308 = vmatpush1.bf16.msra.mxu1 %v3669_v20  ;;  %v3756_v20 = vld [vmem:[%s4098_s24 + $0x670] ss:$8 sps:$4 sm:$0xff]  }
 0x156   : > { %2472 = vmatpush1.bf16.msra.mxu0 %v3672_v21  ;;  %2309 = vmatprep.subr.bf16.mxu1 %v3677_v22  ;;  %v3761_v21 = vld [vmem:[%s4098_s24 + $0x284] ss:$8 sps:$4 sm:$0xff]  }
 0x157   : > { %2473 = vmatprep.subr.bf16.mxu0 %v3680_v23  ;;  %v3764_v22 = vld [vmem:[%s4098_s24 + $0x684] ss:$8 sps:$4 sm:$0xff]   ;;  %v3759_v23 = vld [vmem:[%s4098_s24 + $0x280] ss:$8 sps:$4 sm:$0xff]  }
 0x159   : > { %2310 = vmatpush1.bf16.msra.mxu1 %v3675_v24  ;;  %v3762_v24 = vld [vmem:[%s4098_s24 + $0x680] ss:$8 sps:$4 sm:$0xff]  }
 0x15a   : > { %2474 = vmatpush1.bf16.msra.mxu0 %v3678_v25  ;;  %2311 = vmatprep.subr.bf16.mxu1 %v3683_v26  ;;  %v3767_v25 = vld [vmem:[%s4098_s24 + $0x294] ss:$8 sps:$4 sm:$0xff]  }
 0x15b   : > { %2475 = vmatprep.subr.bf16.mxu0 %v3686_v27  ;;  %v3770_v26 = vld [vmem:[%s4098_s24 + $0x694] ss:$8 sps:$4 sm:$0xff]   ;;  %v3765_v27 = vld [vmem:[%s4098_s24 + $0x290] ss:$8 sps:$4 sm:$0xff]  }
 0x15d   : > { %2312 = vmatpush1.bf16.msra.mxu1 %v3681_v28  ;;  %v3768_v28 = vld [vmem:[%s4098_s24 + $0x690] ss:$8 sps:$4 sm:$0xff]  }
 0x15e   : > { %2476 = vmatpush1.bf16.msra.mxu0 %v3684_v29  ;;  %2313 = vmatprep.subr.bf16.mxu1 %v3689_v30  ;;  %v3773_v29 = vld [vmem:[%s4098_s24 + $0x2a4] ss:$8 sps:$4 sm:$0xff]  }
 0x15f   : > { %2477 = vmatprep.subr.bf16.mxu0 %v3692_v31  ;;  %v3776_v30 = vld [vmem:[%s4098_s24 + $0x6a4] ss:$8 sps:$4 sm:$0xff]   ;;  %v3771_v31 = vld [vmem:[%s4098_s24 + $0x2a0] ss:$8 sps:$4 sm:$0xff]  }
 0x161   : > { %2314 = vmatpush1.bf16.msra.mxu1 %v3687_v32  ;;  %v3774_v32 = vld [vmem:[%s4098_s24 + $0x6a0] ss:$8 sps:$4 sm:$0xff]  }
 0x162   : > { %2478 = vmatpush1.bf16.msra.mxu0 %v3690_v33  ;;  %2315 = vmatprep.subr.bf16.mxu1 %v3695_v34  ;;  %v3779_v33 = vld [vmem:[%s4098_s24 + $0x2b4] ss:$8 sps:$4 sm:$0xff]  }
 0x163   : > { %2479 = vmatprep.subr.bf16.mxu0 %v3698_v35  ;;  %v3782_v34 = vld [vmem:[%s4098_s24 + $0x6b4] ss:$8 sps:$4 sm:$0xff]   ;;  %v3777_v35 = vld [vmem:[%s4098_s24 + $0x2b0] ss:$8 sps:$4 sm:$0xff]  }
 0x165   : > { %2316 = vmatpush1.bf16.msra.mxu1 %v3693_v36  ;;  %v3780_v36 = vld [vmem:[%s4098_s24 + $0x6b0] ss:$8 sps:$4 sm:$0xff]  }
 0x166   : > { %2480 = vmatpush1.bf16.msra.mxu0 %v3696_v39  ;;  %2317 = vmatprep.subr.bf16.mxu1 %v3701_v40  ;;  %v3785_v39 = vld [vmem:[%s4098_s24 + $0x2c4] ss:$8 sps:$4 sm:$0xff]  }
 0x167   : > { %2481 = vmatprep.subr.bf16.mxu0 %v3704_v41  ;;  %v3788_v40 = vld [vmem:[%s4098_s24 + $0x6c4] ss:$8 sps:$4 sm:$0xff]   ;;  %v3783_v41 = vld [vmem:[%s4098_s24 + $0x2c0] ss:$8 sps:$4 sm:$0xff]  }
 0x169   : > { %2318 = vmatpush1.bf16.msra.mxu1 %v3699_v42  ;;  %v3786_v42 = vld [vmem:[%s4098_s24 + $0x6c0] ss:$8 sps:$4 sm:$0xff]  }
 0x16a   : > { %2482 = vmatpush1.bf16.msra.mxu0 %v3702_v43  ;;  %2319 = vmatprep.subr.bf16.mxu1 %v3707_v44  ;;  %v3791_v43 = vld [vmem:[%s4098_s24 + $0x2d4] ss:$8 sps:$4 sm:$0xff]  }
 0x16b   : > { %2483 = vmatprep.subr.bf16.mxu0 %v3710_v48  ;;  %v3794_v44 = vld [vmem:[%s4098_s24 + $0x6d4] ss:$8 sps:$4 sm:$0xff]   ;;  %v3789_v48 = vld [vmem:[%s4098_s24 + $0x2d0] ss:$8 sps:$4 sm:$0xff]  }
 0x16d   : > { %2320 = vmatpush1.bf16.msra.mxu1 %v3705_v49  ;;  %v3792_v49 = vld [vmem:[%s4098_s24 + $0x6d0] ss:$8 sps:$4 sm:$0xff]  }
 0x16e   : > { %2484 = vmatpush1.bf16.msra.mxu0 %v3708_v51  ;;  %2330 = vmatprep.subr.bf16.mxu1 %v3713_v52  ;;  %v3797_v51 = vld [vmem:[%s4098_s24 + $0x2e4] ss:$8 sps:$4 sm:$0xff]  }
 0x16f   : > { %2494 = vmatprep.subr.bf16.mxu0 %v3716_v53  ;;  %v3800_v52 = vld [vmem:[%s4098_s24 + $0x6e4] ss:$8 sps:$4 sm:$0xff]   ;;  %v3795_v53 = vld [vmem:[%s4098_s24 + $0x2e0] ss:$8 sps:$4 sm:$0xff]  }
 0x170   : > { %2322 = vmatmul.mubr.bf16.vlgmr.msra.gmra.mrb[0].mxu1 %v899_v54  ;;  %v3798_v54 = vld [vmem:[%s4098_s24 + $0x6e0] ss:$8 sps:$4 sm:$0xff]  }
 0x171   : > { %2486 = vmatmul.mubr.bf16.vlgmr.msra.gmra.mrb[0].mxu0 %v948_v55  ;;  %2331 = vmatpush1.bf16.msra.mxu1 %v3711_v56  ;;  %v3803_v55 = vld [vmem:[%s4098_s24 + $0x2f4] ss:$8 sps:$4 sm:$0xff]  }
 0x172   : > { %2495 = vmatpush1.bf16.msra.mxu0 %v3714_v57  ;;  %2332 = vmatprep.subr.bf16.mxu1 %v3719_v58  ;;  %v3806_v56 = vld [vmem:[%s4098_s24 + $0x6f4] ss:$8 sps:$4 sm:$0xff]   ;;  %v3801_v57 = vld [vmem:[%s4098_s24 + $0x2f0] ss:$8 sps:$4 sm:$0xff]  }
 0x173   : > { %2496 = vmatprep.subr.bf16.mxu0 %v3722_v59  ;;  %2362 = vmatprep.mubr.bf16.mxu1 %v4206_v45  ;;  %v3804_v58 = vld [vmem:[%s4098_s24 + $0x6f0] ss:$8 sps:$4 sm:$0xff]   ;;  %v3809_v59 = vld [vmem:[%s4098_s24 + $0x304] ss:$8 sps:$4 sm:$0xff]  }
 0x174   : > { %2526 = vmatprep.mubr.bf16.mxu0 %v4209_v46 }
 0x175   : > { %2333 = vmatpush1.bf16.msra.mxu1 %v3717_v37  ;;  %v3812_v37 = vld [vmem:[%s4098_s24 + $0x704] ss:$8 sps:$4 sm:$0xff]  }
 0x176   : > { %2497 = vmatpush1.bf16.msra.mxu0 %v3720_v38  ;;  %2334 = vmatprep.subr.bf16.mxu1 %v3725_v61  ;;  %v3807_v38 = vld [vmem:[%s4098_s24 + $0x300] ss:$8 sps:$4 sm:$0xff]  }
 0x177   : > { %2498 = vmatprep.subr.bf16.mxu0 %v3728_v62  ;;  %v3810_v61 = vld [vmem:[%s4098_s24 + $0x700] ss:$8 sps:$4 sm:$0xff]   ;;  %v3815_v62 = vld [vmem:[%s4098_s24 + $0x314] ss:$8 sps:$4 sm:$0xff]  }
 0x179   : > { %2335 = vmatpush1.bf16.msra.mxu1 %v3723_v63  ;;  %v3818_v63 = vld [vmem:[%s4098_s24 + $0x714] ss:$8 sps:$4 sm:$0xff]  }
 0x17a   : > { %2499 = vmatpush1.bf16.msra.mxu0 %v3726_v0  ;;  %2336 = vmatprep.subr.bf16.mxu1 %v3731_v1  ;;  %v902_v0 = vcombine.high %v4206_v45, %v4206_v45  ;;  %v951_v1 = vcombine.high %v4209_v46, %v4209_v46  ;;  %v3821_v45 = vld [vmem:[%s4098_s24 + $0x324] ss:$8 sps:$4 sm:$0xff]   ;;  %v3819_v46 = vld [vmem:[%s4098_s24 + $0x320] ss:$8 sps:$4 sm:$0xff]  }
 0x17b   : > { %2500 = vmatprep.subr.bf16.mxu0 %v3734_v2  ;;  %v3813_v2 = vld [vmem:[%s4098_s24 + $0x310] ss:$8 sps:$4 sm:$0xff]  }
 0x17d   : > { %2337 = vmatpush1.bf16.msra.mxu1 %v3729_v3  ;;  %v3816_v3 = vld [vmem:[%s4098_s24 + $0x710] ss:$8 sps:$4 sm:$0xff]  }
 0x17e   : > { %2501 = vmatpush1.bf16.msra.mxu0 %v3732_v4  ;;  %2338 = vmatprep.subr.bf16.mxu1 %v3737_v5  ;;  %v3824_v4 = vld [vmem:[%s4098_s24 + $0x724] ss:$8 sps:$4 sm:$0xff]   ;;  %v3822_v5 = vld [vmem:[%s4098_s24 + $0x720] ss:$8 sps:$4 sm:$0xff]  }
 0x17f   : > { %2502 = vmatprep.subr.bf16.mxu0 %v3740_v6  ;;  %v3827_v6 = vld [vmem:[%s4098_s24 + $0x334] ss:$8 sps:$4 sm:$0xff]  }
 0x181   : > { %2339 = vmatpush1.bf16.msra.mxu1 %v3735_v7  ;;  %v3830_v7 = vld [vmem:[%s4098_s24 + $0x734] ss:$8 sps:$4 sm:$0xff]  }
 0x182   : > { %2503 = vmatpush1.bf16.msra.mxu0 %v3738_v8  ;;  %2340 = vmatprep.subr.bf16.mxu1 %v3743_v9  ;;  %v3825_v8 = vld [vmem:[%s4098_s24 + $0x330] ss:$8 sps:$4 sm:$0xff]  }
 0x183   : > { %2504 = vmatprep.subr.bf16.mxu0 %v3746_v10  ;;  %v3828_v9 = vld [vmem:[%s4098_s24 + $0x730] ss:$8 sps:$4 sm:$0xff]   ;;  %v3833_v10 = vld [vmem:[%s4098_s24 + $0x344] ss:$8 sps:$4 sm:$0xff]  }
 0x185   : > { %2341 = vmatpush1.bf16.msra.mxu1 %v3741_v11  ;;  %v3836_v11 = vld [vmem:[%s4098_s24 + $0x744] ss:$8 sps:$4 sm:$0xff]  }
 0x186   : > { %2505 = vmatpush1.bf16.msra.mxu0 %v3744_v12  ;;  %2342 = vmatprep.subr.bf16.mxu1 %v3749_v13  ;;  %v3831_v12 = vld [vmem:[%s4098_s24 + $0x340] ss:$8 sps:$4 sm:$0xff]  }
 0x187   : > { %2506 = vmatprep.subr.bf16.mxu0 %v3752_v14  ;;  %v3834_v13 = vld [vmem:[%s4098_s24 + $0x740] ss:$8 sps:$4 sm:$0xff]   ;;  %v3839_v14 = vld [vmem:[%s4098_s24 + $0x354] ss:$8 sps:$4 sm:$0xff]  }
 0x189   : > { %2343 = vmatpush1.bf16.msra.mxu1 %v3747_v15  ;;  %v3842_v15 = vld [vmem:[%s4098_s24 + $0x754] ss:$8 sps:$4 sm:$0xff]  }
 0x18a   : > { %2507 = vmatpush1.bf16.msra.mxu0 %v3750_v16  ;;  %2344 = vmatprep.subr.bf16.mxu1 %v3755_v17  ;;  %v3837_v16 = vld [vmem:[%s4098_s24 + $0x350] ss:$8 sps:$4 sm:$0xff]  }
 0x18b   : > { %2508 = vmatprep.subr.bf16.mxu0 %v3758_v18  ;;  %v3840_v17 = vld [vmem:[%s4098_s24 + $0x750] ss:$8 sps:$4 sm:$0xff]   ;;  %v3845_v18 = vld [vmem:[%s4098_s24 + $0x364] ss:$8 sps:$4 sm:$0xff]  }
 0x18d   : > { %2345 = vmatpush1.bf16.msra.mxu1 %v3753_v19  ;;  %v3848_v19 = vld [vmem:[%s4098_s24 + $0x764] ss:$8 sps:$4 sm:$0xff]  }
 0x18e   : > { %2509 = vmatpush1.bf16.msra.mxu0 %v3756_v20  ;;  %2346 = vmatprep.subr.bf16.mxu1 %v3761_v21  ;;  %v3843_v20 = vld [vmem:[%s4098_s24 + $0x360] ss:$8 sps:$4 sm:$0xff]  }
 0x18f   : > { %2510 = vmatprep.subr.bf16.mxu0 %v3764_v22  ;;  %v3846_v21 = vld [vmem:[%s4098_s24 + $0x760] ss:$8 sps:$4 sm:$0xff]   ;;  %v3851_v22 = vld [vmem:[%s4098_s24 + $0x374] ss:$8 sps:$4 sm:$0xff]  }
 0x191   : > { %2347 = vmatpush1.bf16.msra.mxu1 %v3759_v23  ;;  %v3854_v23 = vld [vmem:[%s4098_s24 + $0x774] ss:$8 sps:$4 sm:$0xff]  }
 0x192   : > { %2511 = vmatpush1.bf16.msra.mxu0 %v3762_v24  ;;  %2348 = vmatprep.subr.bf16.mxu1 %v3767_v25  ;;  %v3849_v24 = vld [vmem:[%s4098_s24 + $0x370] ss:$8 sps:$4 sm:$0xff]  }
 0x193   : > { %2512 = vmatprep.subr.bf16.mxu0 %v3770_v26  ;;  %v3852_v25 = vld [vmem:[%s4098_s24 + $0x770] ss:$8 sps:$4 sm:$0xff]   ;;  %v3857_v26 = vld [vmem:[%s4098_s24 + $0x384] ss:$8 sps:$4 sm:$0xff]  }
 0x195   : > { %2349 = vmatpush1.bf16.msra.mxu1 %v3765_v27  ;;  %v3860_v27 = vld [vmem:[%s4098_s24 + $0x784] ss:$8 sps:$4 sm:$0xff]  }
 0x196   : > { %2513 = vmatpush1.bf16.msra.mxu0 %v3768_v28  ;;  %2350 = vmatprep.subr.bf16.mxu1 %v3773_v29  ;;  %v3855_v28 = vld [vmem:[%s4098_s24 + $0x380] ss:$8 sps:$4 sm:$0xff]  }
 0x197   : > { %2514 = vmatprep.subr.bf16.mxu0 %v3776_v30  ;;  %v3858_v29 = vld [vmem:[%s4098_s24 + $0x780] ss:$8 sps:$4 sm:$0xff]   ;;  %v3863_v30 = vld [vmem:[%s4098_s24 + $0x394] ss:$8 sps:$4 sm:$0xff]  }
 0x199   : > { %2351 = vmatpush1.bf16.msra.mxu1 %v3771_v31  ;;  %v3866_v31 = vld [vmem:[%s4098_s24 + $0x794] ss:$8 sps:$4 sm:$0xff]  }
 0x19a   : > { %2515 = vmatpush1.bf16.msra.mxu0 %v3774_v32  ;;  %2352 = vmatprep.subr.bf16.mxu1 %v3779_v33  ;;  %v3861_v32 = vld [vmem:[%s4098_s24 + $0x390] ss:$8 sps:$4 sm:$0xff]  }
 0x19b   : > { %2516 = vmatprep.subr.bf16.mxu0 %v3782_v34  ;;  %v3864_v33 = vld [vmem:[%s4098_s24 + $0x790] ss:$8 sps:$4 sm:$0xff]   ;;  %v3869_v34 = vld [vmem:[%s4098_s24 + $0x3a4] ss:$8 sps:$4 sm:$0xff]  }
 0x19d   : > { %2353 = vmatpush1.bf16.msra.mxu1 %v3777_v35  ;;  %v3872_v35 = vld [vmem:[%s4098_s24 + $0x7a4] ss:$8 sps:$4 sm:$0xff]  }
 0x19e   : > { %2517 = vmatpush1.bf16.msra.mxu0 %v3780_v36  ;;  %2354 = vmatprep.subr.bf16.mxu1 %v3785_v39  ;;  %v3867_v36 = vld [vmem:[%s4098_s24 + $0x3a0] ss:$8 sps:$4 sm:$0xff]  }
 0x19f   : > { %2518 = vmatprep.subr.bf16.mxu0 %v3788_v40  ;;  %v3870_v39 = vld [vmem:[%s4098_s24 + $0x7a0] ss:$8 sps:$4 sm:$0xff]   ;;  %v3875_v40 = vld [vmem:[%s4098_s24 + $0x3b4] ss:$8 sps:$4 sm:$0xff]  }
 0x1a1   : > { %2355 = vmatpush1.bf16.msra.mxu1 %v3783_v41  ;;  %v3878_v41 = vld [vmem:[%s4098_s24 + $0x7b4] ss:$8 sps:$4 sm:$0xff]  }
 0x1a2   : > { %2519 = vmatpush1.bf16.msra.mxu0 %v3786_v42  ;;  %2356 = vmatprep.subr.bf16.mxu1 %v3791_v43  ;;  %v3873_v42 = vld [vmem:[%s4098_s24 + $0x3b0] ss:$8 sps:$4 sm:$0xff]  }
 0x1a3   : > { %2520 = vmatprep.subr.bf16.mxu0 %v3794_v44  ;;  %v3876_v43 = vld [vmem:[%s4098_s24 + $0x7b0] ss:$8 sps:$4 sm:$0xff]   ;;  %v3881_v44 = vld [vmem:[%s4098_s24 + $0x3c4] ss:$8 sps:$4 sm:$0xff]  }
 0x1a5   : > { %2357 = vmatpush1.bf16.msra.mxu1 %v3789_v48  ;;  %v3884_v48 = vld [vmem:[%s4098_s24 + $0x7c4] ss:$8 sps:$4 sm:$0xff]  }
 0x1a6   : > { %2521 = vmatpush1.bf16.msra.mxu0 %v3792_v49  ;;  %2358 = vmatprep.subr.bf16.mxu1 %v3797_v51  ;;  %v3879_v49 = vld [vmem:[%s4098_s24 + $0x3c0] ss:$8 sps:$4 sm:$0xff]  }
 0x1a7   : > { %2522 = vmatprep.subr.bf16.mxu0 %v3800_v52  ;;  %v3882_v51 = vld [vmem:[%s4098_s24 + $0x7c0] ss:$8 sps:$4 sm:$0xff]   ;;  %v3887_v52 = vld [vmem:[%s4098_s24 + $0x3d4] ss:$8 sps:$4 sm:$0xff]  }
 0x1a9   : > { %2359 = vmatpush1.bf16.msra.mxu1 %v3795_v53  ;;  %v3890_v53 = vld [vmem:[%s4098_s24 + $0x7d4] ss:$8 sps:$4 sm:$0xff]  }
 0x1aa   : > { %2523 = vmatpush1.bf16.msra.mxu0 %v3798_v54  ;;  %2360 = vmatprep.subr.bf16.mxu1 %v3803_v55  ;;  %v3885_v54 = vld [vmem:[%s4098_s24 + $0x3d0] ss:$8 sps:$4 sm:$0xff]  }
 0x1ab   : > { %2524 = vmatprep.subr.bf16.mxu0 %v3806_v56  ;;  %v3888_v55 = vld [vmem:[%s4098_s24 + $0x7d0] ss:$8 sps:$4 sm:$0xff]   ;;  %v3893_v56 = vld [vmem:[%s4098_s24 + $0x3e4] ss:$8 sps:$4 sm:$0xff]  }
 0x1ad   : > { %2361 = vmatpush1.bf16.msra.mxu1 %v3801_v57  ;;  %v3896_v57 = vld [vmem:[%s4098_s24 + $0x7e4] ss:$8 sps:$4 sm:$0xff]  }
 0x1ae   : > { %2525 = vmatpush1.bf16.msra.mxu0 %v3804_v58  ;;  %2371 = vmatprep.subr.bf16.mxu1 %v3809_v59  ;;  %v3891_v58 = vld [vmem:[%s4098_s24 + $0x3e0] ss:$8 sps:$4 sm:$0xff]  }
 0x1af   : > { %2535 = vmatprep.subr.bf16.mxu0 %v3812_v37  ;;  %v3894_v59 = vld [vmem:[%s4098_s24 + $0x7e0] ss:$8 sps:$4 sm:$0xff]   ;;  %v3899_v37 = vld [vmem:[%s4098_s24 + $0x3f4] ss:$8 sps:$4 sm:$0xff]  }
 0x1b0   : > { %2363 = vmatmul.mubr.bf16.vlgmr.msra.gmra.mrb[0].mxu1 %v4212_v47 }
 0x1b1   : > { %2527 = vmatmul.mubr.bf16.vlgmr.msra.gmra.mrb[0].mxu0 %v4217_v50  ;;  %2372 = vmatpush1.bf16.msra.mxu1 %v3807_v38  ;;  %v3902_v38 = vld [vmem:[%s4098_s24 + $0x7f4] ss:$8 sps:$4 sm:$0xff]  }
 0x1b2   : > { %2536 = vmatpush1.bf16.msra.mxu0 %v3810_v61  ;;  %2373 = vmatprep.subr.bf16.mxu1 %v3815_v62  ;;  %v3897_v61 = vld [vmem:[%s4098_s24 + $0x3f0] ss:$8 sps:$4 sm:$0xff]  }
 0x1b3   : > { %2537 = vmatprep.subr.bf16.mxu0 %v3818_v63  ;;  %2403 = vmatprep.mubr.bf16.mxu1 %v902_v0  ;;  %v3900_v62 = vld [vmem:[%s4098_s24 + $0x7f0] ss:$8 sps:$4 sm:$0xff]   ;;  %v900_v63 = vcombine.high %v4212_v47, %v4212_v47  ;;  %v949_v0 = vcombine.high %v4217_v50, %v4217_v50 }
 0x1b4   : > { %2567 = vmatprep.mubr.bf16.mxu0 %v951_v1  ;;  %v3994_v1 = vmov 1983009808  }
 0x1b5   : > { %2374 = vmatpush1.bf16.msra.mxu1 %v3813_v2  ;;  %v2580_v2 = vunpack.c.l.s4 %v3994_v1 }
 0x1b6   : > { %2538 = vmatpush1.bf16.msra.mxu0 %v3816_v3  ;;  %2375 = vmatprep.subr.bf16.mxu1 %v3821_v45 }
 0x1b7   : > { %2539 = vmatprep.subr.bf16.mxu0 %v3824_v4  ;;  %v2581_v3 = vunpack.c.0.s8 %v2580_v2 }
 0x1b9   : > { %2376 = vmatpush1.bf16.msra.mxu1 %v3819_v46 }
 0x1ba   : > { %2540 = vmatpush1.bf16.msra.mxu0 %v3822_v5  ;;  %2377 = vmatprep.subr.bf16.mxu1 %v3827_v6 }
 0x1bb   : > { %2541 = vmatprep.subr.bf16.mxu0 %v3830_v7 }
 0x1bd   : > { %2378 = vmatpush1.bf16.msra.mxu1 %v3825_v8  ;;  %v2584_v8 = vsub.s32 %v2581_v3, %v4152_v60  ;;  %v3905_v60 = vld [vmem:[%s4578_s5 + $0x8] sm:$0xff] (!%p3347_p6)  }
 0x1be   : > { %2542 = vmatpush1.bf16.msra.mxu0 %v3828_v9  ;;  %2379 = vmatprep.subr.bf16.mxu1 %v3833_v10 }
 0x1bf   : > { %2543 = vmatprep.subr.bf16.mxu0 %v3836_v11 }
 0x1c1   : > { %2380 = vmatpush1.bf16.msra.mxu1 %v3831_v12  ;;  %v593_v12 = vld [vmem:[#allocation2] sm:$0xf] }
 0x1c2   : > { %2544 = vmatpush1.bf16.msra.mxu0 %v3834_v13  ;;  %2381 = vmatprep.subr.bf16.mxu1 %v3839_v14 }
 0x1c3   : > { %2545 = vmatprep.subr.bf16.mxu0 %v3842_v15  ;;  %v3904_v15 = vld [vmem:[%s4578_s5] sm:$0xff] (!%p3347_p6)  }
 0x1c5   : > { %2382 = vmatpush1.bf16.msra.mxu1 %v3837_v16  ;;  %v3995_v16 = vmov (!%p3347_p6), 0.0  }
 0x1c6   : > { %2546 = vmatpush1.bf16.msra.mxu0 %v3840_v17  ;;  %2383 = vmatprep.subr.bf16.mxu1 %v3845_v18  ;;  %v3906_v17 = vld [vmem:[%s4578_s5 + $0x10] sm:$0xff] (!%p3347_p6)   ;;  %v3910_v18 = vld [vmem:[%s4580_s7] sm:$0xff] (!%p3347_p6)  }
 0x1c7   : > { %2547 = vmatprep.subr.bf16.mxu0 %v3848_v19  ;;  %v3912_v19 = vld [vmem:[%s4580_s7 + $0x8] sm:$0xff] (!%p3347_p6)  }
 0x1c9   : > { %2384 = vmatpush1.bf16.msra.mxu1 %v3843_v20  ;;  %v3907_v20 = vld [vmem:[%s4578_s5 + $0x18] sm:$0xff] (!%p3347_p6)  }
 0x1ca   : > { %2548 = vmatpush1.bf16.msra.mxu0 %v3846_v21  ;;  %2385 = vmatprep.subr.bf16.mxu1 %v3851_v22  ;;  %v3914_v21 = vld [vmem:[%s4580_s7 + $0x10] sm:$0xff] (!%p3347_p6)   ;;  %v3908_v22 = vld [vmem:[%s4578_s5 + $0x20] sm:$0xff] (!%p3347_p6)  }
 0x1cb   : > { %2549 = vmatprep.subr.bf16.mxu0 %v3854_v23  ;;  %v3915_v23 = vld [vmem:[%s4580_s7 + $0x18] sm:$0xff] (!%p3347_p6)  }
 0x1cd   : > { %2386 = vmatpush1.bf16.msra.mxu1 %v3849_v24  ;;  %v3909_v24 = vld [vmem:[%s4578_s5 + $0x28] sm:$0xff] (!%p3347_p6)  }
 0x1ce   : > { %2550 = vmatpush1.bf16.msra.mxu0 %v3852_v25  ;;  %2387 = vmatprep.subr.bf16.mxu1 %v3857_v26  ;;  %v3916_v26 = vld [vmem:[%s4580_s7 + $0x20] sm:$0xff] (!%p3347_p6)  }
 0x1cf   : > { %2551 = vmatprep.subr.bf16.mxu0 %v3860_v27 }
 0x1d1   : > { %2388 = vmatpush1.bf16.msra.mxu1 %v3855_v28  ;;  %v3911_v28 = vld [vmem:[%s4578_s5 + $0x30] sm:$0xff] (!%p3347_p6)  }
 0x1d2   : > { %2552 = vmatpush1.bf16.msra.mxu0 %v3858_v29  ;;  %2389 = vmatprep.subr.bf16.mxu1 %v3863_v30  ;;  %v3917_v29 = vld [vmem:[%s4580_s7 + $0x28] sm:$0xff] (!%p3347_p6)  }
 0x1d3   : > { %2553 = vmatprep.subr.bf16.mxu0 %v3866_v31  ;;  %v3913_v31 = vld [vmem:[%s4578_s5 + $0x38] sm:$0xff] (!%p3347_p6)  }
 0x1d5   : > { %2390 = vmatpush1.bf16.msra.mxu1 %v3861_v32  ;;  %v3918_v32 = vld [vmem:[%s4580_s7 + $0x30] sm:$0xff] (!%p3347_p6)  }
 0x1d6   : > { %2554 = vmatpush1.bf16.msra.mxu0 %v3864_v33  ;;  %2391 = vmatprep.subr.bf16.mxu1 %v3869_v34  ;;  %v3920_v34 = vld [vmem:[%s4582_s9] sm:$0xff] (!%p3347_p6)  }
 0x1d7   : > { %2555 = vmatprep.subr.bf16.mxu0 %v3872_v35 }
 0x1d9   : > { %2392 = vmatpush1.bf16.msra.mxu1 %v3867_v36  ;;  %v3919_v36 = vld [vmem:[%s4580_s7 + $0x38] sm:$0xff] (!%p3347_p6)  }
 0x1da   : > { %2556 = vmatpush1.bf16.msra.mxu0 %v3870_v39  ;;  %2393 = vmatprep.subr.bf16.mxu1 %v3875_v40  ;;  %v3921_v40 = vld [vmem:[%s4582_s9 + $0x8] sm:$0xff] (!%p3347_p6)  }
 0x1db   : > { %2557 = vmatprep.subr.bf16.mxu0 %v3878_v41  ;;  %v3922_v41 = vld [vmem:[%s4584_s11] sm:$0xff] (!%p3347_p6)  }
 0x1dd   : > { %2394 = vmatpush1.bf16.msra.mxu1 %v3873_v42  ;;  %v3923_v42 = vld [vmem:[%s4584_s11 + $0x8] sm:$0xff] (!%p3347_p6)  }
 0x1de   : > { %2558 = vmatpush1.bf16.msra.mxu0 %v3876_v43  ;;  %2395 = vmatprep.subr.bf16.mxu1 %v3881_v44  ;;  %v3348_v43 = vld [vmem:[%s4579_s6] ss:$0 sm:$0xff] (!%p3347_p6) }
 0x1df   : > { %2559 = vmatprep.subr.bf16.mxu0 %v3884_v48 }
 0x1e1   : > { %2396 = vmatpush1.bf16.msra.mxu1 %v3879_v49 }
 0x1e2   : > { %2560 = vmatpush1.bf16.msra.mxu0 %v3882_v51  ;;  %2397 = vmatprep.subr.bf16.mxu1 %v3887_v52 }
 0x1e3   : > { %2561 = vmatprep.subr.bf16.mxu0 %v3890_v53 }
 0x1e5   : > { %2398 = vmatpush1.bf16.msra.mxu1 %v3885_v54  ;;  %v3357_v54 = vld [vmem:[%s4581_s8] ss:$0 sm:$0xff] (!%p3347_p6) }
 0x1e6   : > { %2562 = vmatpush1.bf16.msra.mxu0 %v3888_v55  ;;  %2399 = vmatprep.subr.bf16.mxu1 %v3893_v56 }
 0x1e7   : > { %2563 = vmatprep.subr.bf16.mxu0 %v3896_v57 }
 0x1e9   : > { %2400 = vmatpush1.bf16.msra.mxu1 %v3891_v58 }
 0x1ea   : > { %2564 = vmatpush1.bf16.msra.mxu0 %v3894_v59  ;;  %2401 = vmatprep.subr.bf16.mxu1 %v3899_v37 }
 0x1eb   : > { %2565 = vmatprep.subr.bf16.mxu0 %v3902_v38 }
 0x1ed   : > { %2402 = vmatpush1.bf16.msra.mxu1 %v3897_v61 }
 0x1ee   : > { %2566 = vmatpush1.bf16.msra.mxu0 %v3900_v62  ;;  %3425 = vmatprep.subr.bf16.mxu1 (!%p3347_p6), %v3995_v16  ;;  %v3997_v62 = vmov (!%p3347_p6), 0  }
 0x1ef   : > { %3405 = vmatprep.subr.bf16.mxu0 (!%p3347_p6), %v3995_v16  ;;  %3903 = vset.pattern.permute.xlu0 (!%p3347_p6), %v3997_v62 }
 0x1f0   : > { %2404 = vmatmul.mubr.bf16.vlgmr.msra.gmra.mrb[0].mxu1 %v900_v63  ;;  %v3366_v63 = vld [vmem:[%s4583_s10] ss:$0 sm:$0xff] (!%p3347_p6) }
 0x1f1   : > { %2568 = vmatmul.mubr.bf16.vlgmr.msra.gmra.mrb[0].mxu0 %v949_v0  ;;  %3441 = vmatprep.mubr.msk.bf16.mxu1 (!%p3347_p6), %vm3996_vm2, %v3995_v16 }
 0x1f2   : > { %3406 = vmatpush3.bf16.msra.mxu0 (!%p3347_p6), %v3904_v15  ;;  %3421 = vmatprep.mubr.msk.bf16.mxu0 (!%p3347_p6), %vm3996_vm2, %v3995_v16 }
 0x1f3   : > { %3407 = vmatprep.subr.bf16.mxu0 (!%p3347_p6), %v3995_v16  ;;  %3426 = vmatpush3.bf16.msra.mxu1 (!%p3347_p6), %v3910_v18 }
 0x1f4   : > { %3427 = vmatprep.subr.bf16.mxu1 (!%p3347_p6), %v3995_v16 }
 0x1f6   : > { %3408 = vmatpush3.bf16.msra.mxu0 (!%p3347_p6), %v3905_v60 }
 0x1f7   : > { %3409 = vmatprep.subr.bf16.mxu0 (!%p3347_p6), %v3995_v16  ;;  %3428 = vmatpush3.bf16.msra.mxu1 (!%p3347_p6), %v3912_v19 }
 0x1f8   : > { %3429 = vmatprep.subr.bf16.mxu1 (!%p3347_p6), %v3995_v16 }
 0x1fa   : > { %3410 = vmatpush3.bf16.msra.mxu0 (!%p3347_p6), %v3906_v17 }
 0x1fb   : > { %3411 = vmatprep.subr.bf16.mxu0 (!%p3347_p6), %v3995_v16  ;;  %3430 = vmatpush3.bf16.msra.mxu1 (!%p3347_p6), %v3914_v21 }
 0x1fc   : > { %3431 = vmatprep.subr.bf16.mxu1 (!%p3347_p6), %v3995_v16 }
 0x1fe   : > { %3412 = vmatpush3.bf16.msra.mxu0 (!%p3347_p6), %v3907_v20 }
 0x1ff   : > { %3413 = vmatprep.subr.bf16.mxu0 (!%p3347_p6), %v3995_v16  ;;  %3432 = vmatpush3.bf16.msra.mxu1 (!%p3347_p6), %v3915_v23 }
 0x200   : > { %3433 = vmatprep.subr.bf16.mxu1 (!%p3347_p6), %v3995_v16 }
 0x202   : > { %3414 = vmatpush3.bf16.msra.mxu0 (!%p3347_p6), %v3908_v22 }
 0x203   : > { %3415 = vmatprep.subr.bf16.mxu0 (!%p3347_p6), %v3995_v16  ;;  %3434 = vmatpush3.bf16.msra.mxu1 (!%p3347_p6), %v3916_v26 }
 0x204   : > { %3435 = vmatprep.subr.bf16.mxu1 (!%p3347_p6), %v3995_v16 }
 0x206   : > { %3416 = vmatpush3.bf16.msra.mxu0 (!%p3347_p6), %v3909_v24 }
 0x207   : > { %3417 = vmatprep.subr.bf16.mxu0 (!%p3347_p6), %v3995_v16  ;;  %3436 = vmatpush3.bf16.msra.mxu1 (!%p3347_p6), %v3917_v29 }
 0x208   : > { %3437 = vmatprep.subr.bf16.mxu1 (!%p3347_p6), %v3995_v16 }
 0x20a   : > { %3418 = vmatpush3.bf16.msra.mxu0 (!%p3347_p6), %v3911_v28 }
 0x20b   : > { %3419 = vmatprep.subr.bf16.mxu0 (!%p3347_p6), %v3995_v16  ;;  %3438 = vmatpush3.bf16.msra.mxu1 (!%p3347_p6), %v3918_v32 }
 0x20c   : > { %3439 = vmatprep.subr.bf16.mxu1 (!%p3347_p6), %v3995_v16 }
 0x20e   : > { %3420 = vmatpush3.bf16.msra.mxu0 (!%p3347_p6), %v3913_v31 }
 0x20f   : > { %3445 = vmatprep.subr.bf16.mxu0 (!%p3347_p6), %v3995_v16  ;;  %3440 = vmatpush3.bf16.msra.mxu1 (!%p3347_p6), %v3919_v36 }
 0x210   : > { %3453 = vmatprep.subr.bf16.mxu1 (!%p3347_p6), %v3995_v16 }
 0x2c3   : > { %v2405_v45 = vpop.f32.mrb[0].mxu1 }
 0x2c4   : > { %v2569_v4 = vpop.f32.mrb[0].mxu0  ;;  %v2407_v5 = vpop.f32.mrb[1].mxu1 }
 0x2c5   : > { %v3461_v46 = vadd.f32 %v2569_v4, %v2405_v45  ;;  %v2571_v6 = vpop.f32.mrb[1].mxu0  ;;  %v2409_v9 = vpop.f32.mrb[2].mxu1 }
 0x2c6   : > { %v3462_v7 = vadd.f32 %v2571_v6, %v2407_v5  ;;  %v2573_v47 = vpop.f32.mrb[2].mxu0  ;;  %v2410_v10 = vpop.f32.mrb[3].mxu1 }
 0x2c7   : > { %v2574_v11 = vpop.f32.mrb[3].mxu0 }
 0x2c8   : > { %v2578_v50 = vcombine.low %v3461_v46, %v3462_v7  ;;  %2592 = sbr.rel (%p3347_p6) target bundleno = 1531 (0x5fb), region = 80 }
 0x2ca   : > { %v2585_v13 = vrot.slane %v2578_v50, %v2584_v8 }
 0x2cc   : > { %v2587_v14 = vadd.f32 %v2585_v13, %v593_v12 }
 0x2ce   : > { %2588 = vst [vmem:[#allocation2] sm:$0xf] %v2587_v14 }
 0x2d5   : > { %v2593_v25 = vld [vmem:[#allocation2] sm:$0xf] }
 0x2d6   : > { %v2594_v27 = vmax.f32 %v2593_v25, 0.0 }
 0x2d8   : > { %v2602_v30 = vrot.slane %v2594_v27, %v2584_v8  ;;  %v3370_v8 = vld [vmem:[#allocation3] ss:$0 sm:$0xff] }
 0x2da   : > { %v2606_v33 = vpack.c.bf16 %v2602_v30, %v2602_v30  ;;  %v2603_v35 = vcombine.high %v2602_v30, %v2602_v30 }
 0x2dc   : > { %3422 = vmatmul.mubr.bf16.vlgmr.msra.gmra.mrb[0].mxu0 %v2606_v33  ;;  %v2607_v39 = vpack.c.bf16 %v2603_v35, %v2603_v35 }
 0x2dd   : > { %3446 = vmatpush3.bf16.msra.mxu0 %v3920_v34  ;;  %3449 = vmatprep.mubr.msk.bf16.mxu0 %vm3996_vm2, %v3995_v16 }
 0x2de   : > { %3447 = vmatprep.subr.bf16.mxu0 %v3995_v16  ;;  %3442 = vmatmul.mubr.bf16.vlgmr.msra.gmra.mrb[0].mxu1 %v2607_v39 }
 0x2df   : > { %3457 = vmatprep.mubr.msk.bf16.mxu1 %vm3996_vm2, %v3995_v16  ;;  %3454 = vmatpush3.bf16.msra.mxu1 %v3922_v41 }
 0x2e0   : > { %3455 = vmatprep.subr.bf16.mxu1 %v3995_v16 }
 0x2e1   : > { %3448 = vmatpush3.bf16.msra.mxu0 %v3921_v40 }
 0x2e3   : > { %3456 = vmatpush3.bf16.msra.mxu1 %v3923_v42 }
 0x3af   : > { %v2713_v44 = vpop.f32.mrb[0].mxu0 }
 0x3b0   : > { %v2714_v48 = vadd.f32 %v3348_v43, %v2713_v44  ;;  %v3423_v49 = vpop.f32.mrb[1].mxu0 }
 0x3b1   : > { %v2716_v51 = vpop.f32.mrb[2].mxu0  ;;  %v2826_v56 = vpop.f32.mrb[0].mxu1 }
 0x3b2   : > { %v2719_v52 = vmax.f32 %v2714_v48, 0.0  ;;  %v3424_v53 = vpop.f32.mrb[3].mxu0  ;;  %v2827_v57 = vadd.f32 %v3357_v54, %v2826_v56  ;;  %v3443_v58 = vpop.f32.mrb[1].mxu1 }
 0x3b3   : > { %v2829_v59 = vpop.f32.mrb[2].mxu1 }
 0x3b4   : > { %v2720_v55 = vpack.c.bf16 %v2719_v52, %v2719_v52  ;;  %v2832_v37 = vmax.f32 %v2827_v57, 0.0  ;;  %v3444_v38 = vpop.f32.mrb[3].mxu1 }
 0x3b6   : > { %3450 = vmatmul.mubr.msk.bf16.vlgmr.msra.gmra.mrb[4].mxu0 %vm2857_vm3, %v2720_v55  ;;  %v2833_v61 = vpack.c.bf16 %v2832_v37, %v2832_v37 }
 0x3b8   : > { %3458 = vmatmul.mubr.msk.bf16.vlgmr.msra.gmra.mrb[4].mxu1 %vm2857_vm3, %v2833_v61 }
 0x489   : > { %v2895_v0 = vpop.f32.mrb[4].mxu0 }
 0x48a   : > { %v2896_v1 = vadd.f32 %v3366_v63, %v2895_v0  ;;  %v3451_v2 = vpop.f32.mrb[5].mxu0 }
 0x48b   : > { %v2898_v3 = vpop.f32.mrb[6].mxu0  ;;  %v2961_v46 = vpop.f32.mrb[4].mxu1 }
 0x48c   : > { %v3452_v45 = vpop.f32.mrb[7].mxu0  ;;  %v2968_v4 = vsel %vm2967_vm4, %v2896_v1, 0.0  ;;  %v3459_v5 = vpop.f32.mrb[5].mxu1  ;;  %v2962_v9 = vadd.f32 %v3370_v8, %v2961_v46 }
 0x48d   : > { %2969 = vadd.xlane.f32.xlu0 %v2968_v4  ;;  %v2964_v6 = vpop.f32.mrb[6].mxu1 }
 0x48e   : > { %v3460_v7 = vpop.f32.mrb[7].mxu1 }
 0x4a3   : > { %2981 = vperm.xlu0 %3903, %v2962_v9  }
 0x51a   : > { %v2970_v47 = vpop.xlane.xlu0 %2969 }
 0x51b   : > { %v2971_v10 = vrot.slane %v2970_v47, 4 }
 0x51d   : > { %v2972_v11 = vadd.f32 %v2971_v10, %v2970_v47 }
 0x51f   : > { %v2973_v50 = vrot.slane %v2972_v11, 2 }
 0x521   : > { %v2974_v12 = vadd.f32 %v2973_v50, %v2972_v11 }
 0x522   : > { %v2982_v15 = vpop.permute.xlu0 %2981 }
 0x523   : > { %v2975_v13 = vrot.slane %v2974_v12, 1  ;;  %v2984_v16 = vadd.f32 %v2982_v15, %v2896_v1 }
 0x525   : > { %v2976_v14 = vadd.f32 %v2975_v13, %v2974_v12 }
 0x527   : > { %3487 = vpush %v2976_v14 }
 0x558   : > { %s3488_s19 = spop %3487 }
 0x559   : > { %s2978_s20 = smul.f32 0.029411765, %s3488_s19 }
 0x55b   : > { %v2985_v60 = vstv %s2978_s20 }
 0x55c   : > { %v2986_v17 = vsub.f32 %v2984_v16, %v2985_v60 }
 0x55e   : > { %2987 = vst.msk [vmem:[#allocation4] sm:$0x3] %vm2967_vm4, %v2986_v17  ;;  %v2988_v18 = vsel %vm2967_vm4, %v2986_v17, -inf }
 0x55f   : > { %2989 = vmax.xlane.f32.xlu1 %v2988_v18 }
 0x5ec   : > { %v2990_v19 = vpop.xlane.xlu1 %2989 }
 0x5ed   : > { %v2992_v20 = vsel %vm2991_vm5, %v2990_v19, -inf }
 0x5ee   : > { %v2993_v21 = vrot.slane %v2992_v20, 4 }
 0x5f0   : > { %v2994_v22 = vmax.f32 %v2992_v20, %v2993_v21 }
 0x5f2   : > { %v2995_v23 = vrot.slane %v2994_v22, 2 }
 0x5f4   : > { %v2996_v24 = vmax.f32 %v2994_v22, %v2995_v23 }
 0x5f6   : > { %v2997_v25 = vrot.slane %v2996_v24, 1 }
 0x5f8   : > { %v2998_v26 = vmax.f32 %v2996_v24, %v2997_v25 }
 0x5fa   : > { %3000 = vst.msk [vmem:[#allocation6] sm:$0x1] %vm2999_vm6, %v2998_v26 }
 0x5fb PF: > { %p3497_p7 = scmp.eq.s32.totalorder %s4084_s16, 3  ;;  %s3998_s21 = smov [#allocation4]  }
 0x5fc   : > { %s3008_s22 = sshll.u32 %s3998_s21, 4  ;;  %s3999_s23 = smov [#allocation6]   ;;  %s3009_s22 = int_to_ptr.vmem [resolvable:$true] %s3008_s22 }
 0x5fd   : > { %s3019_s24 = sshll.u32 %s3999_s23, 4  ;;  %s3924_s25 = scalar_lea.vmem %s3009_s22, 32  ;;  %s3020_s24 = int_to_ptr.vmem [resolvable:$true] %s3019_s24 }
 0x5fe   : > { %p3925_p8 = scmp.ne.s32.totalorder %s3009_s22, %s3924_s25  ;;  %p3931_p11 = scmp.lt.s32.totalorder %s3009_s22, %s3009_s22 }
 0x5ff   : > { %p3932_p12 = scmp.lt.s32.totalorder %s3924_s25, %s3924_s25 }
 0x600   : > { %p3926_p9 = pnand %p3925_p8, %p3497_p7 }
 0x601   : > { %p3933_p13 = por %p3932_p12, %p3931_p11 }
 0x602   : > { %p3927_p10 = pneg %p3926_p9 }
 0x604   : > { %p3934_p0 = pnand %p3933_p13, %p3927_p10 }
 0x606   : > { %3937 = shalt.err (!%p3934_p0)
}
 0x607   : > { %s3938_s28 = scalar_lea.hbm %s4586_s13, 32 }
 0x608   : > { %p3939_p1 = scmp.ne.s32.totalorder %s4586_s13, %s3938_s28  ;;  %p3944_p4 = scmp.lt.u32.totalorder %s3938_s28, %s4586_s13 }
 0x60a   : > { %p3940_p2 = pnand %p3939_p1, %p3497_p7 }
 0x60c   : > { %p3941_p3 = pneg %p3940_p2 }
 0x60e   : > { %p3946_p5 = pnand %p3944_p4, %p3941_p3 }
 0x610   : > { %3949 = shalt.err (!%p3946_p5)
}
 0x611   : > { %3490 = dma.vmem_to_hbm [thread:$0]  (%p3497_p7), %s3009_s22, 32, %s4586_s13, [#allocation5]  }
 0x612   : > { %s3950_s20 = scalar_lea.vmem %s3020_s24, 16  ;;  %s3956_s21 = scalar_lea.vmem %s3020_s24, 32 }
 0x613   : > { %p3951_p6 = scmp.ne.s32.totalorder %s3020_s24, %s3950_s20  ;;  %p3957_p10 = scmp.lt.s32.totalorder %s3020_s24, %s3020_s24 }
 0x614   : > { %p3958_p11 = scmp.lt.s32.totalorder %s3956_s21, %s3950_s20 }
 0x615   : > { %p3952_p8 = pnand %p3951_p6, %p3497_p7 }
 0x616   : > { %p3959_p12 = por %p3958_p11, %p3957_p10 }
 0x617   : > { %p3953_p9 = pneg %p3952_p8 }
 0x619   : > { %p3960_p13 = pnand %p3959_p12, %p3953_p9 }
 0x61b   : > { %3963 = shalt.err (!%p3960_p13)
}
 0x61c   : > { %s3964_s26 = scalar_lea.hbm %s4587_s14, 16 }
 0x61d   : > { %p3965_p0 = scmp.ne.s32.totalorder %s4587_s14, %s3964_s26  ;;  %p3970_p3 = scmp.lt.u32.totalorder %s3964_s26, %s4587_s14 }
 0x61f   : > { %p3966_p1 = pnand %p3965_p0, %p3497_p7 }
 0x621   : > { %p3967_p2 = pneg %p3966_p1 }
 0x623   : > { %p3972_p4 = pnand %p3970_p3, %p3967_p2 }
 0x625   : > { %3975 = shalt.err (!%p3972_p4)
}
 0x626   : > { %3492 = dma.vmem_to_hbm [thread:$0]  (%p3497_p7), %s3020_s24, 16, %s4587_s14, [#allocation7]  }
 0x627   : > { %3981 = dma.done.wait (%p3497_p7), [#allocation5], 32  }
 0x628   : > { %3983 = vsyncadd (%p3497_p7), [#allocation5], 4294967264 }
 0x629   : > { %3985 = dma.done.wait (%p3497_p7), [#allocation7], 16  }
 0x62a   : > { %3987 = vsyncadd (%p3497_p7), [#allocation7], 4294967280 }
 0x62b PF: > { %s29_s15 = sadd.s32 1, %s3990_s15  }
 0x62c   : > { %p26_p5 = scmp.ge.s32.totalorder %s29_s15, 6  }
 0x62e   :  { %28 = sbr.rel (!%p26_p5) target bundleno = 5 (0x5), region = 118 }
 0x635   :  { %3036 = vsyncpa [#allocation5], 1 }
 0x636   :  { %3038 = vsyncpa [#allocation5 + $0x1], 1 }
 0x637   :  { %3039 = vsyncpa [#allocation7], 1 }

// kernel: cnn_forward.2
= control target key start
LH: loop header
LB: loop body
LE: loop exit
PB: predicated region body
PF: predicated region fallthrough
CT: control target
= control target key end

     0   :  { %s10545_s30 = smov 0   ;;  %s12485_s0 = inlined_call_operand.vmem [shape: bf16[2,256,64], index: 0, kind: input, shape index: {}]   ;;  %s12486_s1 = inlined_call_operand.vmem [shape: bf16[64,32], index: 1, kind: input, shape index: {}]   ;;  %s12487_s2 = inlined_call_operand.vmem [shape: f32[1,32], index: 2, kind: input, shape index: {}]   ;;  %s12488_s3 = inlined_call_operand.vmem [shape: bf16[1536,256], index: 3, kind: input, shape index: {}]   ;;  %s12489_s4 = inlined_call_operand.vmem [shape: bf16[16,32,64], index: 4, kind: input, shape index: {}]   ;;  %s12490_s5 = inlined_call_operand.vmem [shape: f32[1,64], index: 5, kind: input, shape index: {}]   ;;  %s12491_s6 = inlined_call_operand.vmem [shape: bf16[1152,96], index: 6, kind: input, shape index: {}]   ;;  %s12492_s7 = inlined_call_operand.vmem [shape: bf16[9,64,64], index: 7, kind: input, shape index: {}]   ;;  %s12493_s8 = inlined_call_operand.vmem [shape: f32[1,64], index: 8, kind: input, shape index: {}]   ;;  %s12494_s9 = inlined_call_operand.vmem [shape: bf16[2,128,64], index: 9, kind: output, shape index: {}]  }
   0x1 LB: > { %s7927_s10 = sadd.s32 4294967295, %s10492_s30   ;;  %p7931_p0 = scmp.ge.s32.totalorder %s10492_s30, 1  ;;  %s10492_s30 = sphi %s10545_s30, %s19_s30  }
   0x2   : > { %p287_p1 = scmp.lt.s32.totalorder %s10492_s30, 3 }
   0x4   : > { %p288_p2 = pnand %p7931_p0, %p287_p1 }
   0x6   : > { %291 = sbr.rel (%p288_p2) target bundleno = 2271 (0x8df), region = 56 }
   0xd   : > { %v10038_v0 = vld [vmem:[%s12486_s1] sm:$0xff]   ;;  %p323_p3 = scmp.lt.s32.totalorder %s7927_s10, 1  ;;  %v10039_v1 = vld [vmem:[%s12486_s1 + $0x8] sm:$0xff]   ;;  %v10040_v2 = vld [vmem:[%s12486_s1 + $0x10] sm:$0xff]   ;;  %vm485_vm0 = vcmask 523264   ;;  %v10494_v20 = vmov 0  }
   0xe   : > { %9041 = vmatprep.subr.bf16.mxu0 %v10038_v0  ;;  %v10041_v4 = vld [vmem:[%s12486_s1 + $0x18] sm:$0xff]   ;;  %1895 = vmatprep.subr.bf16.mxu1 %v10494_v20  ;;  %v10060_v21 = vld [vmem:[%s12488_s3 + $0x4] ss:$8 sps:$4 sm:$0xff]   ;;  %v10612_v22 = vld [vmem:[%s12487_s2] ss:$0 sm:$0xff]  ;;  %vm2813_vm1 = vcmask 261120  }
   0xf   : > { %s12540_s10 = smov (!%p323_p3, %s7927_s10), 1  ;;  %9042 = vmatpush3.bf16.msra.mxu0 %v10038_v0  ;;  %1927 = vmatprep.mubr.bf16.mxu1 %v10060_v21  ;;  %vm5357_vm2 = vcmask 785408   ;;  %vm7855_vm3 = vcmask 519168  }
  0x10   : > { %9043 = vmatprep.subr.bf16.mxu0 %v10039_v1  ;;  %s8689_s17 = sshll.u32 %s12540_s10, 7  ;;  %s8690_s28 = sshll.u32 %s12540_s10, 6 }
  0x11   : > { %s10568_s20 = scalar_lea.vmem %s12485_s0, %s8689_s17  ;;  %s12435_s12 = scalar_lea.vmem %s12494_s9, %s8690_s28 }
  0x12   : > { %v10042_v3 = vld [vmem:[%s10568_s20] sm:$0xff]   ;;  %v10043_v5 = vld [vmem:[%s10568_s20 + $0x8] sm:$0xff]   ;;  %v10044_v6 = vld [vmem:[%s10568_s20 + $0x10] sm:$0xff]  }
  0x13   : > { %9044 = vmatpush3.bf16.msra.mxu0 %v10039_v1  ;;  %9049 = vmatprep.mubr.msk.bf16.mxu0 %vm485_vm0, %v10042_v3  ;;  %v10045_v7 = vld [vmem:[%s10568_s20 + $0x18] sm:$0xff]   ;;  %v10046_v8 = vld [vmem:[%s10568_s20 + $0x20] sm:$0xff]   ;;  %v10047_v9 = vld [vmem:[%s10568_s20 + $0x28] sm:$0xff]  }
  0x14   : > { %9045 = vmatprep.subr.bf16.mxu0 %v10040_v2  ;;  %v10048_v10 = vld [vmem:[%s10568_s20 + $0x30] sm:$0xff]   ;;  %v10049_v11 = vld [vmem:[%s10568_s20 + $0x38] sm:$0xff]   ;;  %v10050_v12 = vld [vmem:[%s10568_s20 + $0x40] sm:$0xff]  }
  0x15   : > { %v10051_v13 = vld [vmem:[%s10568_s20 + $0x48] sm:$0xff]   ;;  %v10052_v14 = vld [vmem:[%s10568_s20 + $0x50] sm:$0xff]   ;;  %v10053_v15 = vld [vmem:[%s10568_s20 + $0x58] sm:$0xff]  }
  0x16   : > { %v10054_v16 = vld [vmem:[%s10568_s20 + $0x60] sm:$0xff]   ;;  %v10055_v17 = vld [vmem:[%s10568_s20 + $0x68] sm:$0xff]   ;;  %v10056_v18 = vld [vmem:[%s10568_s20 + $0x70] sm:$0xff]  }
  0x17   : > { %9046 = vmatpush3.bf16.msra.mxu0 %v10040_v2  ;;  %v10057_v19 = vld [vmem:[%s10568_s20 + $0x78] sm:$0xff]  }
  0x18   : > { %9047 = vmatprep.subr.bf16.mxu0 %v10041_v4 }
  0x1b   : > { %9048 = vmatpush3.bf16.msra.mxu0 %v10041_v4 }
  0x1e   : > { %9050 = vmatmul.mubr.msk.bf16.vlgmr.msra.gmra.mrb[0].mxu0 %vm485_vm0, %v10043_v5 }
  0x1f   : > { %9053 = vmatprep.mubr.msk.bf16.mxu0 %vm485_vm0, %v10044_v6 }
  0x26   : > { %9054 = vmatmul.mubr.msk.bf16.gmra.mrb[4].mxu0 %vm485_vm0, %v10045_v7 }
  0x27   : > { %9057 = vmatprep.mubr.msk.bf16.mxu0 %vm485_vm0, %v10046_v8 }
  0x2e   : > { %9058 = vmatmul.mubr.msk.bf16.gmra.mrb[8].mxu0 %vm485_vm0, %v10047_v9 }
  0x2f   : > { %9061 = vmatprep.mubr.msk.bf16.mxu0 %vm485_vm0, %v10048_v10 }
  0x36   : > { %9062 = vmatmul.mubr.msk.bf16.gmra.mrb[12].mxu0 %vm485_vm0, %v10049_v11 }
  0x37   : > { %9065 = vmatprep.mubr.msk.bf16.mxu0 %vm485_vm0, %v10050_v12 }
  0x3e   : > { %9066 = vmatmul.mubr.msk.bf16.gmra.mrb[16].mxu0 %vm485_vm0, %v10051_v13 }
  0x3f   : > { %9069 = vmatprep.mubr.msk.bf16.mxu0 %vm485_vm0, %v10052_v14 }
  0x46   : > { %9070 = vmatmul.mubr.msk.bf16.gmra.mrb[20].mxu0 %vm485_vm0, %v10053_v15 }
  0x47   : > { %9073 = vmatprep.mubr.msk.bf16.mxu0 %vm485_vm0, %v10054_v16 }
  0x4e   : > { %9074 = vmatmul.mubr.msk.bf16.gmra.mrb[24].mxu0 %vm485_vm0, %v10055_v17 }
  0x4f   : > { %9077 = vmatprep.mubr.msk.bf16.mxu0 %vm485_vm0, %v10056_v18 }
  0x56   : > { %9078 = vmatmul.mubr.msk.bf16.gmra.mrb[28].mxu0 %vm485_vm0, %v10057_v19 }
  0xf1   : > { %v9051_v23 = vpop.f32.mrb[0].mxu0 }
  0xf2   : > { %v577_v24 = vadd.f32 %v9051_v23, %v10612_v22  ;;  %v568_v25 = vpop.f32.mrb[1].mxu0 }
  0xf3   : > { %v569_v26 = vadd.f32 %v10612_v22, %v568_v25  ;;  %v9052_v27 = vpop.f32.mrb[2].mxu0 }
  0xf4   : > { %v580_v28 = vadd.f32 %v9052_v27, %v10612_v22  ;;  %v571_v29 = vpop.f32.mrb[3].mxu0  ;;  %v697_v31 = vmax.f32 %v577_v24, 0.0 }
  0xf5   : > { %v572_v30 = vadd.f32 %v10612_v22, %v571_v29  ;;  %v695_v33 = vmax.f32 %v569_v26, 0.0 }
  0xf6   : > { %v698_v32 = vmax.f32 %v580_v28, 0.0 }
  0xf7   : > { %v696_v34 = vmax.f32 %v572_v30, 0.0 }
  0xf8   : > { %v728_v35 = vpack.c.bf16 %v698_v32, %v697_v31 }
  0xf9   : > { %v9055_v36 = vpop.f32.mrb[4].mxu0  ;;  %v727_v37 = vpack.c.bf16 %v696_v34, %v695_v33 }
  0xfa   : > { %v593_v38 = vadd.f32 %v9055_v36, %v10612_v22  ;;  %v584_v39 = vpop.f32.mrb[5].mxu0 }
  0xfb   : > { %v585_v40 = vadd.f32 %v10612_v22, %v584_v39  ;;  %v9056_v41 = vpop.f32.mrb[6].mxu0  ;;  %1896 = vmatpush1.bf16.msra.mxu1 %v727_v37 }
  0xfc   : > { %v596_v42 = vadd.f32 %v9056_v41, %v10612_v22  ;;  %v587_v43 = vpop.f32.mrb[7].mxu0  ;;  %1897 = vmatprep.subr.bf16.mxu1 %v10494_v20  ;;  %v701_v45 = vmax.f32 %v593_v38, 0.0 }
  0xfd   : > { %v588_v44 = vadd.f32 %v10612_v22, %v587_v43  ;;  %v699_v47 = vmax.f32 %v585_v40, 0.0 }
  0xfe   : > { %v702_v46 = vmax.f32 %v596_v42, 0.0 }
  0xff   : > { %v700_v48 = vmax.f32 %v588_v44, 0.0  ;;  %1898 = vmatpush1.bf16.msra.mxu1 %v728_v35 }
 0x100   : > { %v730_v49 = vpack.c.bf16 %v702_v46, %v701_v45  ;;  %1899 = vmatprep.subr.bf16.mxu1 %v10494_v20 }
 0x101   : > { %v729_v50 = vpack.c.bf16 %v700_v48, %v699_v47  ;;  %v9059_v51 = vpop.f32.mrb[8].mxu0 }
 0x102   : > { %v609_v52 = vadd.f32 %v9059_v51, %v10612_v22  ;;  %v600_v53 = vpop.f32.mrb[9].mxu0 }
 0x103   : > { %v601_v54 = vadd.f32 %v10612_v22, %v600_v53  ;;  %v9060_v55 = vpop.f32.mrb[10].mxu0  ;;  %1900 = vmatpush1.bf16.msra.mxu1 %v729_v50 }
 0x104   : > { %v612_v56 = vadd.f32 %v9060_v55, %v10612_v22  ;;  %v603_v57 = vpop.f32.mrb[11].mxu0  ;;  %1901 = vmatprep.subr.bf16.mxu1 %v10494_v20  ;;  %v705_v59 = vmax.f32 %v609_v52, 0.0 }
 0x105   : > { %v604_v58 = vadd.f32 %v10612_v22, %v603_v57  ;;  %v703_v61 = vmax.f32 %v601_v54, 0.0 }
 0x106   : > { %v706_v60 = vmax.f32 %v612_v56, 0.0 }
 0x107   : > { %v704_v62 = vmax.f32 %v604_v58, 0.0  ;;  %1902 = vmatpush1.bf16.msra.mxu1 %v730_v49 }
 0x108   : > { %v732_v63 = vpack.c.bf16 %v706_v60, %v705_v59  ;;  %1903 = vmatprep.subr.bf16.mxu1 %v10494_v20 }
 0x109   : > { %v731_v0 = vpack.c.bf16 %v704_v62, %v703_v61  ;;  %v9063_v1 = vpop.f32.mrb[12].mxu0 }
 0x10a   : > { %v625_v2 = vadd.f32 %v9063_v1, %v10612_v22  ;;  %v616_v3 = vpop.f32.mrb[13].mxu0 }
 0x10b   : > { %v617_v4 = vadd.f32 %v10612_v22, %v616_v3  ;;  %v9064_v5 = vpop.f32.mrb[14].mxu0  ;;  %1904 = vmatpush1.bf16.msra.mxu1 %v731_v0 }
 0x10c   : > { %v628_v6 = vadd.f32 %v9064_v5, %v10612_v22  ;;  %v619_v7 = vpop.f32.mrb[15].mxu0  ;;  %1905 = vmatprep.subr.bf16.mxu1 %v10494_v20  ;;  %v709_v9 = vmax.f32 %v625_v2, 0.0 }
 0x10d   : > { %v620_v8 = vadd.f32 %v10612_v22, %v619_v7  ;;  %v707_v11 = vmax.f32 %v617_v4, 0.0 }
 0x10e   : > { %v710_v10 = vmax.f32 %v628_v6, 0.0 }
 0x10f   : > { %v708_v12 = vmax.f32 %v620_v8, 0.0  ;;  %1906 = vmatpush1.bf16.msra.mxu1 %v732_v63 }
 0x110   : > { %v734_v13 = vpack.c.bf16 %v710_v10, %v709_v9  ;;  %1907 = vmatprep.subr.bf16.mxu1 %v10494_v20  ;;  %v10058_v9 = vld [vmem:[%s12488_s3] ss:$8 sps:$4 sm:$0xff]   ;;  %v10063_v10 = vld [vmem:[%s12488_s3 + $0x10] ss:$8 sps:$4 sm:$0xff]  }
 0x111   : > { %v733_v14 = vpack.c.bf16 %v708_v12, %v707_v11  ;;  %v9067_v15 = vpop.f32.mrb[16].mxu0  ;;  %v10064_v11 = vld [vmem:[%s12488_s3 + $0x24] ss:$8 sps:$4 sm:$0xff]   ;;  %v10067_v12 = vld [vmem:[%s12488_s3 + $0x34] ss:$8 sps:$4 sm:$0xff]  }
 0x112   : > { %v641_v16 = vadd.f32 %v9067_v15, %v10612_v22  ;;  %v632_v17 = vpop.f32.mrb[17].mxu0  ;;  %v10072_v15 = vld [vmem:[%s12488_s3 + $0x40] ss:$8 sps:$4 sm:$0xff]  }
 0x113   : > { %v633_v18 = vadd.f32 %v10612_v22, %v632_v17  ;;  %v9068_v19 = vpop.f32.mrb[18].mxu0  ;;  %1908 = vmatpush1.bf16.msra.mxu1 %v733_v14  ;;  %v10070_v14 = vld [vmem:[%s12488_s3 + $0x44] ss:$8 sps:$4 sm:$0xff]   ;;  %v10075_v17 = vld [vmem:[%s12488_s3 + $0x50] ss:$8 sps:$4 sm:$0xff]  }
 0x114   : > { %v644_v21 = vadd.f32 %v9068_v19, %v10612_v22  ;;  %v635_v23 = vpop.f32.mrb[19].mxu0  ;;  %1909 = vmatprep.subr.bf16.mxu1 %v10494_v20  ;;  %v713_v25 = vmax.f32 %v641_v16, 0.0  ;;  %v10073_v16 = vld [vmem:[%s12488_s3 + $0x54] ss:$8 sps:$4 sm:$0xff]   ;;  %v10078_v19 = vld [vmem:[%s12488_s3 + $0x60] ss:$8 sps:$4 sm:$0xff]  }
 0x115   : > { %v636_v24 = vadd.f32 %v10612_v22, %v635_v23  ;;  %v711_v27 = vmax.f32 %v633_v18, 0.0  ;;  %v10076_v18 = vld [vmem:[%s12488_s3 + $0x64] ss:$8 sps:$4 sm:$0xff]   ;;  %v10081_v23 = vld [vmem:[%s12488_s3 + $0x70] ss:$8 sps:$4 sm:$0xff]  }
 0x116   : > { %v714_v26 = vmax.f32 %v644_v21, 0.0  ;;  %v10079_v21 = vld [vmem:[%s12488_s3 + $0x74] ss:$8 sps:$4 sm:$0xff]  }
 0x117   : > { %v712_v28 = vmax.f32 %v636_v24, 0.0  ;;  %1910 = vmatpush1.bf16.msra.mxu1 %v734_v13  ;;  %v10069_v13 = vld [vmem:[%s12488_s3 + $0x30] ss:$8 sps:$4 sm:$0xff]   ;;  %v10082_v24 = vld [vmem:[%s12488_s3 + $0x84] ss:$8 sps:$4 sm:$0xff]  }
 0x118   : > { %v736_v29 = vpack.c.bf16 %v714_v26, %v713_v25  ;;  %1911 = vmatprep.subr.bf16.mxu1 %v10494_v20  ;;  %v10084_v25 = vld [vmem:[%s12488_s3 + $0x80] ss:$8 sps:$4 sm:$0xff]   ;;  %v10085_v26 = vld [vmem:[%s12488_s3 + $0x94] ss:$8 sps:$4 sm:$0xff]  }
 0x119   : > { %v735_v30 = vpack.c.bf16 %v712_v28, %v711_v27  ;;  %v9071_v31 = vpop.f32.mrb[20].mxu0  ;;  %v10087_v27 = vld [vmem:[%s12488_s3 + $0x90] ss:$8 sps:$4 sm:$0xff]   ;;  %v10088_v28 = vld [vmem:[%s12488_s3 + $0xa4] ss:$8 sps:$4 sm:$0xff]  }
 0x11a   : > { %v657_v32 = vadd.f32 %v9071_v31, %v10612_v22  ;;  %v648_v33 = vpop.f32.mrb[21].mxu0  ;;  %v10093_v31 = vld [vmem:[%s12488_s3 + $0xb0] ss:$8 sps:$4 sm:$0xff]  }
 0x11b   : > { %v649_v34 = vadd.f32 %v10612_v22, %v648_v33  ;;  %v9072_v35 = vpop.f32.mrb[22].mxu0  ;;  %1912 = vmatpush1.bf16.msra.mxu1 %v735_v30  ;;  %v10091_v30 = vld [vmem:[%s12488_s3 + $0xb4] ss:$8 sps:$4 sm:$0xff]   ;;  %v10096_v33 = vld [vmem:[%s12488_s3 + $0xc0] ss:$8 sps:$4 sm:$0xff]  }
 0x11c   : > { %v660_v36 = vadd.f32 %v9072_v35, %v10612_v22  ;;  %v651_v37 = vpop.f32.mrb[23].mxu0  ;;  %1913 = vmatprep.subr.bf16.mxu1 %v10494_v20  ;;  %v717_v39 = vmax.f32 %v657_v32, 0.0  ;;  %v10094_v32 = vld [vmem:[%s12488_s3 + $0xc4] ss:$8 sps:$4 sm:$0xff]   ;;  %v10099_v35 = vld [vmem:[%s12488_s3 + $0xd0] ss:$8 sps:$4 sm:$0xff]  }
 0x11d   : > { %v652_v38 = vadd.f32 %v10612_v22, %v651_v37  ;;  %v715_v41 = vmax.f32 %v649_v34, 0.0  ;;  %v10097_v34 = vld [vmem:[%s12488_s3 + $0xd4] ss:$8 sps:$4 sm:$0xff]   ;;  %v10102_v37 = vld [vmem:[%s12488_s3 + $0xe0] ss:$8 sps:$4 sm:$0xff]  }
 0x11e   : > { %v718_v40 = vmax.f32 %v660_v36, 0.0  ;;  %v10100_v36 = vld [vmem:[%s12488_s3 + $0xe4] ss:$8 sps:$4 sm:$0xff]  }
 0x11f   : > { %v716_v42 = vmax.f32 %v652_v38, 0.0  ;;  %1914 = vmatpush1.bf16.msra.mxu1 %v736_v29  ;;  %v10090_v29 = vld [vmem:[%s12488_s3 + $0xa0] ss:$8 sps:$4 sm:$0xff]   ;;  %v10103_v38 = vld [vmem:[%s12488_s3 + $0xf4] ss:$8 sps:$4 sm:$0xff]  }
 0x120   : > { %v738_v43 = vpack.c.bf16 %v718_v40, %v717_v39  ;;  %1915 = vmatprep.subr.bf16.mxu1 %v10494_v20  ;;  %v10105_v39 = vld [vmem:[%s12488_s3 + $0xf0] ss:$8 sps:$4 sm:$0xff]   ;;  %v10106_v40 = vld [vmem:[%s12488_s3 + $0x104] ss:$8 sps:$4 sm:$0xff]  }
 0x121   : > { %v737_v44 = vpack.c.bf16 %v716_v42, %v715_v41  ;;  %v9075_v45 = vpop.f32.mrb[24].mxu0  ;;  %v10108_v41 = vld [vmem:[%s12488_s3 + $0x100] ss:$8 sps:$4 sm:$0xff]   ;;  %v10109_v42 = vld [vmem:[%s12488_s3 + $0x114] ss:$8 sps:$4 sm:$0xff]  }
 0x122   : > { %v673_v46 = vadd.f32 %v9075_v45, %v10612_v22  ;;  %v664_v47 = vpop.f32.mrb[25].mxu0  ;;  %v10160_v45 = vld [vmem:[%s12489_s4 + $0x10] sm:$0xff]  }
 0x123   : > { %v665_v48 = vadd.f32 %v10612_v22, %v664_v47  ;;  %v9076_v49 = vpop.f32.mrb[26].mxu0  ;;  %1916 = vmatpush1.bf16.msra.mxu1 %v737_v44  ;;  %v10112_v44 = vld [vmem:[%s12488_s3 + $0x124] ss:$8 sps:$4 sm:$0xff]   ;;  %9081 = vmatprep.subr.bf16.mxu0 %v10160_v45  ;;  %v10114_v47 = vld [vmem:[%s12488_s3 + $0x120] ss:$8 sps:$4 sm:$0xff]  }
 0x124   : > { %v676_v50 = vadd.f32 %v9076_v49, %v10612_v22  ;;  %v667_v51 = vpop.f32.mrb[27].mxu0  ;;  %1917 = vmatprep.subr.bf16.mxu1 %v10494_v20  ;;  %v721_v53 = vmax.f32 %v673_v46, 0.0  ;;  %9082 = vmatpush3.bf16.msra.mxu0 %v10160_v45  ;;  %v10161_v46 = vld [vmem:[%s12489_s4 + $0x18] sm:$0xff]  }
 0x125   : > { %v668_v52 = vadd.f32 %v10612_v22, %v667_v51  ;;  %v719_v55 = vmax.f32 %v665_v48, 0.0  ;;  %9083 = vmatprep.subr.bf16.mxu0 %v10161_v46  ;;  %v10115_v48 = vld [vmem:[%s12488_s3 + $0x134] ss:$8 sps:$4 sm:$0xff]   ;;  %v10117_v49 = vld [vmem:[%s12488_s3 + $0x130] ss:$8 sps:$4 sm:$0xff]  }
 0x126   : > { %v722_v54 = vmax.f32 %v676_v50, 0.0  ;;  %v10118_v50 = vld [vmem:[%s12488_s3 + $0x144] ss:$8 sps:$4 sm:$0xff]   ;;  %v10120_v51 = vld [vmem:[%s12488_s3 + $0x140] ss:$8 sps:$4 sm:$0xff]  }
 0x127   : > { %v720_v56 = vmax.f32 %v668_v52, 0.0  ;;  %1918 = vmatpush1.bf16.msra.mxu1 %v738_v43  ;;  %v10111_v43 = vld [vmem:[%s12488_s3 + $0x110] ss:$8 sps:$4 sm:$0xff]   ;;  %v10121_v52 = vld [vmem:[%s12488_s3 + $0x154] ss:$8 sps:$4 sm:$0xff]  }
 0x128   : > { %v740_v57 = vpack.c.bf16 %v722_v54, %v721_v53  ;;  %1919 = vmatprep.subr.bf16.mxu1 %v10494_v20  ;;  %9084 = vmatpush3.bf16.msra.mxu0 %v10161_v46  ;;  %v10123_v53 = vld [vmem:[%s12488_s3 + $0x150] ss:$8 sps:$4 sm:$0xff]   ;;  %v10124_v54 = vld [vmem:[%s12488_s3 + $0x164] ss:$8 sps:$4 sm:$0xff]  }
 0x129   : > { %v739_v58 = vpack.c.bf16 %v720_v56, %v719_v55  ;;  %v9079_v59 = vpop.f32.mrb[28].mxu0  ;;  %v10126_v55 = vld [vmem:[%s12488_s3 + $0x160] ss:$8 sps:$4 sm:$0xff]   ;;  %v10127_v56 = vld [vmem:[%s12488_s3 + $0x174] ss:$8 sps:$4 sm:$0xff]  }
 0x12a   : > { %v689_v60 = vadd.f32 %v9079_v59, %v10612_v22  ;;  %v680_v61 = vpop.f32.mrb[29].mxu0  ;;  %v10130_v59 = vld [vmem:[%s12488_s3 + $0x184] ss:$8 sps:$4 sm:$0xff]   ;;  %v10159_v46 = vld [vmem:[%s12488_s3 + $0x210] ss:$8 sps:$4 sm:$0xff]  }
 0x12b   : > { %v681_v62 = vadd.f32 %v10612_v22, %v680_v61  ;;  %v9080_v63 = vpop.f32.mrb[30].mxu0  ;;  %1920 = vmatpush1.bf16.msra.mxu1 %v739_v58  ;;  %v10129_v58 = vld [vmem:[%s12488_s3 + $0x170] ss:$8 sps:$4 sm:$0xff]   ;;  %v10133_v61 = vld [vmem:[%s12488_s3 + $0x194] ss:$8 sps:$4 sm:$0xff]  }
 0x12c   : > { %v692_v0 = vadd.f32 %v9080_v63, %v10612_v22  ;;  %v683_v1 = vpop.f32.mrb[31].mxu0  ;;  %1921 = vmatprep.subr.bf16.mxu1 %v10494_v20  ;;  %v725_v3 = vmax.f32 %v689_v60, 0.0  ;;  %v10132_v60 = vld [vmem:[%s12488_s3 + $0x180] ss:$8 sps:$4 sm:$0xff]   ;;  %v10136_v63 = vld [vmem:[%s12488_s3 + $0x1a4] ss:$8 sps:$4 sm:$0xff]  }
 0x12d   : > { %v684_v2 = vadd.f32 %v10612_v22, %v683_v1  ;;  %v723_v5 = vmax.f32 %v681_v62, 0.0  ;;  %v10061_v22 = vld [vmem:[%s12488_s3 + $0x14] ss:$8 sps:$4 sm:$0xff]   ;;  %v10135_v62 = vld [vmem:[%s12488_s3 + $0x190] ss:$8 sps:$4 sm:$0xff]  }
 0x12e   : > { %v726_v4 = vmax.f32 %v692_v0, 0.0  ;;  %v10138_v0 = vld [vmem:[%s12488_s3 + $0x1a0] ss:$8 sps:$4 sm:$0xff]   ;;  %v10139_v1 = vld [vmem:[%s12488_s3 + $0x1b4] ss:$8 sps:$4 sm:$0xff]  }
 0x12f   : > { %v724_v6 = vmax.f32 %v684_v2, 0.0  ;;  %1922 = vmatpush1.bf16.msra.mxu1 %v740_v57  ;;  %v10808_v57 = vld [vmem:[%s12489_s4] sm:$0xff]  }
 0x130   : > { %v742_v7 = vpack.c.bf16 %v726_v4, %v725_v3  ;;  %1923 = vmatprep.subr.bf16.mxu1 %v10494_v20  ;;  %9097 = vmatprep.subr.bf16.mxu0 %v10808_v57  ;;  %v10141_v4 = vld [vmem:[%s12488_s3 + $0x1b0] ss:$8 sps:$4 sm:$0xff]  }
 0x131   : > { %v741_v8 = vpack.c.bf16 %v724_v6, %v723_v5  ;;  %v10142_v6 = vld [vmem:[%s12488_s3 + $0x1c4] ss:$8 sps:$4 sm:$0xff]  }
 0x133   : > { %1924 = vmatpush1.bf16.msra.mxu1 %v741_v8 }
 0x134   : > { %1925 = vmatprep.subr.bf16.mxu1 %v10494_v20  ;;  %v10066_v20 = vld [vmem:[%s12488_s3 + $0x20] ss:$8 sps:$4 sm:$0xff]  }
 0x137   : > { %1926 = vmatpush1.bf16.msra.mxu1 %v742_v7 }
 0x13a   : > { %1928 = vmatmul.mubr.bf16.vlgmr.msra.gmra.mrb[0].mxu1 %v10058_v9 }
 0x13b   : > { %1935 = vmatprep.mubr.bf16.mxu1 %v10061_v22 }
 0x142   : > { %1936 = vmatmul.mubr.bf16.gmra.mrb[4].mxu1 %v10063_v10  ;;  %v10144_v10 = vld [vmem:[%s12488_s3 + $0x1c0] ss:$8 sps:$4 sm:$0xff]  }
 0x143   : > { %1943 = vmatprep.mubr.bf16.mxu1 %v10064_v11 }
 0x14a   : > { %1944 = vmatmul.mubr.bf16.gmra.mrb[8].mxu1 %v10066_v20  ;;  %v10145_v20 = vld [vmem:[%s12488_s3 + $0x1d4] ss:$8 sps:$4 sm:$0xff]  }
 0x14b   : > { %1951 = vmatprep.mubr.bf16.mxu1 %v10067_v12 }
 0x152   : > { %1952 = vmatmul.mubr.bf16.gmra.mrb[12].mxu1 %v10069_v13 }
 0x153   : > { %1959 = vmatprep.mubr.bf16.mxu1 %v10070_v14 }
 0x15a   : > { %1960 = vmatmul.mubr.bf16.gmra.mrb[16].mxu1 %v10072_v15 }
 0x15b   : > { %1967 = vmatprep.mubr.bf16.mxu1 %v10073_v16  ;;  %v10147_v16 = vld [vmem:[%s12488_s3 + $0x1d0] ss:$8 sps:$4 sm:$0xff]  }
 0x162   : > { %1968 = vmatmul.mubr.bf16.gmra.mrb[20].mxu1 %v10075_v17 }
 0x163   : > { %1975 = vmatprep.mubr.bf16.mxu1 %v10076_v18  ;;  %v10148_v18 = vld [vmem:[%s12488_s3 + $0x1e4] ss:$8 sps:$4 sm:$0xff]  }
 0x16a   : > { %1976 = vmatmul.mubr.bf16.gmra.mrb[24].mxu1 %v10078_v19 }
 0x16b   : > { %1983 = vmatprep.mubr.bf16.mxu1 %v10079_v21 }
 0x172   : > { %1984 = vmatmul.mubr.bf16.gmra.mrb[28].mxu1 %v10081_v23 }
 0x173   : > { %1991 = vmatprep.mubr.bf16.mxu1 %v10082_v24 }
 0x17a   : > { %1992 = vmatmul.mubr.bf16.gmra.mrb[32].mxu1 %v10084_v25  ;;  %v10150_v25 = vld [vmem:[%s12488_s3 + $0x1e0] ss:$8 sps:$4 sm:$0xff]  }
 0x17b   : > { %1999 = vmatprep.mubr.bf16.mxu1 %v10085_v26 }
 0x182   : > { %2000 = vmatmul.mubr.bf16.gmra.mrb[36].mxu1 %v10087_v27  ;;  %v10151_v27 = vld [vmem:[%s12488_s3 + $0x1f4] ss:$8 sps:$4 sm:$0xff]  }
 0x183   : > { %2007 = vmatprep.mubr.bf16.mxu1 %v10088_v28 }
 0x18a   : > { %2008 = vmatmul.mubr.bf16.gmra.mrb[40].mxu1 %v10090_v29 }
 0x18b   : > { %2015 = vmatprep.mubr.bf16.mxu1 %v10091_v30 }
 0x192   : > { %2016 = vmatmul.mubr.bf16.gmra.mrb[44].mxu1 %v10093_v31 }
 0x193   : > { %2023 = vmatprep.mubr.bf16.mxu1 %v10094_v32  ;;  %v10153_v32 = vld [vmem:[%s12488_s3 + $0x1f0] ss:$8 sps:$4 sm:$0xff]  }
 0x19a   : > { %2024 = vmatmul.mubr.bf16.gmra.mrb[48].mxu1 %v10096_v33 }
 0x19b   : > { %2031 = vmatprep.mubr.bf16.mxu1 %v10097_v34  ;;  %v10154_v34 = vld [vmem:[%s12488_s3 + $0x204] ss:$8 sps:$4 sm:$0xff]  }
 0x1a2   : > { %2032 = vmatmul.mubr.bf16.gmra.mrb[52].mxu1 %v10099_v35 }
 0x1a3   : > { %2039 = vmatprep.mubr.bf16.mxu1 %v10100_v36 }
 0x1aa   : > { %2040 = vmatmul.mubr.bf16.gmra.mrb[56].mxu1 %v10102_v37 }
 0x1ab   : > { %2047 = vmatprep.mubr.bf16.mxu1 %v10103_v38 }
 0x1b2   : > { %2048 = vmatmul.mubr.bf16.gmra.mrb[60].mxu1 %v10105_v39  ;;  %v10156_v39 = vld [vmem:[%s12488_s3 + $0x200] ss:$8 sps:$4 sm:$0xff]  }
 0x1b3   : > { %2055 = vmatprep.mubr.bf16.mxu1 %v10106_v40 }
 0x1ba   : > { %2056 = vmatmul.mubr.bf16.gmra.mrb[64].mxu1 %v10108_v41  ;;  %v10157_v41 = vld [vmem:[%s12488_s3 + $0x214] ss:$8 sps:$4 sm:$0xff]  }
 0x1bb   : > { %2063 = vmatprep.mubr.bf16.mxu1 %v10109_v42 }
 0x1c2   : > { %2064 = vmatmul.mubr.bf16.gmra.mrb[68].mxu1 %v10111_v43 }
 0x1c3   : > { %2071 = vmatprep.mubr.bf16.mxu1 %v10112_v44 }
 0x1ca   : > { %2072 = vmatmul.mubr.bf16.gmra.mrb[72].mxu1 %v10114_v47 }
 0x1cb   : > { %2079 = vmatprep.mubr.bf16.mxu1 %v10115_v48  ;;  %v10162_v48 = vld [vmem:[%s12488_s3 + $0x224] ss:$8 sps:$4 sm:$0xff]  }
 0x1d2   : > { %2080 = vmatmul.mubr.bf16.gmra.mrb[76].mxu1 %v10117_v49 }
 0x1d3   : > { %2087 = vmatprep.mubr.bf16.mxu1 %v10118_v50 }
 0x1da   : > { %2088 = vmatmul.mubr.bf16.gmra.mrb[80].mxu1 %v10120_v51 }
 0x1db   : > { %2095 = vmatprep.mubr.bf16.mxu1 %v10121_v52 }
 0x1e2   : > { %2096 = vmatmul.mubr.bf16.gmra.mrb[84].mxu1 %v10123_v53  ;;  %v10164_v53 = vld [vmem:[%s12488_s3 + $0x220] ss:$8 sps:$4 sm:$0xff]  }
 0x1e3   : > { %2103 = vmatprep.mubr.bf16.mxu1 %v10124_v54 }
 0x1ea   : > { %2104 = vmatmul.mubr.bf16.gmra.mrb[88].mxu1 %v10126_v55  ;;  %v10165_v55 = vld [vmem:[%s12488_s3 + $0x234] ss:$8 sps:$4 sm:$0xff]  }
 0x1eb   : > { %2111 = vmatprep.mubr.bf16.mxu1 %v10127_v56 }
 0x1f2   : > { %2112 = vmatmul.mubr.bf16.gmra.mrb[92].mxu1 %v10129_v58 }
 0x1f3   : > { %2119 = vmatprep.mubr.bf16.mxu1 %v10130_v59  ;;  %v10178_v59 = vld [vmem:[%s12489_s4 + $0x8] sm:$0xff]  }
 0x1fa   : > { %2120 = vmatmul.mubr.bf16.gmra.mrb[96].mxu1 %v10132_v60  ;;  %v10188_v60 = vld [vmem:[%s12489_s4 + $0x20] sm:$0xff]  }
 0x1fb   : > { %2127 = vmatprep.mubr.bf16.mxu1 %v10133_v61 }
 0x202   : > { %2128 = vmatmul.mubr.bf16.gmra.mrb[100].mxu1 %v10135_v62 }
 0x203   : > { %2135 = vmatprep.mubr.bf16.mxu1 %v10136_v63  ;;  %v10167_v63 = vld [vmem:[%s12488_s3 + $0x230] ss:$8 sps:$4 sm:$0xff]  }
 0x20a   : > { %2136 = vmatmul.mubr.bf16.gmra.mrb[104].mxu1 %v10138_v0 }
 0x20b   : > { %2143 = vmatprep.mubr.bf16.mxu1 %v10139_v1  ;;  %v10168_v1 = vld [vmem:[%s12488_s3 + $0x244] ss:$8 sps:$4 sm:$0xff]  }
 0x20d   : > { %v10835_v2 = vpop.f32.mrb[0].mxu1 }
 0x20e   : > { %v1931_v3 = vpop.f32.mrb[1].mxu1 }
 0x20f   : > { %v10840_v5 = vpop.f32.mrb[2].mxu1 }
 0x210   : > { %v2696_v7 = vpack.c.bf16 %v10840_v5, %v10835_v2  ;;  %v1934_v8 = vpop.f32.mrb[3].mxu1  ;;  %v10189_v2 = vld [vmem:[%s12489_s4 + $0x28] sm:$0xff]  }
 0x211   : > { %v10170_v8 = vld [vmem:[%s12488_s3 + $0x240] ss:$8 sps:$4 sm:$0xff]  }
 0x212   : > { %2144 = vmatmul.mubr.bf16.gmra.mrb[108].mxu1 %v10141_v4 }
 0x213   : > { %2151 = vmatprep.mubr.bf16.mxu1 %v10142_v6 }
 0x215   : > { %v10847_v9 = vpop.f32.mrb[4].mxu1 }
 0x216   : > { %v1939_v22 = vpop.f32.mrb[5].mxu1 }
 0x217   : > { %v10852_v11 = vpop.f32.mrb[6].mxu1 }
 0x218   : > { %v2697_v12 = vpack.c.bf16 %v10852_v11, %v10847_v9  ;;  %v1942_v13 = vpop.f32.mrb[7].mxu1  ;;  %v10184_v9 = vld [vmem:[%s12488_s3 + $0x280] ss:$8 sps:$4 sm:$0xff]  }
 0x21a   : > { %2152 = vmatmul.mubr.bf16.gmra.mrb[112].mxu1 %v10144_v10  ;;  %v10171_v10 = vld [vmem:[%s12488_s3 + $0x254] ss:$8 sps:$4 sm:$0xff]  }
 0x21b   : > { %2159 = vmatprep.mubr.bf16.mxu1 %v10145_v20 }
 0x21d   : > { %v10859_v14 = vpop.f32.mrb[8].mxu1 }
 0x21e   : > { %v1947_v15 = vpop.f32.mrb[9].mxu1 }
 0x21f   : > { %v10864_v17 = vpop.f32.mrb[10].mxu1 }
 0x220   : > { %v2698_v19 = vpack.c.bf16 %v10864_v17, %v10859_v14  ;;  %v1950_v21 = vpop.f32.mrb[11].mxu1 }
 0x222   : > { %2160 = vmatmul.mubr.bf16.gmra.mrb[116].mxu1 %v10147_v16 }
 0x223   : > { %2167 = vmatprep.mubr.bf16.mxu1 %v10148_v18  ;;  %v10173_v18 = vld [vmem:[%s12488_s3 + $0x250] ss:$8 sps:$4 sm:$0xff]  }
 0x225   : > { %v10871_v23 = vpop.f32.mrb[12].mxu1 }
 0x226   : > { %v1955_v24 = vpop.f32.mrb[13].mxu1 }
 0x227   : > { %v10876_v26 = vpop.f32.mrb[14].mxu1  ;;  %v10174_v24 = vld [vmem:[%s12488_s3 + $0x264] ss:$8 sps:$4 sm:$0xff]  }
 0x228   : > { %v2699_v28 = vpack.c.bf16 %v10876_v26, %v10871_v23  ;;  %v1958_v29 = vpop.f32.mrb[15].mxu1 }
 0x22a   : > { %2168 = vmatmul.mubr.bf16.gmra.mrb[120].mxu1 %v10150_v25 }
 0x22b   : > { %2175 = vmatprep.mubr.bf16.mxu1 %v10151_v27 }
 0x22d   : > { %v10883_v30 = vpop.f32.mrb[16].mxu1 }
 0x22e   : > { %v1963_v31 = vpop.f32.mrb[17].mxu1 }
 0x22f   : > { %v10888_v33 = vpop.f32.mrb[18].mxu1 }
 0x230   : > { %v2700_v35 = vpack.c.bf16 %v10888_v33, %v10883_v30  ;;  %v1966_v36 = vpop.f32.mrb[19].mxu1  ;;  %v10192_v33 = vld [vmem:[%s12488_s3 + $0x2a0] ss:$8 sps:$4 sm:$0xff]  }
 0x231   : > { %v10179_v36 = vld [vmem:[%s12488_s3 + $0x274] ss:$8 sps:$4 sm:$0xff]  }
 0x232   : > { %2176 = vmatmul.mubr.bf16.gmra.mrb[124].mxu1 %v10153_v32  ;;  %v10176_v32 = vld [vmem:[%s12488_s3 + $0x260] ss:$8 sps:$4 sm:$0xff]  }
 0x233   : > { %2183 = vmatprep.mubr.bf16.mxu1 %v10154_v34 }
 0x235   : > { %v10895_v37 = vpop.f32.mrb[20].mxu1 }
 0x236   : > { %v1971_v38 = vpop.f32.mrb[21].mxu1 }
 0x237   : > { %v10900_v40 = vpop.f32.mrb[22].mxu1 }
 0x238   : > { %v2701_v42 = vpack.c.bf16 %v10900_v40, %v10895_v37  ;;  %v1974_v43 = vpop.f32.mrb[23].mxu1  ;;  %v10203_v37 = vld [vmem:[%s12489_s4 + $0x38] sm:$0xff]  }
 0x23a   : > { %2184 = vmatmul.mubr.bf16.gmra.mrb[128].mxu1 %v10156_v39 }
 0x23b   : > { %2191 = vmatprep.mubr.bf16.mxu1 %v10157_v41 }
 0x23d   : > { %v1977_v44 = vpop.f32.mrb[24].mxu1 }
 0x23e   : > { %v1979_v45 = vpop.f32.mrb[25].mxu1 }
 0x23f   : > { %v1980_v47 = vpop.f32.mrb[26].mxu1 }
 0x240   : > { %v2702_v49 = vpack.c.bf16 %v1980_v47, %v1977_v44  ;;  %v1982_v50 = vpop.f32.mrb[27].mxu1  ;;  %v10181_v44 = vld [vmem:[%s12488_s3 + $0x270] ss:$8 sps:$4 sm:$0xff]  }
 0x242   : > { %2192 = vmatmul.mubr.bf16.gmra.mrb[132].mxu1 %v10159_v46  ;;  %9085 = vmatprep.mubr.msk.bf16.mxu0 %vm2813_vm1, %v2702_v49  ;;  %v10182_v46 = vld [vmem:[%s12488_s3 + $0x284] ss:$8 sps:$4 sm:$0xff]  }
 0x243   : > { %2199 = vmatprep.mubr.bf16.mxu1 %v10162_v48 }
 0x245   : > { %v1985_v51 = vpop.f32.mrb[28].mxu1 }
 0x246   : > { %v1987_v52 = vpop.f32.mrb[29].mxu1 }
 0x247   : > { %v1988_v54 = vpop.f32.mrb[30].mxu1 }
 0x248   : > { %v2703_v56 = vpack.c.bf16 %v1988_v54, %v1985_v51  ;;  %v1990_v58 = vpop.f32.mrb[31].mxu1  ;;  %v10187_v51 = vld [vmem:[%s12488_s3 + $0x290] ss:$8 sps:$4 sm:$0xff]   ;;  %v10193_v54 = vld [vmem:[%s12488_s3 + $0x2b4] ss:$8 sps:$4 sm:$0xff]  }
 0x24a   : > { %2200 = vmatmul.mubr.bf16.gmra.mrb[136].mxu1 %v10164_v53  ;;  %9086 = vmatmul.mubr.msk.bf16.vlgmr.msra.gmra.mrb[32].mxu0 %vm2813_vm1, %v2703_v56  ;;  %v10190_v53 = vld [vmem:[%s12488_s3 + $0x2a4] ss:$8 sps:$4 sm:$0xff]  }
 0x24b   : > { %2207 = vmatprep.mubr.bf16.mxu1 %v10165_v55  ;;  %9098 = vmatpush3.bf16.msra.mxu0 %v10808_v57 }
 0x24c   : > { %9099 = vmatprep.subr.bf16.mxu0 %v10178_v59 }
 0x24d   : > { %v1993_v61 = vpop.f32.mrb[32].mxu1 }
 0x24e   : > { %v1995_v62 = vpop.f32.mrb[33].mxu1 }
 0x24f   : > { %v1996_v0 = vpop.f32.mrb[34].mxu1  ;;  %9100 = vmatpush3.bf16.msra.mxu0 %v10178_v59  ;;  %v10195_v59 = vld [vmem:[%s12488_s3 + $0x2b0] ss:$8 sps:$4 sm:$0xff]  }
 0x250   : > { %v2704_v3 = vpack.c.bf16 %v1996_v0, %v1993_v61  ;;  %v1998_v4 = vpop.f32.mrb[35].mxu1  ;;  %9113 = vmatprep.subr.bf16.mxu0 %v10188_v60  ;;  %v10196_v61 = vld [vmem:[%s12488_s3 + $0x2c4] ss:$8 sps:$4 sm:$0xff]  }
 0x252   : > { %2208 = vmatmul.mubr.bf16.gmra.mrb[140].mxu1 %v10167_v63  ;;  %9089 = vmatprep.mubr.msk.bf16.mxu0 %vm2813_vm1, %v2704_v3  ;;  %v10198_v3 = vld [vmem:[%s12488_s3 + $0x2c0] ss:$8 sps:$4 sm:$0xff]  }
 0x253   : > { %2215 = vmatprep.mubr.bf16.mxu1 %v10168_v1 }
 0x255   : > { %v2001_v57 = vpop.f32.mrb[36].mxu1 }
 0x256   : > { %v2003_v6 = vpop.f32.mrb[37].mxu1 }
 0x257   : > { %v2004_v22 = vpop.f32.mrb[38].mxu1 }
 0x258   : > { %v2705_v20 = vpack.c.bf16 %v2004_v22, %v2001_v57  ;;  %v2006_v13 = vpop.f32.mrb[39].mxu1  ;;  %v10199_v57 = vld [vmem:[%s12488_s3 + $0x2d4] ss:$8 sps:$4 sm:$0xff]  }
 0x25a   : > { %2216 = vmatmul.mubr.bf16.gmra.mrb[144].mxu1 %v10170_v8  ;;  %9090 = vmatmul.mubr.msk.bf16.gmra.mrb[36].mxu0 %vm2813_vm1, %v2705_v20  ;;  %v10201_v20 = vld [vmem:[%s12488_s3 + $0x2d0] ss:$8 sps:$4 sm:$0xff]  }
 0x25b   : > { %2223 = vmatprep.mubr.bf16.mxu1 %v10171_v10 }
 0x25d   : > { %v2009_v15 = vpop.f32.mrb[40].mxu1 }
 0x25e   : > { %v2011_v16 = vpop.f32.mrb[41].mxu1 }
 0x25f   : > { %v2012_v21 = vpop.f32.mrb[42].mxu1 }
 0x260   : > { %v2706_v25 = vpack.c.bf16 %v2012_v21, %v2009_v15  ;;  %v2014_v27 = vpop.f32.mrb[43].mxu1  ;;  %v10204_v15 = vld [vmem:[%s12488_s3 + $0x2e4] ss:$8 sps:$4 sm:$0xff]  }
 0x262   : > { %2224 = vmatmul.mubr.bf16.gmra.mrb[148].mxu1 %v10173_v18  ;;  %9093 = vmatprep.mubr.msk.bf16.mxu0 %vm2813_vm1, %v2706_v25  ;;  %v10206_v25 = vld [vmem:[%s12488_s3 + $0x2e0] ss:$8 sps:$4 sm:$0xff]  }
 0x263   : > { %2231 = vmatprep.mubr.bf16.mxu1 %v10174_v24 }
 0x265   : > { %v2017_v29 = vpop.f32.mrb[44].mxu1 }
 0x266   : > { %v2019_v31 = vpop.f32.mrb[45].mxu1 }
 0x267   : > { %v2020_v34 = vpop.f32.mrb[46].mxu1 }
 0x268   : > { %v2707_v38 = vpack.c.bf16 %v2020_v34, %v2017_v29  ;;  %v2022_v39 = vpop.f32.mrb[47].mxu1  ;;  %v10207_v29 = vld [vmem:[%s12488_s3 + $0x2f4] ss:$8 sps:$4 sm:$0xff]   ;;  %v10223_v34 = vld [vmem:[%s12489_s4 + $0x48] sm:$0xff]  }
 0x26a   : > { %2232 = vmatmul.mubr.bf16.gmra.mrb[152].mxu1 %v10176_v32  ;;  %9094 = vmatmul.mubr.msk.bf16.gmra.mrb[40].mxu0 %vm2813_vm1, %v2707_v38 }
 0x26b   : > { %9101 = vmatprep.mubr.msk.bf16.mxu0 %vm2813_vm1, %v2696_v7  ;;  %2239 = vmatprep.mubr.bf16.mxu1 %v10179_v36  ;;  %v10202_v7 = vld [vmem:[%s12489_s4 + $0x30] sm:$0xff]  }
 0x26c   : > { %v11054_v36 = vld [vmem:[%s12489_s4 + $0x50] sm:$0xff]  }
 0x26d   : > { %v2025_v41 = vpop.f32.mrb[48].mxu1 }
 0x26e   : > { %v2027_v43 = vpop.f32.mrb[49].mxu1 }
 0x26f   : > { %v2028_v45 = vpop.f32.mrb[50].mxu1 }
 0x270   : > { %v2708_v47 = vpack.c.bf16 %v2028_v45, %v2025_v41  ;;  %v2030_v48 = vpop.f32.mrb[51].mxu1  ;;  %v10209_v41 = vld [vmem:[%s12488_s3 + $0x2f0] ss:$8 sps:$4 sm:$0xff]  }
 0x272   : > { %2240 = vmatmul.mubr.bf16.gmra.mrb[156].mxu1 %v10181_v44  ;;  %9102 = vmatmul.mubr.msk.bf16.vlgmr.msra.gmra.mrb[32].mxu0 %vm2813_vm1, %v2697_v12  ;;  %v10185_v12 = vld [vmem:[%s12488_s3 + $0x294] ss:$8 sps:$4 sm:$0xff]   ;;  %v10210_v44 = vld [vmem:[%s12488_s3 + $0x304] ss:$8 sps:$4 sm:$0xff]  }
 0x273   : > { %9105 = vmatprep.mubr.msk.bf16.mxu0 %vm2813_vm1, %v2698_v19  ;;  %2247 = vmatprep.mubr.bf16.mxu1 %v10182_v46 }
 0x274   : > { %9114 = vmatpush3.bf16.msra.mxu0 %v10188_v60 }
 0x275   : > { %v2033_v5 = vpop.f32.mrb[52].mxu1  ;;  %9115 = vmatprep.subr.bf16.mxu0 %v10189_v2 }
 0x276   : > { %v2035_v49 = vpop.f32.mrb[53].mxu1 }
 0x277   : > { %v2036_v11 = vpop.f32.mrb[54].mxu1 }
 0x278   : > { %v2709_v14 = vpack.c.bf16 %v2036_v11, %v2033_v5  ;;  %v2038_v17 = vpop.f32.mrb[55].mxu1  ;;  %9116 = vmatpush3.bf16.msra.mxu0 %v10189_v2  ;;  %v10212_v2 = vld [vmem:[%s12488_s3 + $0x300] ss:$8 sps:$4 sm:$0xff]  }
 0x279   : > { %9129 = vmatprep.subr.bf16.mxu0 %v10202_v7 }
 0x27a   : > { %2248 = vmatmul.mubr.bf16.gmra.mrb[160].mxu1 %v10184_v9  ;;  %9106 = vmatmul.mubr.msk.bf16.gmra.mrb[36].mxu0 %vm2813_vm1, %v2699_v28 }
 0x27b   : > { %9109 = vmatprep.mubr.msk.bf16.mxu0 %vm2813_vm1, %v2700_v35  ;;  %2255 = vmatprep.mubr.bf16.mxu1 %v10185_v12 }
 0x27d   : > { %v2041_v19 = vpop.f32.mrb[56].mxu1 }
 0x27e   : > { %v2043_v50 = vpop.f32.mrb[57].mxu1 }
 0x27f   : > { %v2044_v52 = vpop.f32.mrb[58].mxu1 }
 0x280   : > { %v2710_v23 = vpack.c.bf16 %v2044_v52, %v2041_v19  ;;  %v2046_v26 = vpop.f32.mrb[59].mxu1  ;;  %v10216_v19 = vld [vmem:[%s12488_s3 + $0x324] ss:$8 sps:$4 sm:$0xff]  }
 0x282   : > { %2256 = vmatmul.mubr.bf16.gmra.mrb[164].mxu1 %v10187_v51  ;;  %9110 = vmatmul.mubr.msk.bf16.gmra.mrb[40].mxu0 %vm2813_vm1, %v2701_v42  ;;  %v10222_v42 = vld [vmem:[%s12489_s4 + $0x40] sm:$0xff]  }
 0x283   : > { %9117 = vmatprep.mubr.msk.bf16.mxu0 %vm2813_vm1, %v2708_v47  ;;  %2263 = vmatprep.mubr.bf16.mxu1 %v10190_v53 }
 0x285   : > { %v2049_v28 = vpop.f32.mrb[60].mxu1 }
 0x286   : > { %v2051_v30 = vpop.f32.mrb[61].mxu1 }
 0x287   : > { %v2052_v35 = vpop.f32.mrb[62].mxu1 }
 0x288   : > { %v2711_v55 = vpack.c.bf16 %v2052_v35, %v2049_v28  ;;  %v2054_v56 = vpop.f32.mrb[63].mxu1  ;;  %v10219_v28 = vld [vmem:[%s12488_s3 + $0x334] ss:$8 sps:$4 sm:$0xff]  }
 0x28a   : > { %2264 = vmatmul.mubr.bf16.gmra.mrb[168].mxu1 %v10192_v33  ;;  %9118 = vmatmul.mubr.msk.bf16.vlgmr.msra.gmra.mrb[32].mxu0 %vm2813_vm1, %v2709_v14  ;;  %v10215_v14 = vld [vmem:[%s12488_s3 + $0x310] ss:$8 sps:$4 sm:$0xff]  }
 0x28b   : > { %9121 = vmatprep.mubr.msk.bf16.mxu0 %vm2813_vm1, %v2710_v23  ;;  %2271 = vmatprep.mubr.bf16.mxu1 %v10193_v54  ;;  %v10218_v23 = vld [vmem:[%s12488_s3 + $0x320] ss:$8 sps:$4 sm:$0xff]  }
 0x28c   : > { %9130 = vmatpush3.bf16.msra.mxu0 %v10202_v7  ;;  %v10213_v7 = vld [vmem:[%s12488_s3 + $0x314] ss:$8 sps:$4 sm:$0xff]  }
 0x28d   : > { %v2057_v40 = vpop.f32.mrb[64].mxu1  ;;  %9131 = vmatprep.subr.bf16.mxu0 %v10203_v37 }
 0x28e   : > { %v2059_v58 = vpop.f32.mrb[65].mxu1 }
 0x28f   : > { %v2060_v60 = vpop.f32.mrb[66].mxu1 }
 0x290   : > { %v2712_v62 = vpack.c.bf16 %v2060_v60, %v2057_v40  ;;  %v2062_v63 = vpop.f32.mrb[67].mxu1  ;;  %9132 = vmatpush3.bf16.msra.mxu0 %v10203_v37  ;;  %v10224_v37 = vld [vmem:[%s12488_s3 + $0x344] ss:$8 sps:$4 sm:$0xff]   ;;  %v10226_v60 = vld [vmem:[%s12488_s3 + $0x340] ss:$8 sps:$4 sm:$0xff]  }
 0x291   : > { %9145 = vmatprep.subr.bf16.mxu0 %v10222_v42 }
 0x292   : > { %2272 = vmatmul.mubr.bf16.gmra.mrb[172].mxu1 %v10195_v59  ;;  %9122 = vmatmul.mubr.msk.bf16.gmra.mrb[36].mxu0 %vm2813_vm1, %v2711_v55  ;;  %v10221_v55 = vld [vmem:[%s12488_s3 + $0x330] ss:$8 sps:$4 sm:$0xff]  }
 0x293   : > { %9125 = vmatprep.mubr.msk.bf16.mxu0 %vm2813_vm1, %v2712_v62  ;;  %2279 = vmatprep.mubr.bf16.mxu1 %v10196_v61  ;;  %v10227_v62 = vld [vmem:[%s12488_s3 + $0x354] ss:$8 sps:$4 sm:$0xff]  }
 0x295   : > { %v2065_v0 = vpop.f32.mrb[68].mxu1 }
 0x296   : > { %v2067_v1 = vpop.f32.mrb[69].mxu1 }
 0x297   : > { %v2068_v4 = vpop.f32.mrb[70].mxu1  ;;  %v10243_v1 = vld [vmem:[%s12489_s4 + $0x58] sm:$0xff]  }
 0x298   : > { %v2713_v6 = vpack.c.bf16 %v2068_v4, %v2065_v0  ;;  %v2070_v8 = vpop.f32.mrb[71].mxu1 }
 0x29a   : > { %2280 = vmatmul.mubr.bf16.gmra.mrb[176].mxu1 %v10198_v3  ;;  %9126 = vmatmul.mubr.msk.bf16.gmra.mrb[40].mxu0 %vm2813_vm1, %v2713_v6  ;;  %v11106_v3 = vld [vmem:[%s12489_s4 + $0x60] sm:$0xff]   ;;  %v10229_v6 = vld [vmem:[%s12488_s3 + $0x350] ss:$8 sps:$4 sm:$0xff]  }
 0x29b   : > { %2287 = vmatprep.mubr.bf16.mxu1 %v10199_v57 }
 0x29d   : > { %v2073_v22 = vpop.f32.mrb[72].mxu1 }
 0x29e   : > { %v2075_v10 = vpop.f32.mrb[73].mxu1 }
 0x29f   : > { %v2076_v13 = vpop.f32.mrb[74].mxu1 }
 0x2a0   : > { %v2714_v16 = vpack.c.bf16 %v2076_v13, %v2073_v22  ;;  %v2078_v18 = vpop.f32.mrb[75].mxu1  ;;  %v10230_v22 = vld [vmem:[%s12488_s3 + $0x364] ss:$8 sps:$4 sm:$0xff]  }
 0x2a2   : > { %2288 = vmatmul.mubr.bf16.gmra.mrb[180].mxu1 %v10201_v20  ;;  %9133 = vmatprep.mubr.msk.bf16.mxu0 %vm2813_vm1, %v2714_v16  ;;  %v10232_v16 = vld [vmem:[%s12488_s3 + $0x360] ss:$8 sps:$4 sm:$0xff]  }
 0x2a3   : > { %2295 = vmatprep.mubr.bf16.mxu1 %v10204_v15 }
 0x2a5   : > { %v2081_v21 = vpop.f32.mrb[76].mxu1 }
 0x2a6   : > { %v2083_v24 = vpop.f32.mrb[77].mxu1 }
 0x2a7   : > { %v2084_v27 = vpop.f32.mrb[78].mxu1 }
 0x2a8   : > { %v2715_v31 = vpack.c.bf16 %v2084_v27, %v2081_v21  ;;  %v2086_v32 = vpop.f32.mrb[79].mxu1  ;;  %v10233_v21 = vld [vmem:[%s12488_s3 + $0x374] ss:$8 sps:$4 sm:$0xff]  }
 0x2aa   : > { %2296 = vmatmul.mubr.bf16.gmra.mrb[184].mxu1 %v10206_v25  ;;  %9134 = vmatmul.mubr.msk.bf16.vlgmr.msra.gmra.mrb[32].mxu0 %vm2813_vm1, %v2715_v31  ;;  %v10235_v31 = vld [vmem:[%s12488_s3 + $0x370] ss:$8 sps:$4 sm:$0xff]  }
 0x2ab   : > { %2303 = vmatprep.mubr.bf16.mxu1 %v10207_v29  ;;  %9146 = vmatpush3.bf16.msra.mxu0 %v10222_v42 }
 0x2ac   : > { %9147 = vmatprep.subr.bf16.mxu0 %v10223_v34 }
 0x2ad   : > { %v2089_v38 = vpop.f32.mrb[80].mxu1 }
 0x2ae   : > { %v2091_v39 = vpop.f32.mrb[81].mxu1 }
 0x2af   : > { %v2092_v43 = vpop.f32.mrb[82].mxu1  ;;  %9148 = vmatpush3.bf16.msra.mxu0 %v10223_v34  ;;  %v10236_v34 = vld [vmem:[%s12488_s3 + $0x384] ss:$8 sps:$4 sm:$0xff]  }
 0x2b0   : > { %v2716_v45 = vpack.c.bf16 %v2092_v43, %v2089_v38  ;;  %v2094_v46 = vpop.f32.mrb[83].mxu1  ;;  %9161 = vmatprep.subr.bf16.mxu0 %v11054_v36  ;;  %v10238_v43 = vld [vmem:[%s12488_s3 + $0x380] ss:$8 sps:$4 sm:$0xff]  }
 0x2b2   : > { %2304 = vmatmul.mubr.bf16.gmra.mrb[188].mxu1 %v10209_v41  ;;  %9137 = vmatprep.mubr.msk.bf16.mxu0 %vm2813_vm1, %v2716_v45  ;;  %v10239_v45 = vld [vmem:[%s12488_s3 + $0x394] ss:$8 sps:$4 sm:$0xff]  }
 0x2b3   : > { %2311 = vmatprep.mubr.bf16.mxu1 %v10210_v44 }
 0x2b5   : > { %v2097_v47 = vpop.f32.mrb[84].mxu1 }
 0x2b6   : > { %v2099_v48 = vpop.f32.mrb[85].mxu1 }
 0x2b7   : > { %v2100_v5 = vpop.f32.mrb[86].mxu1 }
 0x2b8   : > { %v2717_v49 = vpack.c.bf16 %v2100_v5, %v2097_v47  ;;  %v2102_v9 = vpop.f32.mrb[87].mxu1  ;;  %v10241_v5 = vld [vmem:[%s12488_s3 + $0x390] ss:$8 sps:$4 sm:$0xff]  }
 0x2ba   : > { %2312 = vmatmul.mubr.bf16.gmra.mrb[192].mxu1 %v10212_v2  ;;  %9138 = vmatmul.mubr.msk.bf16.gmra.mrb[36].mxu0 %vm2813_vm1, %v2717_v49  ;;  %v10244_v49 = vld [vmem:[%s12488_s3 + $0x3a4] ss:$8 sps:$4 sm:$0xff]  }
 0x2bb   : > { %2319 = vmatprep.mubr.bf16.mxu1 %v10213_v7 }
 0x2bd   : > { %v2105_v11 = vpop.f32.mrb[88].mxu1 }
 0x2be   : > { %v2107_v12 = vpop.f32.mrb[89].mxu1 }
 0x2bf   : > { %v2108_v17 = vpop.f32.mrb[90].mxu1 }
 0x2c0   : > { %v2718_v50 = vpack.c.bf16 %v2108_v17, %v2105_v11  ;;  %v2110_v51 = vpop.f32.mrb[91].mxu1  ;;  %v10246_v17 = vld [vmem:[%s12488_s3 + $0x3a0] ss:$8 sps:$4 sm:$0xff]  }
 0x2c2   : > { %2320 = vmatmul.mubr.bf16.gmra.mrb[196].mxu1 %v10215_v14  ;;  %9141 = vmatprep.mubr.msk.bf16.mxu0 %vm2813_vm1, %v2718_v50  ;;  %v10247_v50 = vld [vmem:[%s12488_s3 + $0x3b4] ss:$8 sps:$4 sm:$0xff]  }
 0x2c3   : > { %2327 = vmatprep.mubr.bf16.mxu1 %v10216_v19 }
 0x2c5   : > { %v2113_v52 = vpop.f32.mrb[92].mxu1 }
 0x2c6   : > { %v2115_v53 = vpop.f32.mrb[93].mxu1 }
 0x2c7   : > { %v2116_v26 = vpop.f32.mrb[94].mxu1  ;;  %v10263_v53 = vld [vmem:[%s12489_s4 + $0x68] sm:$0xff]  }
 0x2c8   : > { %v2719_v30 = vpack.c.bf16 %v2116_v26, %v2113_v52  ;;  %v2118_v33 = vpop.f32.mrb[95].mxu1 }
 0x2ca   : > { %2328 = vmatmul.mubr.bf16.gmra.mrb[200].mxu1 %v10218_v23  ;;  %9142 = vmatmul.mubr.msk.bf16.gmra.mrb[40].mxu0 %vm2813_vm1, %v2719_v30  ;;  %v11158_v23 = vld [vmem:[%s12489_s4 + $0x70] sm:$0xff]  }
 0x2cb   : > { %2335 = vmatprep.mubr.bf16.mxu1 %v10219_v28  ;;  %v10249_v30 = vld [vmem:[%s12488_s3 + $0x3b0] ss:$8 sps:$4 sm:$0xff]  }
 0x2cd   : > { %v2121_v35 = vpop.f32.mrb[96].mxu1 }
 0x2ce   : > { %v2123_v54 = vpop.f32.mrb[97].mxu1 }
 0x2cf   : > { %v2124_v56 = vpop.f32.mrb[98].mxu1 }
 0x2d0   : > { %v2720_v40 = vpack.c.bf16 %v2124_v56, %v2121_v35  ;;  %v2126_v42 = vpop.f32.mrb[99].mxu1  ;;  %v10250_v35 = vld [vmem:[%s12488_s3 + $0x3c4] ss:$8 sps:$4 sm:$0xff]  }
 0x2d2   : > { %2336 = vmatmul.mubr.bf16.gmra.mrb[204].mxu1 %v10221_v55  ;;  %9149 = vmatprep.mubr.msk.bf16.mxu0 %vm2813_vm1, %v2720_v40  ;;  %v10252_v40 = vld [vmem:[%s12488_s3 + $0x3c0] ss:$8 sps:$4 sm:$0xff]  }
 0x2d3   : > { %2343 = vmatprep.mubr.bf16.mxu1 %v10224_v37 }
 0x2d5   : > { %v2129_v58 = vpop.f32.mrb[100].mxu1 }
 0x2d6   : > { %v2131_v59 = vpop.f32.mrb[101].mxu1 }
 0x2d7   : > { %v2132_v61 = vpop.f32.mrb[102].mxu1 }
 0x2d8   : > { %v2721_v63 = vpack.c.bf16 %v2132_v61, %v2129_v58  ;;  %v2134_v0 = vpop.f32.mrb[103].mxu1  ;;  %v10253_v58 = vld [vmem:[%s12488_s3 + $0x3d4] ss:$8 sps:$4 sm:$0xff]  }
 0x2da   : > { %2344 = vmatmul.mubr.bf16.gmra.mrb[208].mxu1 %v10226_v60  ;;  %9150 = vmatmul.mubr.msk.bf16.vlgmr.msra.gmra.mrb[32].mxu0 %vm2813_vm1, %v2721_v63  ;;  %v10255_v63 = vld [vmem:[%s12488_s3 + $0x3d0] ss:$8 sps:$4 sm:$0xff]  }
 0x2db   : > { %2351 = vmatprep.mubr.bf16.mxu1 %v10227_v62  ;;  %9162 = vmatpush3.bf16.msra.mxu0 %v11054_v36 }
 0x2dc   : > { %9163 = vmatprep.subr.bf16.mxu0 %v10243_v1 }
 0x2dd   : > { %v2137_v4 = vpop.f32.mrb[104].mxu1 }
 0x2de   : > { %v2139_v57 = vpop.f32.mrb[105].mxu1 }
 0x2df   : > { %v2140_v8 = vpop.f32.mrb[106].mxu1  ;;  %9164 = vmatpush3.bf16.msra.mxu0 %v10243_v1  ;;  %v10256_v1 = vld [vmem:[%s12488_s3 + $0x3e4] ss:$8 sps:$4 sm:$0xff]  }
 0x2e0   : > { %v2722_v10 = vpack.c.bf16 %v2140_v8, %v2137_v4  ;;  %v2142_v20 = vpop.f32.mrb[107].mxu1  ;;  %9177 = vmatprep.subr.bf16.mxu0 %v11106_v3  ;;  %v10258_v8 = vld [vmem:[%s12488_s3 + $0x3e0] ss:$8 sps:$4 sm:$0xff]  }
 0x2e2   : > { %2352 = vmatmul.mubr.bf16.gmra.mrb[212].mxu1 %v10229_v6  ;;  %9153 = vmatprep.mubr.msk.bf16.mxu0 %vm2813_vm1, %v2722_v10  ;;  %v10259_v10 = vld [vmem:[%s12488_s3 + $0x3f4] ss:$8 sps:$4 sm:$0xff]  }
 0x2e3   : > { %2359 = vmatprep.mubr.bf16.mxu1 %v10230_v22 }
 0x2e5   : > { %v2145_v13 = vpop.f32.mrb[108].mxu1 }
 0x2e6   : > { %v2147_v15 = vpop.f32.mrb[109].mxu1 }
 0x2e7   : > { %v2148_v18 = vpop.f32.mrb[110].mxu1 }
 0x2e8   : > { %v2723_v24 = vpack.c.bf16 %v2148_v18, %v2145_v13  ;;  %v2150_v25 = vpop.f32.mrb[111].mxu1  ;;  %v10261_v18 = vld [vmem:[%s12488_s3 + $0x3f0] ss:$8 sps:$4 sm:$0xff]  }
 0x2ea   : > { %2360 = vmatmul.mubr.bf16.gmra.mrb[216].mxu1 %v10232_v16  ;;  %9154 = vmatmul.mubr.msk.bf16.gmra.mrb[36].mxu0 %vm2813_vm1, %v2723_v24  ;;  %v10266_v24 = vld [vmem:[%s12488_s3 + $0x404] ss:$8 sps:$4 sm:$0xff]  }
 0x2eb   : > { %2367 = vmatprep.mubr.bf16.mxu1 %v10233_v21 }
 0x2ed   : > { %v2153_v27 = vpop.f32.mrb[112].mxu1 }
 0x2ee   : > { %v2155_v29 = vpop.f32.mrb[113].mxu1 }
 0x2ef   : > { %v2156_v32 = vpop.f32.mrb[114].mxu1 }
 0x2f0   : > { %v2724_v36 = vpack.c.bf16 %v2156_v32, %v2153_v27  ;;  %v2158_v38 = vpop.f32.mrb[115].mxu1  ;;  %v10264_v32 = vld [vmem:[%s12488_s3 + $0x400] ss:$8 sps:$4 sm:$0xff]  }
 0x2f2   : > { %2368 = vmatmul.mubr.bf16.gmra.mrb[220].mxu1 %v10235_v31  ;;  %9157 = vmatprep.mubr.msk.bf16.mxu0 %vm2813_vm1, %v2724_v36  ;;  %v10269_v36 = vld [vmem:[%s12488_s3 + $0x414] ss:$8 sps:$4 sm:$0xff]  }
 0x2f3   : > { %2375 = vmatprep.mubr.bf16.mxu1 %v10236_v34 }
 0x2f5   : > { %v2161_v39 = vpop.f32.mrb[116].mxu1 }
 0x2f6   : > { %v2163_v41 = vpop.f32.mrb[117].mxu1 }
 0x2f7   : > { %v2164_v44 = vpop.f32.mrb[118].mxu1  ;;  %v10283_v41 = vld [vmem:[%s12489_s4 + $0x78] sm:$0xff]  }
 0x2f8   : > { %v2725_v46 = vpack.c.bf16 %v2164_v44, %v2161_v39  ;;  %v2166_v47 = vpop.f32.mrb[119].mxu1 }
 0x2fa   : > { %2376 = vmatmul.mubr.bf16.gmra.mrb[224].mxu1 %v10238_v43  ;;  %9158 = vmatmul.mubr.msk.bf16.gmra.mrb[40].mxu0 %vm2813_vm1, %v2725_v46  ;;  %v11210_v43 = vld [vmem:[%s12489_s4 + $0x80] sm:$0xff]   ;;  %v10267_v46 = vld [vmem:[%s12488_s3 + $0x410] ss:$8 sps:$4 sm:$0xff]  }
 0x2fb   : > { %2383 = vmatprep.mubr.bf16.mxu1 %v10239_v45 }
 0x2fd   : > { %v2169_v48 = vpop.f32.mrb[120].mxu1 }
 0x2fe   : > { %v2171_v2 = vpop.f32.mrb[121].mxu1 }
 0x2ff   : > { %v2172_v7 = vpop.f32.mrb[122].mxu1 }
 0x300   : > { %v2726_v9 = vpack.c.bf16 %v2172_v7, %v2169_v48  ;;  %v2174_v11 = vpop.f32.mrb[123].mxu1  ;;  %v10272_v48 = vld [vmem:[%s12488_s3 + $0x424] ss:$8 sps:$4 sm:$0xff]  }
 0x302   : > { %2384 = vmatmul.mubr.bf16.gmra.mrb[228].mxu1 %v10241_v5  ;;  %9165 = vmatprep.mubr.msk.bf16.mxu0 %vm2813_vm1, %v2726_v9  ;;  %v10270_v9 = vld [vmem:[%s12488_s3 + $0x420] ss:$8 sps:$4 sm:$0xff]  }
 0x303   : > { %2391 = vmatprep.mubr.bf16.mxu1 %v10244_v49 }
 0x305   : > { %v2177_v12 = vpop.f32.mrb[124].mxu1 }
 0x306   : > { %v2179_v14 = vpop.f32.mrb[125].mxu1 }
 0x307   : > { %v2180_v19 = vpop.f32.mrb[126].mxu1 }
 0x308   : > { %v2727_v51 = vpack.c.bf16 %v2180_v19, %v2177_v12  ;;  %v2182_v52 = vpop.f32.mrb[127].mxu1  ;;  %v10275_v12 = vld [vmem:[%s12488_s3 + $0x434] ss:$8 sps:$4 sm:$0xff]  }
 0x30a   : > { %2392 = vmatmul.mubr.bf16.gmra.mrb[232].mxu1 %v10246_v17  ;;  %9166 = vmatmul.mubr.msk.bf16.vlgmr.msra.gmra.mrb[32].mxu0 %vm2813_vm1, %v2727_v51  ;;  %v10273_v51 = vld [vmem:[%s12488_s3 + $0x430] ss:$8 sps:$4 sm:$0xff]  }
 0x30b   : > { %2399 = vmatprep.mubr.bf16.mxu1 %v10247_v50  ;;  %9178 = vmatpush3.bf16.msra.mxu0 %v11106_v3 }
 0x30c   : > { %9179 = vmatprep.subr.bf16.mxu0 %v10263_v53 }
 0x30d   : > { %v2185_v26 = vpop.f32.mrb[128].mxu1 }
 0x30e   : > { %v2187_v28 = vpop.f32.mrb[129].mxu1 }
 0x30f   : > { %v2188_v33 = vpop.f32.mrb[130].mxu1  ;;  %9180 = vmatpush3.bf16.msra.mxu0 %v10263_v53  ;;  %v10278_v53 = vld [vmem:[%s12488_s3 + $0x444] ss:$8 sps:$4 sm:$0xff]  }
 0x310   : > { %v2728_v54 = vpack.c.bf16 %v2188_v33, %v2185_v26  ;;  %v2190_v55 = vpop.f32.mrb[131].mxu1  ;;  %9193 = vmatprep.subr.bf16.mxu0 %v11158_v23  ;;  %v10276_v33 = vld [vmem:[%s12488_s3 + $0x440] ss:$8 sps:$4 sm:$0xff]  }
 0x312   : > { %2400 = vmatmul.mubr.bf16.gmra.mrb[236].mxu1 %v10249_v30  ;;  %9169 = vmatprep.mubr.msk.bf16.mxu0 %vm2813_vm1, %v2728_v54  ;;  %v10281_v54 = vld [vmem:[%s12488_s3 + $0x454] ss:$8 sps:$4 sm:$0xff]  }
 0x313   : > { %2407 = vmatprep.mubr.bf16.mxu1 %v10250_v35 }
 0x315   : > { %v2193_v56 = vpop.f32.mrb[132].mxu1 }
 0x316   : > { %v2195_v37 = vpop.f32.mrb[133].mxu1 }
 0x317   : > { %v2196_v42 = vpop.f32.mrb[134].mxu1 }
 0x318   : > { %v2729_v59 = vpack.c.bf16 %v2196_v42, %v2193_v56  ;;  %v2198_v60 = vpop.f32.mrb[135].mxu1  ;;  %v10279_v42 = vld [vmem:[%s12488_s3 + $0x450] ss:$8 sps:$4 sm:$0xff]  }
 0x31a   : > { %2408 = vmatmul.mubr.bf16.gmra.mrb[240].mxu1 %v10252_v40  ;;  %9170 = vmatmul.mubr.msk.bf16.gmra.mrb[36].mxu0 %vm2813_vm1, %v2729_v59  ;;  %v10286_v59 = vld [vmem:[%s12488_s3 + $0x464] ss:$8 sps:$4 sm:$0xff]  }
 0x31b   : > { %2415 = vmatprep.mubr.bf16.mxu1 %v10253_v58 }
 0x31d   : > { %v2201_v61 = vpop.f32.mrb[136].mxu1 }
 0x31e   : > { %v2203_v62 = vpop.f32.mrb[137].mxu1 }
 0x31f   : > { %v2204_v0 = vpop.f32.mrb[138].mxu1 }
 0x320   : > { %v2730_v3 = vpack.c.bf16 %v2204_v0, %v2201_v61  ;;  %v2206_v4 = vpop.f32.mrb[139].mxu1  ;;  %v10284_v0 = vld [vmem:[%s12488_s3 + $0x460] ss:$8 sps:$4 sm:$0xff]  }
 0x322   : > { %2416 = vmatmul.mubr.bf16.gmra.mrb[244].mxu1 %v10255_v63  ;;  %9173 = vmatprep.mubr.msk.bf16.mxu0 %vm2813_vm1, %v2730_v3  ;;  %v10289_v3 = vld [vmem:[%s12488_s3 + $0x474] ss:$8 sps:$4 sm:$0xff]  }
 0x323   : > { %2423 = vmatprep.mubr.bf16.mxu1 %v10256_v1 }
 0x325   : > { %v2209_v57 = vpop.f32.mrb[140].mxu1 }
 0x326   : > { %v2211_v6 = vpop.f32.mrb[141].mxu1 }
 0x327   : > { %v2212_v22 = vpop.f32.mrb[142].mxu1  ;;  %v10303_v6 = vld [vmem:[%s12489_s4 + $0x88] sm:$0xff]  }
 0x328   : > { %v2731_v20 = vpack.c.bf16 %v2212_v22, %v2209_v57  ;;  %v2214_v13 = vpop.f32.mrb[143].mxu1 }
 0x32a   : > { %2424 = vmatmul.mubr.bf16.gmra.mrb[248].mxu1 %v10258_v8  ;;  %9174 = vmatmul.mubr.msk.bf16.gmra.mrb[40].mxu0 %vm2813_vm1, %v2731_v20  ;;  %v11262_v8 = vld [vmem:[%s12489_s4 + $0x90] sm:$0xff]  }
 0x32b   : > { %2431 = vmatprep.mubr.bf16.mxu1 %v10259_v10  ;;  %v10287_v20 = vld [vmem:[%s12488_s3 + $0x470] ss:$8 sps:$4 sm:$0xff]  }
 0x32d   : > { %v2217_v15 = vpop.f32.mrb[144].mxu1 }
 0x32e   : > { %v2219_v16 = vpop.f32.mrb[145].mxu1 }
 0x32f   : > { %v2220_v21 = vpop.f32.mrb[146].mxu1 }
 0x330   : > { %v2732_v25 = vpack.c.bf16 %v2220_v21, %v2217_v15  ;;  %v2222_v27 = vpop.f32.mrb[147].mxu1  ;;  %v10292_v15 = vld [vmem:[%s12488_s3 + $0x484] ss:$8 sps:$4 sm:$0xff]  }
 0x332   : > { %2432 = vmatmul.mubr.bf16.gmra.mrb[252].mxu1 %v10261_v18  ;;  %9181 = vmatprep.mubr.msk.bf16.mxu0 %vm2813_vm1, %v2732_v25  ;;  %v10290_v25 = vld [vmem:[%s12488_s3 + $0x480] ss:$8 sps:$4 sm:$0xff]  }
 0x333   : > { %2439 = vmatprep.mubr.bf16.mxu1 %v10266_v24 }
 0x335   : > { %v2225_v29 = vpop.f32.mrb[148].mxu1 }
 0x336   : > { %v2227_v31 = vpop.f32.mrb[149].mxu1 }
 0x337   : > { %v2228_v34 = vpop.f32.mrb[150].mxu1 }
 0x338   : > { %v2733_v38 = vpack.c.bf16 %v2228_v34, %v2225_v29  ;;  %v2230_v39 = vpop.f32.mrb[151].mxu1  ;;  %v10295_v29 = vld [vmem:[%s12488_s3 + $0x494] ss:$8 sps:$4 sm:$0xff]  }
 0x33a   : > { %2440 = vmatmul.mubr.bf16.gmra.mrb[0].mxu1 %v10264_v32  ;;  %9182 = vmatmul.mubr.msk.bf16.vlgmr.msra.gmra.mrb[32].mxu0 %vm2813_vm1, %v2733_v38  ;;  %v10293_v38 = vld [vmem:[%s12488_s3 + $0x490] ss:$8 sps:$4 sm:$0xff]  }
 0x33b   : > { %2447 = vmatprep.mubr.bf16.mxu1 %v10269_v36  ;;  %9194 = vmatpush3.bf16.msra.mxu0 %v11158_v23 }
 0x33c   : > { %9195 = vmatprep.subr.bf16.mxu0 %v10283_v41 }
 0x33d   : > { %v2233_v44 = vpop.f32.mrb[152].mxu1 }
 0x33e   : > { %v2235_v45 = vpop.f32.mrb[153].mxu1 }
 0x33f   : > { %v2236_v47 = vpop.f32.mrb[154].mxu1  ;;  %9196 = vmatpush3.bf16.msra.mxu0 %v10283_v41  ;;  %v10298_v41 = vld [vmem:[%s12488_s3 + $0x4a4] ss:$8 sps:$4 sm:$0xff]  }
 0x340   : > { %v2734_v2 = vpack.c.bf16 %v2236_v47, %v2233_v44  ;;  %v2238_v5 = vpop.f32.mrb[155].mxu1  ;;  %9209 = vmatprep.subr.bf16.mxu0 %v11210_v43  ;;  %v10296_v47 = vld [vmem:[%s12488_s3 + $0x4a0] ss:$8 sps:$4 sm:$0xff]  }
 0x342   : > { %2448 = vmatmul.mubr.bf16.gmra.mrb[4].mxu1 %v10267_v46  ;;  %9185 = vmatprep.mubr.msk.bf16.mxu0 %vm2813_vm1, %v2734_v2  ;;  %v10301_v2 = vld [vmem:[%s12488_s3 + $0x4b4] ss:$8 sps:$4 sm:$0xff]  }
 0x343   : > { %2455 = vmatprep.mubr.bf16.mxu1 %v10272_v48 }
 0x345   : > { %v2241_v7 = vpop.f32.mrb[156].mxu1 }
 0x346   : > { %v2243_v49 = vpop.f32.mrb[157].mxu1 }
 0x347   : > { %v2244_v11 = vpop.f32.mrb[158].mxu1 }
 0x348   : > { %v2735_v14 = vpack.c.bf16 %v2244_v11, %v2241_v7  ;;  %v2246_v17 = vpop.f32.mrb[159].mxu1  ;;  %v10299_v11 = vld [vmem:[%s12488_s3 + $0x4b0] ss:$8 sps:$4 sm:$0xff]  }
 0x34a   : > { %2456 = vmatmul.mubr.bf16.gmra.mrb[8].mxu1 %v10270_v9  ;;  %9186 = vmatmul.mubr.msk.bf16.gmra.mrb[36].mxu0 %vm2813_vm1, %v2735_v14  ;;  %v10306_v14 = vld [vmem:[%s12488_s3 + $0x4c4] ss:$8 sps:$4 sm:$0xff]  }
 0x34b   : > { %2463 = vmatprep.mubr.bf16.mxu1 %v10275_v12 }
 0x34d   : > { %v2249_v19 = vpop.f32.mrb[160].mxu1 }
 0x34e   : > { %v2251_v50 = vpop.f32.mrb[161].mxu1 }
 0x34f   : > { %v2252_v52 = vpop.f32.mrb[162].mxu1 }
 0x350   : > { %v2736_v23 = vpack.c.bf16 %v2252_v52, %v2249_v19  ;;  %v2254_v26 = vpop.f32.mrb[163].mxu1  ;;  %v10304_v52 = vld [vmem:[%s12488_s3 + $0x4c0] ss:$8 sps:$4 sm:$0xff]  }
 0x352   : > { %2464 = vmatmul.mubr.bf16.gmra.mrb[12].mxu1 %v10273_v51  ;;  %9189 = vmatprep.mubr.msk.bf16.mxu0 %vm2813_vm1, %v2736_v23  ;;  %v10309_v23 = vld [vmem:[%s12488_s3 + $0x4d4] ss:$8 sps:$4 sm:$0xff]  }
 0x353   : > { %2471 = vmatprep.mubr.bf16.mxu1 %v10278_v53 }
 0x355   : > { %v2257_v28 = vpop.f32.mrb[164].mxu1 }
 0x356   : > { %v2259_v30 = vpop.f32.mrb[165].mxu1 }
 0x357   : > { %v2260_v35 = vpop.f32.mrb[166].mxu1  ;;  %v10323_v30 = vld [vmem:[%s12489_s4 + $0x98] sm:$0xff]  }
 0x358   : > { %v2737_v55 = vpack.c.bf16 %v2260_v35, %v2257_v28  ;;  %v2262_v56 = vpop.f32.mrb[167].mxu1 }
 0x35a   : > { %2472 = vmatmul.mubr.bf16.gmra.mrb[16].mxu1 %v10276_v33  ;;  %9190 = vmatmul.mubr.msk.bf16.gmra.mrb[40].mxu0 %vm2813_vm1, %v2737_v55  ;;  %v11314_v33 = vld [vmem:[%s12489_s4 + $0xa0] sm:$0xff]   ;;  %v10307_v55 = vld [vmem:[%s12488_s3 + $0x4d0] ss:$8 sps:$4 sm:$0xff]  }
 0x35b   : > { %2479 = vmatprep.mubr.bf16.mxu1 %v10281_v54 }
 0x35d   : > { %v2265_v37 = vpop.f32.mrb[168].mxu1 }
 0x35e   : > { %v2267_v40 = vpop.f32.mrb[169].mxu1 }
 0x35f   : > { %v2268_v58 = vpop.f32.mrb[170].mxu1 }
 0x360   : > { %v2738_v60 = vpack.c.bf16 %v2268_v58, %v2265_v37  ;;  %v2270_v61 = vpop.f32.mrb[171].mxu1  ;;  %v10312_v37 = vld [vmem:[%s12488_s3 + $0x4e4] ss:$8 sps:$4 sm:$0xff]  }
 0x362   : > { %2480 = vmatmul.mubr.bf16.gmra.mrb[20].mxu1 %v10279_v42  ;;  %9197 = vmatprep.mubr.msk.bf16.mxu0 %vm2813_vm1, %v2738_v60  ;;  %v10310_v60 = vld [vmem:[%s12488_s3 + $0x4e0] ss:$8 sps:$4 sm:$0xff]  }
 0x363   : > { %2487 = vmatprep.mubr.bf16.mxu1 %v10286_v59 }
 0x365   : > { %v2273_v62 = vpop.f32.mrb[172].mxu1 }
 0x366   : > { %v2275_v63 = vpop.f32.mrb[173].mxu1 }
 0x367   : > { %v2276_v1 = vpop.f32.mrb[174].mxu1 }
 0x368   : > { %v2739_v4 = vpack.c.bf16 %v2276_v1, %v2273_v62  ;;  %v2278_v57 = vpop.f32.mrb[175].mxu1  ;;  %v10315_v62 = vld [vmem:[%s12488_s3 + $0x4f4] ss:$8 sps:$4 sm:$0xff]  }
 0x36a   : > { %2488 = vmatmul.mubr.bf16.gmra.mrb[24].mxu1 %v10284_v0  ;;  %9198 = vmatmul.mubr.msk.bf16.vlgmr.msra.gmra.mrb[32].mxu0 %vm2813_vm1, %v2739_v4  ;;  %v10313_v4 = vld [vmem:[%s12488_s3 + $0x4f0] ss:$8 sps:$4 sm:$0xff]  }
 0x36b   : > { %2495 = vmatprep.mubr.bf16.mxu1 %v10289_v3  ;;  %9210 = vmatpush3.bf16.msra.mxu0 %v11210_v43 }
 0x36c   : > { %9211 = vmatprep.subr.bf16.mxu0 %v10303_v6 }
 0x36d   : > { %v2281_v22 = vpop.f32.mrb[176].mxu1 }
 0x36e   : > { %v2283_v10 = vpop.f32.mrb[177].mxu1 }
 0x36f   : > { %v2284_v13 = vpop.f32.mrb[178].mxu1  ;;  %9212 = vmatpush3.bf16.msra.mxu0 %v10303_v6  ;;  %v10318_v6 = vld [vmem:[%s12488_s3 + $0x504] ss:$8 sps:$4 sm:$0xff]  }
 0x370   : > { %v2740_v16 = vpack.c.bf16 %v2284_v13, %v2281_v22  ;;  %v2286_v18 = vpop.f32.mrb[179].mxu1  ;;  %9225 = vmatprep.subr.bf16.mxu0 %v11262_v8  ;;  %v10316_v13 = vld [vmem:[%s12488_s3 + $0x500] ss:$8 sps:$4 sm:$0xff]  }
 0x372   : > { %2496 = vmatmul.mubr.bf16.gmra.mrb[28].mxu1 %v10287_v20  ;;  %9201 = vmatprep.mubr.msk.bf16.mxu0 %vm2813_vm1, %v2740_v16  ;;  %v10321_v16 = vld [vmem:[%s12488_s3 + $0x514] ss:$8 sps:$4 sm:$0xff]  }
 0x373   : > { %2503 = vmatprep.mubr.bf16.mxu1 %v10292_v15 }
 0x375   : > { %v2289_v21 = vpop.f32.mrb[180].mxu1 }
 0x376   : > { %v2291_v24 = vpop.f32.mrb[181].mxu1 }
 0x377   : > { %v2292_v27 = vpop.f32.mrb[182].mxu1 }
 0x378   : > { %v2741_v31 = vpack.c.bf16 %v2292_v27, %v2289_v21  ;;  %v2294_v32 = vpop.f32.mrb[183].mxu1  ;;  %v10319_v27 = vld [vmem:[%s12488_s3 + $0x510] ss:$8 sps:$4 sm:$0xff]  }
 0x37a   : > { %2504 = vmatmul.mubr.bf16.gmra.mrb[32].mxu1 %v10290_v25  ;;  %9202 = vmatmul.mubr.msk.bf16.gmra.mrb[36].mxu0 %vm2813_vm1, %v2741_v31  ;;  %v10326_v31 = vld [vmem:[%s12488_s3 + $0x524] ss:$8 sps:$4 sm:$0xff]  }
 0x37b   : > { %2511 = vmatprep.mubr.bf16.mxu1 %v10295_v29 }
 0x37d   : > { %v2297_v34 = vpop.f32.mrb[184].mxu1 }
 0x37e   : > { %v2299_v36 = vpop.f32.mrb[185].mxu1 }
 0x37f   : > { %v2300_v39 = vpop.f32.mrb[186].mxu1 }
 0x380   : > { %v2742_v43 = vpack.c.bf16 %v2300_v39, %v2297_v34  ;;  %v2302_v44 = vpop.f32.mrb[187].mxu1  ;;  %v10324_v39 = vld [vmem:[%s12488_s3 + $0x520] ss:$8 sps:$4 sm:$0xff]  }
 0x382   : > { %2512 = vmatmul.mubr.bf16.gmra.mrb[36].mxu1 %v10293_v38  ;;  %9205 = vmatprep.mubr.msk.bf16.mxu0 %vm2813_vm1, %v2742_v43  ;;  %v10329_v43 = vld [vmem:[%s12488_s3 + $0x534] ss:$8 sps:$4 sm:$0xff]  }
 0x383   : > { %2519 = vmatprep.mubr.bf16.mxu1 %v10298_v41 }
 0x385   : > { %v2305_v45 = vpop.f32.mrb[188].mxu1 }
 0x386   : > { %v2307_v46 = vpop.f32.mrb[189].mxu1 }
 0x387   : > { %v2308_v48 = vpop.f32.mrb[190].mxu1  ;;  %v10343_v46 = vld [vmem:[%s12489_s4 + $0xa8] sm:$0xff]  }
 0x388   : > { %v2743_v5 = vpack.c.bf16 %v2308_v48, %v2305_v45  ;;  %v2310_v7 = vpop.f32.mrb[191].mxu1 }
 0x38a   : > { %2520 = vmatmul.mubr.bf16.gmra.mrb[40].mxu1 %v10296_v47  ;;  %9206 = vmatmul.mubr.msk.bf16.gmra.mrb[40].mxu0 %vm2813_vm1, %v2743_v5  ;;  %v11366_v47 = vld [vmem:[%s12489_s4 + $0xb0] sm:$0xff]  }
 0x38b   : > { %2527 = vmatprep.mubr.bf16.mxu1 %v10301_v2  ;;  %v10327_v5 = vld [vmem:[%s12488_s3 + $0x530] ss:$8 sps:$4 sm:$0xff]  }
 0x38d   : > { %v2313_v49 = vpop.f32.mrb[192].mxu1 }
 0x38e   : > { %v2315_v9 = vpop.f32.mrb[193].mxu1 }
 0x38f   : > { %v2316_v12 = vpop.f32.mrb[194].mxu1 }
 0x390   : > { %v2744_v17 = vpack.c.bf16 %v2316_v12, %v2313_v49  ;;  %v2318_v19 = vpop.f32.mrb[195].mxu1  ;;  %v10332_v49 = vld [vmem:[%s12488_s3 + $0x544] ss:$8 sps:$4 sm:$0xff]  }
 0x392   : > { %2528 = vmatmul.mubr.bf16.gmra.mrb[44].mxu1 %v10299_v11  ;;  %9213 = vmatprep.mubr.msk.bf16.mxu0 %vm2813_vm1, %v2744_v17  ;;  %v10330_v17 = vld [vmem:[%s12488_s3 + $0x540] ss:$8 sps:$4 sm:$0xff]  }
 0x393   : > { %2535 = vmatprep.mubr.bf16.mxu1 %v10306_v14 }
 0x395   : > { %v2321_v50 = vpop.f32.mrb[196].mxu1 }
 0x396   : > { %v2323_v51 = vpop.f32.mrb[197].mxu1 }
 0x397   : > { %v2324_v53 = vpop.f32.mrb[198].mxu1 }
 0x398   : > { %v2745_v26 = vpack.c.bf16 %v2324_v53, %v2321_v50  ;;  %v2326_v28 = vpop.f32.mrb[199].mxu1  ;;  %v10335_v50 = vld [vmem:[%s12488_s3 + $0x554] ss:$8 sps:$4 sm:$0xff]  }
 0x39a   : > { %2536 = vmatmul.mubr.bf16.gmra.mrb[48].mxu1 %v10304_v52  ;;  %9214 = vmatmul.mubr.msk.bf16.vlgmr.msra.gmra.mrb[32].mxu0 %vm2813_vm1, %v2745_v26  ;;  %v10333_v26 = vld [vmem:[%s12488_s3 + $0x550] ss:$8 sps:$4 sm:$0xff]  }
 0x39b   : > { %2543 = vmatprep.mubr.bf16.mxu1 %v10309_v23  ;;  %9226 = vmatpush3.bf16.msra.mxu0 %v11262_v8 }
 0x39c   : > { %9227 = vmatprep.subr.bf16.mxu0 %v10323_v30 }
 0x39d   : > { %v2329_v35 = vpop.f32.mrb[200].mxu1 }
 0x39e   : > { %v2331_v54 = vpop.f32.mrb[201].mxu1 }
 0x39f   : > { %v2332_v56 = vpop.f32.mrb[202].mxu1  ;;  %9228 = vmatpush3.bf16.msra.mxu0 %v10323_v30  ;;  %v10338_v30 = vld [vmem:[%s12488_s3 + $0x564] ss:$8 sps:$4 sm:$0xff]  }
 0x3a0   : > { %v2746_v40 = vpack.c.bf16 %v2332_v56, %v2329_v35  ;;  %v2334_v42 = vpop.f32.mrb[203].mxu1  ;;  %9241 = vmatprep.subr.bf16.mxu0 %v11314_v33  ;;  %v10336_v56 = vld [vmem:[%s12488_s3 + $0x560] ss:$8 sps:$4 sm:$0xff]  }
 0x3a2   : > { %2544 = vmatmul.mubr.bf16.gmra.mrb[52].mxu1 %v10307_v55  ;;  %9217 = vmatprep.mubr.msk.bf16.mxu0 %vm2813_vm1, %v2746_v40  ;;  %v10341_v40 = vld [vmem:[%s12488_s3 + $0x574] ss:$8 sps:$4 sm:$0xff]  }
 0x3a3   : > { %2551 = vmatprep.mubr.bf16.mxu1 %v10312_v37 }
 0x3a5   : > { %v2337_v58 = vpop.f32.mrb[204].mxu1 }
 0x3a6   : > { %v2339_v59 = vpop.f32.mrb[205].mxu1 }
 0x3a7   : > { %v2340_v61 = vpop.f32.mrb[206].mxu1 }
 0x3a8   : > { %v2747_v63 = vpack.c.bf16 %v2340_v61, %v2337_v58  ;;  %v2342_v0 = vpop.f32.mrb[207].mxu1  ;;  %v10339_v61 = vld [vmem:[%s12488_s3 + $0x570] ss:$8 sps:$4 sm:$0xff]  }
 0x3aa   : > { %2552 = vmatmul.mubr.bf16.gmra.mrb[56].mxu1 %v10310_v60  ;;  %9218 = vmatmul.mubr.msk.bf16.gmra.mrb[36].mxu0 %vm2813_vm1, %v2747_v63  ;;  %v10346_v63 = vld [vmem:[%s12488_s3 + $0x584] ss:$8 sps:$4 sm:$0xff]  }
 0x3ab   : > { %2559 = vmatprep.mubr.bf16.mxu1 %v10315_v62 }
 0x3ad   : > { %v2345_v1 = vpop.f32.mrb[208].mxu1 }
 0x3ae   : > { %v2347_v3 = vpop.f32.mrb[209].mxu1 }
 0x3af   : > { %v2348_v57 = vpop.f32.mrb[210].mxu1 }
 0x3b0   : > { %v2748_v8 = vpack.c.bf16 %v2348_v57, %v2345_v1  ;;  %v2350_v22 = vpop.f32.mrb[211].mxu1  ;;  %v10344_v57 = vld [vmem:[%s12488_s3 + $0x580] ss:$8 sps:$4 sm:$0xff]  }
 0x3b2   : > { %2560 = vmatmul.mubr.bf16.gmra.mrb[60].mxu1 %v10313_v4  ;;  %9221 = vmatprep.mubr.msk.bf16.mxu0 %vm2813_vm1, %v2748_v8  ;;  %v10349_v8 = vld [vmem:[%s12488_s3 + $0x594] ss:$8 sps:$4 sm:$0xff]  }
 0x3b3   : > { %2567 = vmatprep.mubr.bf16.mxu1 %v10318_v6 }
 0x3b5   : > { %v2353_v10 = vpop.f32.mrb[212].mxu1 }
 0x3b6   : > { %v2355_v20 = vpop.f32.mrb[213].mxu1 }
 0x3b7   : > { %v2356_v15 = vpop.f32.mrb[214].mxu1  ;;  %v10363_v20 = vld [vmem:[%s12489_s4 + $0xb8] sm:$0xff]  }
 0x3b8   : > { %v2749_v18 = vpack.c.bf16 %v2356_v15, %v2353_v10  ;;  %v2358_v21 = vpop.f32.mrb[215].mxu1 }
 0x3ba   : > { %2568 = vmatmul.mubr.bf16.gmra.mrb[64].mxu1 %v10316_v13  ;;  %9222 = vmatmul.mubr.msk.bf16.gmra.mrb[40].mxu0 %vm2813_vm1, %v2749_v18  ;;  %v11418_v13 = vld [vmem:[%s12489_s4 + $0xc0] sm:$0xff]   ;;  %v10347_v18 = vld [vmem:[%s12488_s3 + $0x590] ss:$8 sps:$4 sm:$0xff]  }
 0x3bb   : > { %2575 = vmatprep.mubr.bf16.mxu1 %v10321_v16 }
 0x3bd   : > { %v2361_v24 = vpop.f32.mrb[216].mxu1 }
 0x3be   : > { %v2363_v25 = vpop.f32.mrb[217].mxu1 }
 0x3bf   : > { %v2364_v29 = vpop.f32.mrb[218].mxu1 }
 0x3c0   : > { %v2750_v32 = vpack.c.bf16 %v2364_v29, %v2361_v24  ;;  %v2366_v34 = vpop.f32.mrb[219].mxu1  ;;  %v10352_v24 = vld [vmem:[%s12488_s3 + $0x5a4] ss:$8 sps:$4 sm:$0xff]  }
 0x3c2   : > { %2576 = vmatmul.mubr.bf16.gmra.mrb[68].mxu1 %v10319_v27  ;;  %9229 = vmatprep.mubr.msk.bf16.mxu0 %vm2813_vm1, %v2750_v32  ;;  %v10350_v32 = vld [vmem:[%s12488_s3 + $0x5a0] ss:$8 sps:$4 sm:$0xff]  }
 0x3c3   : > { %2583 = vmatprep.mubr.bf16.mxu1 %v10326_v31 }
 0x3c5   : > { %v2369_v36 = vpop.f32.mrb[220].mxu1 }
 0x3c6   : > { %v2371_v38 = vpop.f32.mrb[221].mxu1 }
 0x3c7   : > { %v2372_v41 = vpop.f32.mrb[222].mxu1 }
 0x3c8   : > { %v2751_v44 = vpack.c.bf16 %v2372_v41, %v2369_v36  ;;  %v2374_v45 = vpop.f32.mrb[223].mxu1  ;;  %v10355_v36 = vld [vmem:[%s12488_s3 + $0x5b4] ss:$8 sps:$4 sm:$0xff]  }
 0x3ca   : > { %2584 = vmatmul.mubr.bf16.gmra.mrb[72].mxu1 %v10324_v39  ;;  %9230 = vmatmul.mubr.msk.bf16.vlgmr.msra.gmra.mrb[32].mxu0 %vm2813_vm1, %v2751_v44  ;;  %v10353_v44 = vld [vmem:[%s12488_s3 + $0x5b0] ss:$8 sps:$4 sm:$0xff]  }
 0x3cb   : > { %2591 = vmatprep.mubr.bf16.mxu1 %v10329_v43  ;;  %9242 = vmatpush3.bf16.msra.mxu0 %v11314_v33 }
 0x3cc   : > { %9243 = vmatprep.subr.bf16.mxu0 %v10343_v46 }
 0x3cd   : > { %v2377_v48 = vpop.f32.mrb[224].mxu1 }
 0x3ce   : > { %v2379_v2 = vpop.f32.mrb[225].mxu1 }
 0x3cf   : > { %v2380_v7 = vpop.f32.mrb[226].mxu1  ;;  %9244 = vmatpush3.bf16.msra.mxu0 %v10343_v46  ;;  %v10358_v46 = vld [vmem:[%s12488_s3 + $0x5c4] ss:$8 sps:$4 sm:$0xff]  }
 0x3d0   : > { %v2752_v9 = vpack.c.bf16 %v2380_v7, %v2377_v48  ;;  %v2382_v11 = vpop.f32.mrb[227].mxu1  ;;  %9257 = vmatprep.subr.bf16.mxu0 %v11366_v47  ;;  %v10356_v7 = vld [vmem:[%s12488_s3 + $0x5c0] ss:$8 sps:$4 sm:$0xff]  }
 0x3d2   : > { %2592 = vmatmul.mubr.bf16.gmra.mrb[76].mxu1 %v10327_v5  ;;  %9233 = vmatprep.mubr.msk.bf16.mxu0 %vm2813_vm1, %v2752_v9  ;;  %v10361_v9 = vld [vmem:[%s12488_s3 + $0x5d4] ss:$8 sps:$4 sm:$0xff]  }
 0x3d3   : > { %2599 = vmatprep.mubr.bf16.mxu1 %v10332_v49 }
 0x3d5   : > { %v2385_v12 = vpop.f32.mrb[228].mxu1 }
 0x3d6   : > { %v2387_v14 = vpop.f32.mrb[229].mxu1 }
 0x3d7   : > { %v2388_v19 = vpop.f32.mrb[230].mxu1 }
 0x3d8   : > { %v2753_v51 = vpack.c.bf16 %v2388_v19, %v2385_v12  ;;  %v2390_v52 = vpop.f32.mrb[231].mxu1  ;;  %v10359_v19 = vld [vmem:[%s12488_s3 + $0x5d0] ss:$8 sps:$4 sm:$0xff]  }
 0x3da   : > { %2600 = vmatmul.mubr.bf16.gmra.mrb[80].mxu1 %v10330_v17  ;;  %9234 = vmatmul.mubr.msk.bf16.gmra.mrb[36].mxu0 %vm2813_vm1, %v2753_v51  ;;  %v10366_v51 = vld [vmem:[%s12488_s3 + $0x5e4] ss:$8 sps:$4 sm:$0xff]  }
 0x3db   : > { %2607 = vmatprep.mubr.bf16.mxu1 %v10335_v50 }
 0x3dd   : > { %v2393_v53 = vpop.f32.mrb[232].mxu1 }
 0x3de   : > { %v2395_v23 = vpop.f32.mrb[233].mxu1 }
 0x3df   : > { %v2396_v28 = vpop.f32.mrb[234].mxu1 }
 0x3e0   : > { %v2754_v33 = vpack.c.bf16 %v2396_v28, %v2393_v53  ;;  %v2398_v35 = vpop.f32.mrb[235].mxu1  ;;  %v10364_v28 = vld [vmem:[%s12488_s3 + $0x5e0] ss:$8 sps:$4 sm:$0xff]  }
 0x3e2   : > { %2608 = vmatmul.mubr.bf16.gmra.mrb[84].mxu1 %v10333_v26  ;;  %9237 = vmatprep.mubr.msk.bf16.mxu0 %vm2813_vm1, %v2754_v33  ;;  %v10369_v33 = vld [vmem:[%s12488_s3 + $0x5f4] ss:$8 sps:$4 sm:$0xff]  }
 0x3e3   : > { %2615 = vmatprep.mubr.bf16.mxu1 %v10338_v30 }
 0x3e5   : > { %v2401_v54 = vpop.f32.mrb[236].mxu1 }
 0x3e6   : > { %v2403_v55 = vpop.f32.mrb[237].mxu1 }
 0x3e7   : > { %v2404_v37 = vpop.f32.mrb[238].mxu1  ;;  %v10371_v55 = vld [vmem:[%s12489_s4 + $0xc8] sm:$0xff]  }
 0x3e8   : > { %v2755_v42 = vpack.c.bf16 %v2404_v37, %v2401_v54  ;;  %v2406_v58 = vpop.f32.mrb[239].mxu1 }
 0x3ea   : > { %2616 = vmatmul.mubr.bf16.gmra.mrb[88].mxu1 %v10336_v56  ;;  %9238 = vmatmul.mubr.msk.bf16.gmra.mrb[40].mxu0 %vm2813_vm1, %v2755_v42  ;;  %v10372_v56 = vld [vmem:[%s12489_s4 + $0xd0] sm:$0xff]  }
 0x3eb   : > { %2623 = vmatprep.mubr.bf16.mxu1 %v10341_v40  ;;  %v10367_v42 = vld [vmem:[%s12488_s3 + $0x5f0] ss:$8 sps:$4 sm:$0xff]  }
 0x3ed   : > { %v2409_v59 = vpop.f32.mrb[240].mxu1 }
 0x3ee   : > { %v2411_v60 = vpop.f32.mrb[241].mxu1 }
 0x3ef   : > { %v2412_v62 = vpop.f32.mrb[242].mxu1 }
 0x3f0   : > { %v2756_v0 = vpack.c.bf16 %v2412_v62, %v2409_v59  ;;  %v2414_v1 = vpop.f32.mrb[243].mxu1 }
 0x3f2   : > { %2624 = vmatmul.mubr.bf16.gmra.mrb[92].mxu1 %v10339_v61  ;;  %9245 = vmatprep.mubr.msk.bf16.mxu0 %vm2813_vm1, %v2756_v0 }
 0x3f3   : > { %2631 = vmatprep.mubr.bf16.mxu1 %v10346_v63 }
 0x3f5   : > { %v2417_v3 = vpop.f32.mrb[244].mxu1 }
 0x3f6   : > { %v2419_v4 = vpop.f32.mrb[245].mxu1 }
 0x3f7   : > { %v2420_v6 = vpop.f32.mrb[246].mxu1 }
 0x3f8   : > { %v2757_v22 = vpack.c.bf16 %v2420_v6, %v2417_v3  ;;  %v2422_v10 = vpop.f32.mrb[247].mxu1 }
 0x3fa   : > { %2632 = vmatmul.mubr.bf16.gmra.mrb[96].mxu1 %v10344_v57  ;;  %9246 = vmatmul.mubr.msk.bf16.vlgmr.msra.gmra.mrb[32].mxu0 %vm2813_vm1, %v2757_v22 }
 0x3fb   : > { %2639 = vmatprep.mubr.bf16.mxu1 %v10349_v8  ;;  %9258 = vmatpush3.bf16.msra.mxu0 %v11366_v47 }
 0x3fc   : > { %9259 = vmatprep.subr.bf16.mxu0 %v10363_v20 }
 0x3fd   : > { %v2425_v15 = vpop.f32.mrb[248].mxu1 }
 0x3fe   : > { %v2427_v16 = vpop.f32.mrb[249].mxu1 }
 0x3ff   : > { %v2428_v21 = vpop.f32.mrb[250].mxu1  ;;  %9260 = vmatpush3.bf16.msra.mxu0 %v10363_v20 }
 0x400   : > { %v2758_v25 = vpack.c.bf16 %v2428_v21, %v2425_v15  ;;  %v2430_v27 = vpop.f32.mrb[251].mxu1  ;;  %9273 = vmatprep.subr.bf16.mxu0 %v11418_v13 }
 0x402   : > { %2640 = vmatmul.mubr.bf16.gmra.mrb[100].mxu1 %v10347_v18  ;;  %9249 = vmatprep.mubr.msk.bf16.mxu0 %vm2813_vm1, %v2758_v25 }
 0x403   : > { %2647 = vmatprep.mubr.bf16.mxu1 %v10352_v24 }
 0x405   : > { %v2433_v29 = vpop.f32.mrb[252].mxu1 }
 0x406   : > { %v2435_v31 = vpop.f32.mrb[253].mxu1 }
 0x407   : > { %v2436_v34 = vpop.f32.mrb[254].mxu1 }
 0x408   : > { %v2759_v38 = vpack.c.bf16 %v2436_v34, %v2433_v29  ;;  %v2438_v39 = vpop.f32.mrb[255].mxu1 }
 0x40a   : > { %2648 = vmatmul.mubr.bf16.gmra.mrb[104].mxu1 %v10350_v32  ;;  %9250 = vmatmul.mubr.msk.bf16.gmra.mrb[36].mxu0 %vm2813_vm1, %v2759_v38  ;;  %v10374_v38 = vld [vmem:[%s12489_s4 + $0xe0] sm:$0xff]  }
 0x40b   : > { %2655 = vmatprep.mubr.bf16.mxu1 %v10355_v36  ;;  %v10373_v36 = vld [vmem:[%s12489_s4 + $0xd8] sm:$0xff]  }
 0x40d   : > { %v2441_v41 = vpop.f32.mrb[0].mxu1 }
 0x40e   : > { %v2443_v43 = vpop.f32.mrb[1].mxu1 }
 0x40f   : > { %v2444_v45 = vpop.f32.mrb[2].mxu1 }
 0x410   : > { %v2760_v47 = vpack.c.bf16 %v2444_v45, %v2441_v41  ;;  %v2446_v48 = vpop.f32.mrb[3].mxu1 }
 0x412   : > { %2656 = vmatmul.mubr.bf16.gmra.mrb[108].mxu1 %v10353_v44  ;;  %9253 = vmatprep.mubr.msk.bf16.mxu0 %vm2813_vm1, %v2760_v47 }
 0x413   : > { %2663 = vmatprep.mubr.bf16.mxu1 %v10358_v46 }
 0x415   : > { %v2449_v2 = vpop.f32.mrb[4].mxu1 }
 0x416   : > { %v2451_v5 = vpop.f32.mrb[5].mxu1 }
 0x417   : > { %v2452_v49 = vpop.f32.mrb[6].mxu1 }
 0x418   : > { %v2761_v11 = vpack.c.bf16 %v2452_v49, %v2449_v2  ;;  %v2454_v12 = vpop.f32.mrb[7].mxu1 }
 0x41a   : > { %2664 = vmatmul.mubr.bf16.gmra.mrb[112].mxu1 %v10356_v7  ;;  %9254 = vmatmul.mubr.msk.bf16.gmra.mrb[40].mxu0 %vm2813_vm1, %v2761_v11 }
 0x41b   : > { %2671 = vmatprep.mubr.bf16.mxu1 %v10361_v9 }
 0x41d   : > { %v2457_v14 = vpop.f32.mrb[8].mxu1 }
 0x41e   : > { %v2459_v17 = vpop.f32.mrb[9].mxu1 }
 0x41f   : > { %v2460_v50 = vpop.f32.mrb[10].mxu1 }
 0x420   : > { %v2762_v52 = vpack.c.bf16 %v2460_v50, %v2457_v14  ;;  %v2462_v53 = vpop.f32.mrb[11].mxu1 }
 0x422   : > { %2672 = vmatmul.mubr.bf16.gmra.mrb[116].mxu1 %v10359_v19  ;;  %9261 = vmatprep.mubr.msk.bf16.mxu0 %vm2813_vm1, %v2762_v52 }
 0x423   : > { %2679 = vmatprep.mubr.bf16.mxu1 %v10366_v51 }
 0x425   : > { %v2465_v23 = vpop.f32.mrb[12].mxu1 }
 0x426   : > { %v2467_v26 = vpop.f32.mrb[13].mxu1 }
 0x427   : > { %v2468_v30 = vpop.f32.mrb[14].mxu1 }
 0x428   : > { %v2763_v35 = vpack.c.bf16 %v2468_v30, %v2465_v23  ;;  %v2470_v54 = vpop.f32.mrb[15].mxu1 }
 0x42a   : > { %2680 = vmatmul.mubr.bf16.gmra.mrb[120].mxu1 %v10364_v28  ;;  %9262 = vmatmul.mubr.msk.bf16.vlgmr.msra.gmra.mrb[32].mxu0 %vm2813_vm1, %v2763_v35 }
 0x42b   : > { %2687 = vmatprep.mubr.bf16.mxu1 %v10369_v33  ;;  %9274 = vmatpush3.bf16.msra.mxu0 %v11418_v13 }
 0x42c   : > { %9275 = vmatprep.subr.bf16.mxu0 %v10371_v55 }
 0x42d   : > { %v2473_v37 = vpop.f32.mrb[16].mxu1 }
 0x42e   : > { %v2475_v40 = vpop.f32.mrb[17].mxu1 }
 0x42f   : > { %v2476_v58 = vpop.f32.mrb[18].mxu1  ;;  %9276 = vmatpush3.bf16.msra.mxu0 %v10371_v55 }
 0x430   : > { %v2764_v59 = vpack.c.bf16 %v2476_v58, %v2473_v37  ;;  %v2478_v60 = vpop.f32.mrb[19].mxu1  ;;  %9289 = vmatprep.subr.bf16.mxu0 %v10372_v56  ;;  %v10376_v37 = vld [vmem:[%s12489_s4 + $0xf0] sm:$0xff]  }
 0x432   : > { %2688 = vmatmul.mubr.bf16.gmra.mrb[124].mxu1 %v10367_v42  ;;  %9265 = vmatprep.mubr.msk.bf16.mxu0 %vm2813_vm1, %v2764_v59 }
 0x435   : > { %v2481_v61 = vpop.f32.mrb[20].mxu1 }
 0x436   : > { %v2483_v62 = vpop.f32.mrb[21].mxu1 }
 0x437   : > { %v2484_v63 = vpop.f32.mrb[22].mxu1 }
 0x438   : > { %v2765_v0 = vpack.c.bf16 %v2484_v63, %v2481_v61  ;;  %v2486_v1 = vpop.f32.mrb[23].mxu1 }
 0x43a   : > { %9266 = vmatmul.mubr.msk.bf16.gmra.mrb[36].mxu0 %vm2813_vm1, %v2765_v0 }
 0x43d   : > { %v2489_v3 = vpop.f32.mrb[24].mxu1 }
 0x43e   : > { %v2491_v4 = vpop.f32.mrb[25].mxu1 }
 0x43f   : > { %v2492_v57 = vpop.f32.mrb[26].mxu1 }
 0x440   : > { %v2766_v6 = vpack.c.bf16 %v2492_v57, %v2489_v3  ;;  %v2494_v8 = vpop.f32.mrb[27].mxu1 }
 0x442   : > { %9269 = vmatprep.mubr.msk.bf16.mxu0 %vm2813_vm1, %v2766_v6 }
 0x445   : > { %v2497_v22 = vpop.f32.mrb[28].mxu1 }
 0x446   : > { %v2499_v10 = vpop.f32.mrb[29].mxu1 }
 0x447   : > { %v2500_v20 = vpop.f32.mrb[30].mxu1 }
 0x448   : > { %v2767_v13 = vpack.c.bf16 %v2500_v20, %v2497_v22  ;;  %v2502_v15 = vpop.f32.mrb[31].mxu1 }
 0x44a   : > { %9270 = vmatmul.mubr.msk.bf16.gmra.mrb[40].mxu0 %vm2813_vm1, %v2767_v13 }
 0x44d   : > { %v2505_v16 = vpop.f32.mrb[32].mxu1 }
 0x44e   : > { %v2507_v18 = vpop.f32.mrb[33].mxu1 }
 0x44f   : > { %v2508_v21 = vpop.f32.mrb[34].mxu1 }
 0x450   : > { %v2768_v24 = vpack.c.bf16 %v2508_v21, %v2505_v16  ;;  %v2510_v25 = vpop.f32.mrb[35].mxu1 }
 0x452   : > { %9277 = vmatprep.mubr.msk.bf16.mxu0 %vm2813_vm1, %v2768_v24 }
 0x455   : > { %v2513_v27 = vpop.f32.mrb[36].mxu1 }
 0x456   : > { %v2515_v29 = vpop.f32.mrb[37].mxu1 }
 0x457   : > { %v2516_v31 = vpop.f32.mrb[38].mxu1 }
 0x458   : > { %v2769_v32 = vpack.c.bf16 %v2516_v31, %v2513_v27  ;;  %v2518_v34 = vpop.f32.mrb[39].mxu1 }
 0x45a   : > { %9278 = vmatmul.mubr.msk.bf16.vlgmr.msra.gmra.mrb[32].mxu0 %vm2813_vm1, %v2769_v32 }
 0x45b   : > { %9290 = vmatpush3.bf16.msra.mxu0 %v10372_v56  ;;  %v10375_v56 = vld [vmem:[%s12489_s4 + $0xe8] sm:$0xff]  }
 0x45c   : > { %9291 = vmatprep.subr.bf16.mxu0 %v10373_v36 }
 0x45d   : > { %v2521_v39 = vpop.f32.mrb[40].mxu1 }
 0x45e   : > { %v2523_v41 = vpop.f32.mrb[41].mxu1 }
 0x45f   : > { %v2524_v43 = vpop.f32.mrb[42].mxu1  ;;  %9292 = vmatpush3.bf16.msra.mxu0 %v10373_v36  ;;  %v10377_v36 = vld [vmem:[%s12489_s4 + $0xf8] sm:$0xff]  }
 0x460   : > { %v2770_v44 = vpack.c.bf16 %v2524_v43, %v2521_v39  ;;  %v2526_v45 = vpop.f32.mrb[43].mxu1  ;;  %9305 = vmatprep.subr.bf16.mxu0 %v10374_v38 }
 0x462   : > { %9281 = vmatprep.mubr.msk.bf16.mxu0 %vm2813_vm1, %v2770_v44 }
 0x465   : > { %v2529_v46 = vpop.f32.mrb[44].mxu1 }
 0x466   : > { %v2531_v47 = vpop.f32.mrb[45].mxu1 }
 0x467   : > { %v2532_v48 = vpop.f32.mrb[46].mxu1 }
 0x468   : > { %v2771_v2 = vpack.c.bf16 %v2532_v48, %v2529_v46  ;;  %v2534_v5 = vpop.f32.mrb[47].mxu1 }
 0x46a   : > { %9282 = vmatmul.mubr.msk.bf16.gmra.mrb[36].mxu0 %vm2813_vm1, %v2771_v2 }
 0x46d   : > { %v2537_v7 = vpop.f32.mrb[48].mxu1 }
 0x46e   : > { %v2539_v49 = vpop.f32.mrb[49].mxu1 }
 0x46f   : > { %v2540_v9 = vpop.f32.mrb[50].mxu1 }
 0x470   : > { %v2772_v11 = vpack.c.bf16 %v2540_v9, %v2537_v7  ;;  %v2542_v12 = vpop.f32.mrb[51].mxu1 }
 0x472   : > { %9285 = vmatprep.mubr.msk.bf16.mxu0 %vm2813_vm1, %v2772_v11 }
 0x475   : > { %v2545_v14 = vpop.f32.mrb[52].mxu1 }
 0x476   : > { %v2547_v17 = vpop.f32.mrb[53].mxu1 }
 0x477   : > { %v2548_v19 = vpop.f32.mrb[54].mxu1 }
 0x478   : > { %v2773_v50 = vpack.c.bf16 %v2548_v19, %v2545_v14  ;;  %v2550_v51 = vpop.f32.mrb[55].mxu1 }
 0x47a   : > { %9286 = vmatmul.mubr.msk.bf16.gmra.mrb[40].mxu0 %vm2813_vm1, %v2773_v50 }
 0x47d   : > { %v2553_v52 = vpop.f32.mrb[56].mxu1 }
 0x47e   : > { %v2555_v53 = vpop.f32.mrb[57].mxu1 }
 0x47f   : > { %v2556_v23 = vpop.f32.mrb[58].mxu1 }
 0x480   : > { %v2774_v26 = vpack.c.bf16 %v2556_v23, %v2553_v52  ;;  %v2558_v28 = vpop.f32.mrb[59].mxu1 }
 0x482   : > { %9293 = vmatprep.mubr.msk.bf16.mxu0 %vm2813_vm1, %v2774_v26 }
 0x485   : > { %v2561_v30 = vpop.f32.mrb[60].mxu1 }
 0x486   : > { %v2563_v33 = vpop.f32.mrb[61].mxu1 }
 0x487   : > { %v2564_v35 = vpop.f32.mrb[62].mxu1 }
 0x488   : > { %v2775_v54 = vpack.c.bf16 %v2564_v35, %v2561_v30  ;;  %v2566_v55 = vpop.f32.mrb[63].mxu1 }
 0x48a   : > { %9294 = vmatmul.mubr.msk.bf16.vlgmr.msra.gmra.mrb[32].mxu0 %vm2813_vm1, %v2775_v54 }
 0x48b   : > { %9306 = vmatpush3.bf16.msra.mxu0 %v10374_v38 }
 0x48c   : > { %9307 = vmatprep.subr.bf16.mxu0 %v10375_v56 }
 0x48d   : > { %v2569_v40 = vpop.f32.mrb[64].mxu1 }
 0x48e   : > { %v2571_v42 = vpop.f32.mrb[65].mxu1 }
 0x48f   : > { %v2572_v58 = vpop.f32.mrb[66].mxu1  ;;  %9308 = vmatpush3.bf16.msra.mxu0 %v10375_v56 }
 0x490   : > { %v2776_v59 = vpack.c.bf16 %v2572_v58, %v2569_v40  ;;  %v2574_v60 = vpop.f32.mrb[67].mxu1  ;;  %9321 = vmatprep.subr.bf16.mxu0 %v10376_v37 }
 0x492   : > { %9297 = vmatprep.mubr.msk.bf16.mxu0 %vm2813_vm1, %v2776_v59 }
 0x495   : > { %v2577_v61 = vpop.f32.mrb[68].mxu1 }
 0x496   : > { %v2579_v62 = vpop.f32.mrb[69].mxu1 }
 0x497   : > { %v2580_v63 = vpop.f32.mrb[70].mxu1 }
 0x498   : > { %v2777_v0 = vpack.c.bf16 %v2580_v63, %v2577_v61  ;;  %v2582_v1 = vpop.f32.mrb[71].mxu1 }
 0x49a   : > { %9298 = vmatmul.mubr.msk.bf16.gmra.mrb[36].mxu0 %vm2813_vm1, %v2777_v0 }
 0x49d   : > { %v2585_v3 = vpop.f32.mrb[72].mxu1 }
 0x49e   : > { %v2587_v4 = vpop.f32.mrb[73].mxu1 }
 0x49f   : > { %v2588_v57 = vpop.f32.mrb[74].mxu1 }
 0x4a0   : > { %v2778_v6 = vpack.c.bf16 %v2588_v57, %v2585_v3  ;;  %v2590_v8 = vpop.f32.mrb[75].mxu1 }
 0x4a2   : > { %9301 = vmatprep.mubr.msk.bf16.mxu0 %vm2813_vm1, %v2778_v6 }
 0x4a5   : > { %v2593_v22 = vpop.f32.mrb[76].mxu1 }
 0x4a6   : > { %v2595_v10 = vpop.f32.mrb[77].mxu1 }
 0x4a7   : > { %v2596_v20 = vpop.f32.mrb[78].mxu1 }
 0x4a8   : > { %v2779_v13 = vpack.c.bf16 %v2596_v20, %v2593_v22  ;;  %v2598_v15 = vpop.f32.mrb[79].mxu1  ;;  %v10378_v20 = vld [vmem:[%s12491_s6] sm:$0xff]  }
 0x4aa   : > { %9302 = vmatmul.mubr.msk.bf16.gmra.mrb[40].mxu0 %vm2813_vm1, %v2779_v13  ;;  %v8353_v13 = vld [vmem:[%s12490_s5] ss:$0 sm:$0xff] }
 0x4ad   : > { %v2601_v16 = vpop.f32.mrb[80].mxu1 }
 0x4ae   : > { %v2603_v18 = vpop.f32.mrb[81].mxu1 }
 0x4af   : > { %v2604_v21 = vpop.f32.mrb[82].mxu1 }
 0x4b0   : > { %v2780_v24 = vpack.c.bf16 %v2604_v21, %v2601_v16  ;;  %v2606_v25 = vpop.f32.mrb[83].mxu1 }
 0x4b2   : > { %9309 = vmatprep.mubr.msk.bf16.mxu0 %vm2813_vm1, %v2780_v24 }
 0x4b5   : > { %v2609_v27 = vpop.f32.mrb[84].mxu1 }
 0x4b6   : > { %v2611_v29 = vpop.f32.mrb[85].mxu1 }
 0x4b7   : > { %v2612_v31 = vpop.f32.mrb[86].mxu1 }
 0x4b8   : > { %v2781_v32 = vpack.c.bf16 %v2612_v31, %v2609_v27  ;;  %v2614_v34 = vpop.f32.mrb[87].mxu1 }
 0x4ba   : > { %9310 = vmatmul.mubr.msk.bf16.vlgmr.msra.gmra.mrb[32].mxu0 %vm2813_vm1, %v2781_v32 }
 0x4bb   : > { %9322 = vmatpush3.bf16.msra.mxu0 %v10376_v37 }
 0x4bc   : > { %9323 = vmatprep.subr.bf16.mxu0 %v10377_v36 }
 0x4bd   : > { %v2617_v38 = vpop.f32.mrb[88].mxu1 }
 0x4be   : > { %v2619_v39 = vpop.f32.mrb[89].mxu1 }
 0x4bf   : > { %v2620_v41 = vpop.f32.mrb[90].mxu1  ;;  %9324 = vmatpush3.bf16.msra.mxu0 %v10377_v36 }
 0x4c0   : > { %v2782_v43 = vpack.c.bf16 %v2620_v41, %v2617_v38  ;;  %v2622_v44 = vpop.f32.mrb[91].mxu1 }
 0x4c2   : > { %9313 = vmatprep.mubr.msk.bf16.mxu0 %vm2813_vm1, %v2782_v43 }
 0x4c5   : > { %v2625_v45 = vpop.f32.mrb[92].mxu1 }
 0x4c6   : > { %v2627_v46 = vpop.f32.mrb[93].mxu1 }
 0x4c7   : > { %v2628_v47 = vpop.f32.mrb[94].mxu1 }
 0x4c8   : > { %v2783_v48 = vpack.c.bf16 %v2628_v47, %v2625_v45  ;;  %v2630_v2 = vpop.f32.mrb[95].mxu1 }
 0x4ca   : > { %9314 = vmatmul.mubr.msk.bf16.gmra.mrb[36].mxu0 %vm2813_vm1, %v2783_v48 }
 0x4cd   : > { %v2633_v5 = vpop.f32.mrb[96].mxu1 }
 0x4ce   : > { %v2635_v7 = vpop.f32.mrb[97].mxu1 }
 0x4cf   : > { %v2636_v49 = vpop.f32.mrb[98].mxu1 }
 0x4d0   : > { %v2784_v9 = vpack.c.bf16 %v2636_v49, %v2633_v5  ;;  %v2638_v11 = vpop.f32.mrb[99].mxu1 }
 0x4d2   : > { %9317 = vmatprep.mubr.msk.bf16.mxu0 %vm2813_vm1, %v2784_v9 }
 0x4d5   : > { %v2641_v12 = vpop.f32.mrb[100].mxu1 }
 0x4d6   : > { %v2643_v14 = vpop.f32.mrb[101].mxu1 }
 0x4d7   : > { %v2644_v17 = vpop.f32.mrb[102].mxu1 }
 0x4d8   : > { %v2785_v19 = vpack.c.bf16 %v2644_v17, %v2641_v12  ;;  %v2646_v50 = vpop.f32.mrb[103].mxu1 }
 0x4da   : > { %9318 = vmatmul.mubr.msk.bf16.gmra.mrb[40].mxu0 %vm2813_vm1, %v2785_v19 }
 0x4dd   : > { %v2649_v51 = vpop.f32.mrb[104].mxu1 }
 0x4de   : > { %v2651_v52 = vpop.f32.mrb[105].mxu1 }
 0x4df   : > { %v2652_v53 = vpop.f32.mrb[106].mxu1 }
 0x4e0   : > { %v2786_v23 = vpack.c.bf16 %v2652_v53, %v2649_v51  ;;  %v2654_v26 = vpop.f32.mrb[107].mxu1 }
 0x4e2   : > { %9325 = vmatprep.mubr.msk.bf16.mxu0 %vm2813_vm1, %v2786_v23 }
 0x4e5   : > { %v2657_v28 = vpop.f32.mrb[108].mxu1 }
 0x4e6   : > { %v2659_v30 = vpop.f32.mrb[109].mxu1 }
 0x4e7   : > { %v2660_v33 = vpop.f32.mrb[110].mxu1 }
 0x4e8   : > { %v2787_v35 = vpack.c.bf16 %v2660_v33, %v2657_v28  ;;  %v2662_v54 = vpop.f32.mrb[111].mxu1 }
 0x4ea   : > { %9326 = vmatmul.mubr.msk.bf16.vlgmr.msra.gmra.mrb[32].mxu0 %vm2813_vm1, %v2787_v35 }
 0x4ed   : > { %v2665_v55 = vpop.f32.mrb[112].mxu1 }
 0x4ee   : > { %v2667_v56 = vpop.f32.mrb[113].mxu1 }
 0x4ef   : > { %v2668_v37 = vpop.f32.mrb[114].mxu1  ;;  %v10380_v56 = vld [vmem:[%s12491_s6 + $0x10] sm:$0xff]  }
 0x4f0   : > { %v2788_v40 = vpack.c.bf16 %v2668_v37, %v2665_v55  ;;  %v2670_v42 = vpop.f32.mrb[115].mxu1  ;;  %v10379_v55 = vld [vmem:[%s12491_s6 + $0x8] sm:$0xff]   ;;  %v10381_v37 = vld [vmem:[%s12491_s6 + $0x18] sm:$0xff]  }
 0x4f1   : > { %v10383_v42 = vld [vmem:[%s12491_s6 + $0x28] sm:$0xff]  }
 0x4f2   : > { %9329 = vmatprep.mubr.msk.bf16.mxu0 %vm2813_vm1, %v2788_v40  ;;  %v10382_v40 = vld [vmem:[%s12491_s6 + $0x20] sm:$0xff]  }
 0x4f5   : > { %v2673_v58 = vpop.f32.mrb[116].mxu1 }
 0x4f6   : > { %v2675_v59 = vpop.f32.mrb[117].mxu1 }
 0x4f7   : > { %v2676_v60 = vpop.f32.mrb[118].mxu1  ;;  %v10385_v59 = vld [vmem:[%s12491_s6 + $0x38] sm:$0xff]  }
 0x4f8   : > { %v2789_v61 = vpack.c.bf16 %v2676_v60, %v2673_v58  ;;  %v2678_v62 = vpop.f32.mrb[119].mxu1  ;;  %v10384_v58 = vld [vmem:[%s12491_s6 + $0x30] sm:$0xff]   ;;  %v10386_v60 = vld [vmem:[%s12491_s6 + $0x40] sm:$0xff]  }
 0x4f9   : > { %v10388_v62 = vld [vmem:[%s12491_s6 + $0x50] sm:$0xff]  }
 0x4fa   : > { %9330 = vmatmul.mubr.msk.bf16.gmra.mrb[36].mxu0 %vm2813_vm1, %v2789_v61  ;;  %v10387_v61 = vld [vmem:[%s12491_s6 + $0x48] sm:$0xff]  }
 0x4fd   : > { %v2681_v63 = vpop.f32.mrb[120].mxu1 }
 0x4fe   : > { %v2683_v0 = vpop.f32.mrb[121].mxu1 }
 0x4ff   : > { %v2684_v1 = vpop.f32.mrb[122].mxu1  ;;  %v10390_v0 = vld [vmem:[%s12491_s6 + $0x60] sm:$0xff]  }
 0x500   : > { %v2790_v3 = vpack.c.bf16 %v2684_v1, %v2681_v63  ;;  %v2686_v4 = vpop.f32.mrb[123].mxu1  ;;  %v10389_v63 = vld [vmem:[%s12491_s6 + $0x58] sm:$0xff]   ;;  %v10391_v1 = vld [vmem:[%s12491_s6 + $0x68] sm:$0xff]  }
 0x501   : > { %v10424_v4 = vld [vmem:[%s12491_s6 + $0x170] sm:$0xff]  }
 0x502   : > { %9333 = vmatprep.mubr.msk.bf16.mxu0 %vm2813_vm1, %v2790_v3  ;;  %v10392_v3 = vld [vmem:[%s12491_s6 + $0x70] sm:$0xff]   ;;  %9441 = vmatprep.mubr.msk.bf16.mxu1 %vm5357_vm2, %v10424_v4 }
 0x505   : > { %v2689_v57 = vpop.f32.mrb[124].mxu1 }
 0x506   : > { %v2691_v6 = vpop.f32.mrb[125].mxu1 }
 0x507   : > { %v2692_v8 = vpop.f32.mrb[126].mxu1  ;;  %v10426_v6 = vld [vmem:[%s12491_s6 + $0x180] sm:$0xff]  }
 0x508   : > { %v2791_v22 = vpack.c.bf16 %v2692_v8, %v2689_v57  ;;  %v2694_v10 = vpop.f32.mrb[127].mxu1  ;;  %v10425_v57 = vld [vmem:[%s12491_s6 + $0x178] sm:$0xff]  }
 0x509   : > { %v10393_v8 = vld [vmem:[%s12491_s6 + $0x78] sm:$0xff]   ;;  %v10427_v10 = vld [vmem:[%s12491_s6 + $0x188] sm:$0xff]  }
 0x50a   : > { %9334 = vmatmul.mubr.msk.bf16.gmra.mrb[40].mxu0 %vm2813_vm1, %v2791_v22  ;;  %v10394_v22 = vld [vmem:[%s12491_s6 + $0x80] sm:$0xff]  }
 0x50b   : > { %9349 = vmatprep.mubr.msk.bf16.mxu0 %vm5357_vm2, %v10378_v20  ;;  %v10395_v20 = vld [vmem:[%s12491_s6 + $0x88] sm:$0xff]  }
 0x5bd   : > { %v9327_v15 = vpop.f32.mrb[32].mxu0 }
 0x5be   : > { %v4825_v16 = vadd.f32 %v9327_v15, %v8353_v13  ;;  %v4757_v18 = vpop.f32.mrb[33].mxu0  ;;  %v10397_v15 = vld [vmem:[%s12491_s6 + $0x98] sm:$0xff]  }
 0x5bf   : > { %v4823_v21 = vadd.f32 %v8353_v13, %v4757_v18  ;;  %v9328_v24 = vpop.f32.mrb[34].mxu0  ;;  %v10399_v18 = vld [vmem:[%s12491_s6 + $0xa8] sm:$0xff]  }
 0x5c0   : > { %v4826_v25 = vadd.f32 %v9328_v24, %v8353_v13  ;;  %v4760_v27 = vpop.f32.mrb[35].mxu0  ;;  %v4837_v31 = vmax.f32 %v4825_v16, 0.0  ;;  %v10398_v16 = vld [vmem:[%s12491_s6 + $0xa0] sm:$0xff]   ;;  %v10401_v24 = vld [vmem:[%s12491_s6 + $0xb8] sm:$0xff]  }
 0x5c1   : > { %v4824_v29 = vadd.f32 %v8353_v13, %v4760_v27  ;;  %v4835_v34 = vmax.f32 %v4823_v21, 0.0  ;;  %v10400_v21 = vld [vmem:[%s12491_s6 + $0xb0] sm:$0xff]  }
 0x5c2   : > { %v4838_v32 = vmax.f32 %v4826_v25, 0.0  ;;  %v10402_v25 = vld [vmem:[%s12491_s6 + $0xc0] sm:$0xff]   ;;  %v10428_v27 = vld [vmem:[%s12491_s6 + $0x190] sm:$0xff]  }
 0x5c3   : > { %v4836_v36 = vmax.f32 %v4824_v29, 0.0  ;;  %v10403_v29 = vld [vmem:[%s12491_s6 + $0xc8] sm:$0xff]  }
 0x5c4   : > { %v4848_v38 = vpack.c.bf16 %v4838_v32, %v4837_v31  ;;  %v10429_v31 = vld [vmem:[%s12491_s6 + $0x198] sm:$0xff]   ;;  %v10404_v32 = vld [vmem:[%s12491_s6 + $0xd0] sm:$0xff]  }
 0x5c5   : > { %v4847_v39 = vpack.c.bf16 %v4836_v36, %v4835_v34  ;;  %v10430_v34 = vld [vmem:[%s12492_s7 + $0x20] sm:$0xff]   ;;  %v10405_v36 = vld [vmem:[%s12491_s6 + $0xd8] sm:$0xff]  }
 0x5c7   : > { %9337 = vmatprep.subr.bf16.mxu0 %v4847_v39  ;;  %9709 = vmatprep.subr.bf16.mxu1 %v4847_v39 }
 0x5c8   : > { %9338 = vmatpush3.bf16.msra.mxu0 %v4847_v39  ;;  %9715 = vmatpush3.bf16.msra.mxu1 %v4847_v39  ;;  %v10431_v39 = vld [vmem:[%s12492_s7 + $0x28] sm:$0xff]  }
 0x5c9   : > { %9339 = vmatprep.subr.bf16.mxu0 %v4848_v38  ;;  %9710 = vmatprep.subr.bf16.mxu1 %v4848_v38 }
 0x5cc   : > { %9340 = vmatpush3.bf16.msra.mxu0 %v4848_v38  ;;  %9716 = vmatpush3.bf16.msra.mxu1 %v4848_v38  ;;  %v10406_v38 = vld [vmem:[%s12491_s6 + $0xe0] sm:$0xff]  }
 0x5cd   : > { %v9331_v41 = vpop.f32.mrb[36].mxu0 }
 0x5ce   : > { %v4829_v43 = vadd.f32 %v9331_v41, %v8353_v13  ;;  %v4773_v44 = vpop.f32.mrb[37].mxu0  ;;  %v10432_v41 = vld [vmem:[%s12491_s6 + $0x1a0] sm:$0xff]  }
 0x5cf   : > { %v4827_v45 = vadd.f32 %v8353_v13, %v4773_v44  ;;  %v9332_v46 = vpop.f32.mrb[38].mxu0  ;;  %v10407_v44 = vld [vmem:[%s12491_s6 + $0xe8] sm:$0xff]  }
 0x5d0   : > { %v4830_v47 = vadd.f32 %v9332_v46, %v8353_v13  ;;  %v4776_v48 = vpop.f32.mrb[39].mxu0  ;;  %v4841_v5 = vmax.f32 %v4829_v43, 0.0  ;;  %v10433_v43 = vld [vmem:[%s12491_s6 + $0x1a8] sm:$0xff]   ;;  %v10434_v46 = vld [vmem:[%s12492_s7 + $0x30] sm:$0xff]  }
 0x5d1   : > { %v4828_v2 = vadd.f32 %v8353_v13, %v4776_v48  ;;  %v4839_v49 = vmax.f32 %v4827_v45, 0.0  ;;  %v10408_v45 = vld [vmem:[%s12491_s6 + $0xf0] sm:$0xff]   ;;  %v10437_v48 = vld [vmem:[%s12491_s6 + $0x1b8] sm:$0xff]  }
 0x5d2   : > { %v4842_v7 = vmax.f32 %v4830_v47, 0.0  ;;  %v10436_v47 = vld [vmem:[%s12491_s6 + $0x1b0] sm:$0xff]  }
 0x5d3   : > { %v4840_v9 = vmax.f32 %v4828_v2, 0.0  ;;  %v10409_v2 = vld [vmem:[%s12491_s6 + $0xf8] sm:$0xff]  }
 0x5d4   : > { %v4850_v11 = vpack.c.bf16 %v4842_v7, %v4841_v5  ;;  %v10435_v5 = vld [vmem:[%s12492_s7 + $0x38] sm:$0xff]   ;;  %v10410_v7 = vld [vmem:[%s12491_s6 + $0x100] sm:$0xff]  }
 0x5d5   : > { %v4849_v12 = vpack.c.bf16 %v4840_v9, %v4839_v49  ;;  %v10438_v49 = vld [vmem:[%s12491_s6 + $0x1c0] sm:$0xff]   ;;  %v10439_v9 = vld [vmem:[%s12491_s6 + $0x1c8] sm:$0xff]  }
 0x5d7   : > { %9341 = vmatprep.subr.bf16.mxu0 %v4849_v12  ;;  %9711 = vmatprep.subr.bf16.mxu1 %v4849_v12 }
 0x5d8   : > { %9342 = vmatpush3.bf16.msra.mxu0 %v4849_v12  ;;  %9717 = vmatpush3.bf16.msra.mxu1 %v4849_v12  ;;  %v10412_v12 = vld [vmem:[%s12491_s6 + $0x110] sm:$0xff]  }
 0x5d9   : > { %9343 = vmatprep.subr.bf16.mxu0 %v4850_v11  ;;  %9712 = vmatprep.subr.bf16.mxu1 %v4850_v11 }
 0x5dc   : > { %9344 = vmatpush3.bf16.msra.mxu0 %v4850_v11  ;;  %9718 = vmatpush3.bf16.msra.mxu1 %v4850_v11  ;;  %v10411_v11 = vld [vmem:[%s12491_s6 + $0x108] sm:$0xff]  }
 0x5dd   : > { %v9335_v14 = vpop.f32.mrb[40].mxu0 }
 0x5de   : > { %v4833_v17 = vadd.f32 %v9335_v14, %v8353_v13  ;;  %v4789_v19 = vpop.f32.mrb[41].mxu0  ;;  %v10440_v14 = vld [vmem:[%s12491_s6 + $0x1d0] sm:$0xff]  }
 0x5df   : > { %v4831_v50 = vadd.f32 %v8353_v13, %v4789_v19  ;;  %v9336_v51 = vpop.f32.mrb[42].mxu0  ;;  %v10413_v19 = vld [vmem:[%s12491_s6 + $0x118] sm:$0xff]  }
 0x5e0   : > { %v4834_v52 = vadd.f32 %v9336_v51, %v8353_v13  ;;  %v4792_v53 = vpop.f32.mrb[43].mxu0  ;;  %v4845_v26 = vmax.f32 %v4833_v17, 0.0  ;;  %v10441_v17 = vld [vmem:[%s12491_s6 + $0x1d8] sm:$0xff]   ;;  %v11737_v51 = vld [vmem:[%s12492_s7] sm:$0xff]  }
 0x5e1   : > { %v4832_v23 = vadd.f32 %v8353_v13, %v4792_v53  ;;  %v4843_v30 = vmax.f32 %v4831_v50, 0.0  ;;  %v10396_v13 = vld [vmem:[%s12491_s6 + $0x90] sm:$0xff]   ;;  %v10414_v50 = vld [vmem:[%s12491_s6 + $0x120] sm:$0xff]   ;;  %v10445_v53 = vld [vmem:[%s12491_s6 + $0x1e8] sm:$0xff]  }
 0x5e2   : > { %v4846_v28 = vmax.f32 %v4834_v52, 0.0  ;;  %v10444_v52 = vld [vmem:[%s12491_s6 + $0x1e0] sm:$0xff]  }
 0x5e3   : > { %v4844_v33 = vmax.f32 %v4832_v23, 0.0  ;;  %v10415_v23 = vld [vmem:[%s12491_s6 + $0x128] sm:$0xff]  }
 0x5e4   : > { %v4852_v35 = vpack.c.bf16 %v4846_v28, %v4845_v26  ;;  %v10416_v26 = vld [vmem:[%s12491_s6 + $0x130] sm:$0xff]  }
 0x5e5   : > { %v4851_v54 = vpack.c.bf16 %v4844_v33, %v4843_v30  ;;  %v10448_v28 = vld [vmem:[%s12491_s6 + $0x1f0] sm:$0xff]   ;;  %v10449_v30 = vld [vmem:[%s12491_s6 + $0x1f8] sm:$0xff]  }
 0x5e6   : > { %v10417_v33 = vld [vmem:[%s12491_s6 + $0x138] sm:$0xff]  }
 0x5e7   : > { %9345 = vmatprep.subr.bf16.mxu0 %v4851_v54  ;;  %9713 = vmatprep.subr.bf16.mxu1 %v4851_v54 }
 0x5e8   : > { %9346 = vmatpush3.bf16.msra.mxu0 %v4851_v54  ;;  %9719 = vmatpush3.bf16.msra.mxu1 %v4851_v54  ;;  %v10450_v54 = vld [vmem:[%s12491_s6 + $0x200] sm:$0xff]  }
 0x5e9   : > { %9347 = vmatprep.subr.bf16.mxu0 %v4852_v35  ;;  %9714 = vmatprep.subr.bf16.mxu1 %v4852_v35 }
 0x5ec   : > { %9348 = vmatpush3.bf16.msra.mxu0 %v4852_v35  ;;  %9720 = vmatpush3.bf16.msra.mxu1 %v4852_v35  ;;  %v10418_v35 = vld [vmem:[%s12491_s6 + $0x140] sm:$0xff]  }
 0x5ed   : > { %9493 = vmatprep.subr.bf16.mxu0 %v10430_v34 }
 0x5ef   : > { %9350 = vmatmul.mubr.msk.bf16.vlgmr.msra.gmra.mrb[44].mxu0 %vm5357_vm2, %v10379_v55  ;;  %9442 = vmatmul.mubr.msk.bf16.vlgmr.msra.gmra.mrb[128].mxu1 %vm5357_vm2, %v10425_v57  ;;  %v10451_v55 = vld [vmem:[%s12491_s6 + $0x208] sm:$0xff]  }
 0x5f0   : > { %9353 = vmatprep.mubr.msk.bf16.mxu0 %vm5357_vm2, %v10380_v56  ;;  %9445 = vmatprep.mubr.msk.bf16.mxu1 %vm5357_vm2, %v10426_v6  ;;  %v10419_v56 = vld [vmem:[%s12491_s6 + $0x148] sm:$0xff]  }
 0x5f1   : > { %9494 = vmatpush3.bf16.msra.mxu0 %v10430_v34 }
 0x5f2   : > { %9495 = vmatprep.subr.bf16.mxu0 %v10431_v39 }
 0x5f5   : > { %9496 = vmatpush3.bf16.msra.mxu0 %v10431_v39 }
 0x5f6   : > { %9497 = vmatprep.subr.bf16.mxu0 %v10434_v46 }
 0x5f7   : > { %9354 = vmatmul.mubr.msk.bf16.gmra.mrb[48].mxu0 %vm5357_vm2, %v10381_v37  ;;  %9446 = vmatmul.mubr.msk.bf16.gmra.mrb[132].mxu1 %vm5357_vm2, %v10427_v10  ;;  %v10420_v37 = vld [vmem:[%s12491_s6 + $0x150] sm:$0xff]  }
 0x5f8   : > { %9357 = vmatprep.mubr.msk.bf16.mxu0 %vm5357_vm2, %v10382_v40  ;;  %9449 = vmatprep.mubr.msk.bf16.mxu1 %vm5357_vm2, %v10428_v27  ;;  %v10452_v40 = vld [vmem:[%s12491_s6 + $0x210] sm:$0xff]  }
 0x5f9   : > { %9498 = vmatpush3.bf16.msra.mxu0 %v10434_v46 }
 0x5fa   : > { %9499 = vmatprep.subr.bf16.mxu0 %v10435_v5 }
 0x5fd   : > { %9500 = vmatpush3.bf16.msra.mxu0 %v10435_v5 }
 0x5fe   : > { %9517 = vmatprep.subr.bf16.mxu0 %v11737_v51 }
 0x5ff   : > { %9358 = vmatmul.mubr.msk.bf16.gmra.mrb[52].mxu0 %vm5357_vm2, %v10383_v42  ;;  %9450 = vmatmul.mubr.msk.bf16.gmra.mrb[136].mxu1 %vm5357_vm2, %v10429_v31  ;;  %v10453_v42 = vld [vmem:[%s12491_s6 + $0x218] sm:$0xff]  }
 0x600   : > { %9361 = vmatprep.mubr.msk.bf16.mxu0 %vm5357_vm2, %v10384_v58  ;;  %9453 = vmatprep.mubr.msk.bf16.mxu1 %vm5357_vm2, %v10432_v41  ;;  %v10421_v58 = vld [vmem:[%s12491_s6 + $0x158] sm:$0xff]  }
 0x607   : > { %9362 = vmatmul.mubr.msk.bf16.gmra.mrb[56].mxu0 %vm5357_vm2, %v10385_v59  ;;  %9454 = vmatmul.mubr.msk.bf16.gmra.mrb[140].mxu1 %vm5357_vm2, %v10433_v43  ;;  %v10422_v59 = vld [vmem:[%s12491_s6 + $0x160] sm:$0xff]  }
 0x608   : > { %9365 = vmatprep.mubr.msk.bf16.mxu0 %vm5357_vm2, %v10386_v60  ;;  %9457 = vmatprep.mubr.msk.bf16.mxu1 %vm5357_vm2, %v10436_v47  ;;  %v10456_v60 = vld [vmem:[%s12491_s6 + $0x220] sm:$0xff]  }
 0x60f   : > { %9366 = vmatmul.mubr.msk.bf16.gmra.mrb[60].mxu0 %vm5357_vm2, %v10387_v61  ;;  %9458 = vmatmul.mubr.msk.bf16.gmra.mrb[144].mxu1 %vm5357_vm2, %v10437_v48  ;;  %v10457_v61 = vld [vmem:[%s12491_s6 + $0x228] sm:$0xff]  }
 0x610   : > { %9369 = vmatprep.mubr.msk.bf16.mxu0 %vm5357_vm2, %v10388_v62  ;;  %9461 = vmatprep.mubr.msk.bf16.mxu1 %vm5357_vm2, %v10438_v49  ;;  %v10423_v62 = vld [vmem:[%s12491_s6 + $0x168] sm:$0xff]  }
 0x611   : > { %v10443_v48 = vld [vmem:[%s12492_s7 + $0x8] sm:$0xff]  }
 0x617   : > { %9370 = vmatmul.mubr.msk.bf16.gmra.mrb[64].mxu0 %vm5357_vm2, %v10389_v63  ;;  %9462 = vmatmul.mubr.msk.bf16.gmra.mrb[148].mxu1 %vm5357_vm2, %v10439_v9  ;;  %v10460_v63 = vld [vmem:[%s12491_s6 + $0x230] sm:$0xff]  }
 0x618   : > { %9373 = vmatprep.mubr.msk.bf16.mxu0 %vm5357_vm2, %v10390_v0  ;;  %9465 = vmatprep.mubr.msk.bf16.mxu1 %vm5357_vm2, %v10440_v14  ;;  %v10461_v0 = vld [vmem:[%s12491_s6 + $0x238] sm:$0xff]  }
 0x619   : > { %v10447_v14 = vld [vmem:[%s12492_s7 + $0x18] sm:$0xff]  }
 0x61f   : > { %9374 = vmatmul.mubr.msk.bf16.gmra.mrb[68].mxu0 %vm5357_vm2, %v10391_v1  ;;  %9466 = vmatmul.mubr.msk.bf16.gmra.mrb[152].mxu1 %vm5357_vm2, %v10441_v17 }
 0x620   : > { %9377 = vmatprep.mubr.msk.bf16.mxu0 %vm5357_vm2, %v10392_v3  ;;  %9469 = vmatprep.mubr.msk.bf16.mxu1 %vm5357_vm2, %v10444_v52 }
 0x627   : > { %9378 = vmatmul.mubr.msk.bf16.gmra.mrb[72].mxu0 %vm5357_vm2, %v10393_v8  ;;  %9470 = vmatmul.mubr.msk.bf16.gmra.mrb[156].mxu1 %vm5357_vm2, %v10445_v53 }
 0x628   : > { %9381 = vmatprep.mubr.msk.bf16.mxu0 %vm5357_vm2, %v10394_v22  ;;  %9473 = vmatprep.mubr.msk.bf16.mxu1 %vm5357_vm2, %v10448_v28 }
 0x62f   : > { %9382 = vmatmul.mubr.msk.bf16.gmra.mrb[76].mxu0 %vm5357_vm2, %v10395_v20  ;;  %9474 = vmatmul.mubr.msk.bf16.gmra.mrb[160].mxu1 %vm5357_vm2, %v10449_v30 }
 0x630   : > { %9385 = vmatprep.mubr.msk.bf16.mxu0 %vm5357_vm2, %v10396_v13  ;;  %9477 = vmatprep.mubr.msk.bf16.mxu1 %vm5357_vm2, %v10450_v54 }
 0x637   : > { %9386 = vmatmul.mubr.msk.bf16.gmra.mrb[80].mxu0 %vm5357_vm2, %v10397_v15  ;;  %9478 = vmatmul.mubr.msk.bf16.gmra.mrb[164].mxu1 %vm5357_vm2, %v10451_v55 }
 0x638   : > { %9389 = vmatprep.mubr.msk.bf16.mxu0 %vm5357_vm2, %v10398_v16  ;;  %9481 = vmatprep.mubr.msk.bf16.mxu1 %vm5357_vm2, %v10452_v40 }
 0x63f   : > { %9390 = vmatmul.mubr.msk.bf16.gmra.mrb[84].mxu0 %vm5357_vm2, %v10399_v18  ;;  %9482 = vmatmul.mubr.msk.bf16.gmra.mrb[168].mxu1 %vm5357_vm2, %v10453_v42 }
 0x640   : > { %9393 = vmatprep.mubr.msk.bf16.mxu0 %vm5357_vm2, %v10400_v21  ;;  %9485 = vmatprep.mubr.msk.bf16.mxu1 %vm5357_vm2, %v10456_v60 }
 0x647   : > { %9394 = vmatmul.mubr.msk.bf16.gmra.mrb[88].mxu0 %vm5357_vm2, %v10401_v24  ;;  %9486 = vmatmul.mubr.msk.bf16.gmra.mrb[172].mxu1 %vm5357_vm2, %v10457_v61  ;;  %v10458_v61 = vld [vmem:[%s12492_s7 + $0x50] sm:$0xff]  }
 0x648   : > { %9397 = vmatprep.mubr.msk.bf16.mxu0 %vm5357_vm2, %v10402_v25  ;;  %9489 = vmatprep.mubr.msk.bf16.mxu1 %vm5357_vm2, %v10460_v63 }
 0x64f   : > { %9398 = vmatmul.mubr.msk.bf16.gmra.mrb[92].mxu0 %vm5357_vm2, %v10403_v29  ;;  %9490 = vmatmul.mubr.msk.bf16.gmra.mrb[176].mxu1 %vm5357_vm2, %v10461_v0 }
 0x650   : > { %9401 = vmatprep.mubr.msk.bf16.mxu0 %vm5357_vm2, %v10404_v32 }
 0x657   : > { %9402 = vmatmul.mubr.msk.bf16.gmra.mrb[96].mxu0 %vm5357_vm2, %v10405_v36 }
 0x658   : > { %9405 = vmatprep.mubr.msk.bf16.mxu0 %vm5357_vm2, %v10406_v38 }
 0x65f   : > { %9406 = vmatmul.mubr.msk.bf16.gmra.mrb[100].mxu0 %vm5357_vm2, %v10407_v44 }
 0x660   : > { %9409 = vmatprep.mubr.msk.bf16.mxu0 %vm5357_vm2, %v10408_v45 }
 0x667   : > { %9410 = vmatmul.mubr.msk.bf16.gmra.mrb[104].mxu0 %vm5357_vm2, %v10409_v2 }
 0x668   : > { %9413 = vmatprep.mubr.msk.bf16.mxu0 %vm5357_vm2, %v10410_v7  ;;  %v10446_v7 = vld [vmem:[%s12492_s7 + $0x10] sm:$0xff]  }
 0x66f   : > { %9414 = vmatmul.mubr.msk.bf16.gmra.mrb[108].mxu0 %vm5357_vm2, %v10411_v11 }
 0x670   : > { %9417 = vmatprep.mubr.msk.bf16.mxu0 %vm5357_vm2, %v10412_v12 }
 0x677   : > { %9418 = vmatmul.mubr.msk.bf16.gmra.mrb[112].mxu0 %vm5357_vm2, %v10413_v19 }
 0x678   : > { %9421 = vmatprep.mubr.msk.bf16.mxu0 %vm5357_vm2, %v10414_v50  ;;  %v10454_v50 = vld [vmem:[%s12492_s7 + $0x40] sm:$0xff]  }
 0x67f   : > { %9422 = vmatmul.mubr.msk.bf16.gmra.mrb[116].mxu0 %vm5357_vm2, %v10415_v23 }
 0x680   : > { %9425 = vmatprep.mubr.msk.bf16.mxu0 %vm5357_vm2, %v10416_v26 }
 0x687   : > { %9426 = vmatmul.mubr.msk.bf16.gmra.mrb[120].mxu0 %vm5357_vm2, %v10417_v33 }
 0x688   : > { %9429 = vmatprep.mubr.msk.bf16.mxu0 %vm5357_vm2, %v10418_v35 }
 0x68f   : > { %9430 = vmatmul.mubr.msk.bf16.gmra.mrb[124].mxu0 %vm5357_vm2, %v10419_v56 }
 0x690   : > { %9433 = vmatprep.mubr.msk.bf16.mxu0 %vm5357_vm2, %v10420_v37 }
 0x697   : > { %9434 = vmatmul.mubr.msk.bf16.gmra.mrb[128].mxu0 %vm5357_vm2, %v10421_v58 }
 0x698   : > { %9437 = vmatprep.mubr.msk.bf16.mxu0 %vm5357_vm2, %v10422_v59  ;;  %v10455_v59 = vld [vmem:[%s12492_s7 + $0x48] sm:$0xff]  }
 0x69f   : > { %9438 = vmatmul.mubr.msk.bf16.gmra.mrb[132].mxu0 %vm5357_vm2, %v10423_v62 }
 0x6c2   : > { %v11825_v1 = vpop.f32.mrb[44].mxu0 }
 0x6c3   : > { %v11827_v3 = vpop.f32.mrb[45].mxu0 }
 0x6c4   : > { %v11829_v4 = vpop.f32.mrb[46].mxu0 }
 0x6c5   : > { %v6184_v57 = vpack.c.bf16 %v11829_v4, %v11825_v1  ;;  %v11833_v6 = vpop.f32.mrb[47].mxu0  ;;  %v10459_v4 = vld [vmem:[%s12492_s7 + $0x58] sm:$0xff]  }
 0x6c6   : > { %v6183_v8 = vpack.c.bf16 %v11833_v6, %v11827_v3 }
 0x6ca   : > { %v11837_v22 = vpop.f32.mrb[48].mxu0 }
 0x6cb   : > { %v11839_v10 = vpop.f32.mrb[49].mxu0 }
 0x6cc   : > { %v11841_v20 = vpop.f32.mrb[50].mxu0 }
 0x6cd   : > { %v6186_v13 = vpack.c.bf16 %v11841_v20, %v11837_v22  ;;  %v11845_v15 = vpop.f32.mrb[51].mxu0 }
 0x6ce   : > { %v6185_v16 = vpack.c.bf16 %v11845_v15, %v11839_v10  ;;  %v11944_v15 = vpop.f32.mrb[128].mxu1 }
 0x6d2   : > { %v11849_v18 = vpop.f32.mrb[52].mxu0 }
 0x6d3   : > { %v11851_v21 = vpop.f32.mrb[53].mxu0 }
 0x6d4   : > { %v11853_v24 = vpop.f32.mrb[54].mxu0 }
 0x6d5   : > { %v6188_v25 = vpack.c.bf16 %v11853_v24, %v11849_v18  ;;  %v11857_v27 = vpop.f32.mrb[55].mxu0 }
 0x6d6   : > { %v6187_v29 = vpack.c.bf16 %v11857_v27, %v11851_v21 }
 0x6da   : > { %v11861_v31 = vpop.f32.mrb[56].mxu0 }
 0x6db   : > { %v11863_v32 = vpop.f32.mrb[57].mxu0 }
 0x6dc   : > { %v11865_v34 = vpop.f32.mrb[58].mxu0 }
 0x6dd   : > { %v6190_v36 = vpack.c.bf16 %v11865_v34, %v11861_v31  ;;  %v11869_v38 = vpop.f32.mrb[59].mxu0 }
 0x6de   : > { %v6189_v39 = vpack.c.bf16 %v11869_v38, %v11863_v32 }
 0x6e2   : > { %v9367_v41 = vpop.f32.mrb[60].mxu0 }
 0x6e3   : > { %v5672_v43 = vpop.f32.mrb[61].mxu0 }
 0x6e4   : > { %v9368_v44 = vpop.f32.mrb[62].mxu0 }
 0x6e5   : > { %v6192_v45 = vpack.c.bf16 %v9368_v44, %v9367_v41  ;;  %v5675_v46 = vpop.f32.mrb[63].mxu0 }
 0x6e6   : > { %v6191_v47 = vpack.c.bf16 %v5675_v46, %v5672_v43 }
 0x6e8   : > { %9501 = vmatprep.mubr.msk.bf16.mxu0 %vm485_vm0, %v6191_v47 }
 0x6e9   : > { %9502 = vmatmul.mubr.msk.bf16.vlgmr.msra.gmra.mrb[136].mxu0 %vm485_vm0, %v6192_v45 }
 0x6ea   : > { %v9371_v2 = vpop.f32.mrb[64].mxu0  ;;  %9518 = vmatpush3.bf16.msra.mxu0 %v11737_v51 }
 0x6eb   : > { %v5688_v5 = vpop.f32.mrb[65].mxu0  ;;  %9519 = vmatprep.subr.bf16.mxu0 %v10443_v48 }
 0x6ec   : > { %v9372_v49 = vpop.f32.mrb[66].mxu0 }
 0x6ed   : > { %v6194_v9 = vpack.c.bf16 %v9372_v49, %v9371_v2  ;;  %v5691_v11 = vpop.f32.mrb[67].mxu0  ;;  %v10463_v49 = vld [vmem:[%s12492_s7 + $0x68] sm:$0xff]  }
 0x6ee   : > { %v6193_v12 = vpack.c.bf16 %v5691_v11, %v5688_v5  ;;  %9520 = vmatpush3.bf16.msra.mxu0 %v10443_v48 }
 0x6ef   : > { %9521 = vmatprep.subr.bf16.mxu0 %v10446_v7 }
 0x6f0   : > { %9505 = vmatprep.mubr.msk.bf16.mxu0 %vm485_vm0, %v6193_v12 }
 0x6f1   : > { %9506 = vmatmul.mubr.msk.bf16.gmra.mrb[140].mxu0 %vm485_vm0, %v6194_v9 }
 0x6f2   : > { %v9375_v17 = vpop.f32.mrb[68].mxu0  ;;  %9522 = vmatpush3.bf16.msra.mxu0 %v10446_v7 }
 0x6f3   : > { %v5704_v19 = vpop.f32.mrb[69].mxu0  ;;  %9523 = vmatprep.subr.bf16.mxu0 %v10447_v14 }
 0x6f4   : > { %v9376_v51 = vpop.f32.mrb[70].mxu0 }
 0x6f5   : > { %v6196_v52 = vpack.c.bf16 %v9376_v51, %v9375_v17  ;;  %v5707_v53 = vpop.f32.mrb[71].mxu0 }
 0x6f6   : > { %v6195_v23 = vpack.c.bf16 %v5707_v53, %v5704_v19  ;;  %9524 = vmatpush3.bf16.msra.mxu0 %v10447_v14 }
 0x6f7   : > { %9541 = vmatprep.subr.bf16.mxu0 %v10454_v50 }
 0x6f8   : > { %9509 = vmatprep.mubr.msk.bf16.mxu0 %vm485_vm0, %v6195_v23 }
 0x6f9   : > { %9510 = vmatmul.mubr.msk.bf16.gmra.mrb[144].mxu0 %vm485_vm0, %v6196_v52 }
 0x6fa   : > { %v9379_v26 = vpop.f32.mrb[72].mxu0 }
 0x6fb   : > { %v5720_v28 = vpop.f32.mrb[73].mxu0 }
 0x6fc   : > { %v9380_v30 = vpop.f32.mrb[74].mxu0 }
 0x6fd   : > { %v6198_v33 = vpack.c.bf16 %v9380_v30, %v9379_v26  ;;  %v5723_v35 = vpop.f32.mrb[75].mxu0  ;;  %v10465_v30 = vld [vmem:[%s12492_s7 + $0x78] sm:$0xff]  }
 0x6fe   : > { %v6197_v54 = vpack.c.bf16 %v5723_v35, %v5720_v28 }
 0x700   : > { %9513 = vmatprep.mubr.msk.bf16.mxu0 %vm485_vm0, %v6197_v54 }
 0x701   : > { %9514 = vmatmul.mubr.msk.bf16.gmra.mrb[148].mxu0 %vm485_vm0, %v6198_v33 }
 0x702   : > { %9525 = vmatprep.mubr.msk.bf16.mxu0 %vm485_vm0, %v6183_v8  ;;  %v11898_v55 = vpop.f32.mrb[76].mxu0  ;;  %v10462_v8 = vld [vmem:[%s12492_s7 + $0x60] sm:$0xff]  }
 0x703   : > { %v5736_v56 = vpop.f32.mrb[77].mxu0 }
 0x704   : > { %v11900_v37 = vpop.f32.mrb[78].mxu0 }
 0x705   : > { %v6200_v40 = vpack.c.bf16 %v11900_v37, %v11898_v55  ;;  %v5739_v42 = vpop.f32.mrb[79].mxu0 }
 0x706   : > { %v6199_v58 = vpack.c.bf16 %v5739_v42, %v5736_v56  ;;  %v10466_v42 = vld [vmem:[%s12492_s7 + $0x80] sm:$0xff]  }
 0x709   : > { %9526 = vmatmul.mubr.msk.bf16.vlgmr.msra.gmra.mrb[136].mxu0 %vm485_vm0, %v6184_v57 }
 0x70a   : > { %9529 = vmatprep.mubr.msk.bf16.mxu0 %vm485_vm0, %v6185_v16  ;;  %9542 = vmatpush3.bf16.msra.mxu0 %v10454_v50  ;;  %v11915_v60 = vpop.f32.mrb[80].mxu0  ;;  %v11946_v16 = vpop.f32.mrb[129].mxu1  ;;  %v10464_v50 = vld [vmem:[%s12492_s7 + $0x70] sm:$0xff]  }
 0x70b   : > { %9543 = vmatprep.subr.bf16.mxu0 %v10455_v59  ;;  %v5752_v62 = vpop.f32.mrb[81].mxu0  ;;  %v11952_v21 = vpop.f32.mrb[130].mxu1 }
 0x70c   : > { %v11920_v63 = vpop.f32.mrb[82].mxu0  ;;  %v11962_v41 = vpop.f32.mrb[131].mxu1 }
 0x70d   : > { %v6202_v0 = vpack.c.bf16 %v11920_v63, %v11915_v60  ;;  %v5755_v1 = vpop.f32.mrb[83].mxu0 }
 0x70e   : > { %9544 = vmatpush3.bf16.msra.mxu0 %v10455_v59  ;;  %v6201_v3 = vpack.c.bf16 %v5755_v1, %v5752_v62 }
 0x70f   : > { %9545 = vmatprep.subr.bf16.mxu0 %v10458_v61 }
 0x711   : > { %9530 = vmatmul.mubr.msk.bf16.gmra.mrb[140].mxu0 %vm485_vm0, %v6186_v13 }
 0x712   : > { %9533 = vmatprep.mubr.msk.bf16.mxu0 %vm485_vm0, %v6187_v29  ;;  %9546 = vmatpush3.bf16.msra.mxu0 %v10458_v61  ;;  %v11935_v57 = vpop.f32.mrb[84].mxu0 }
 0x713   : > { %9547 = vmatprep.subr.bf16.mxu0 %v10459_v4  ;;  %v5768_v6 = vpop.f32.mrb[85].mxu0 }
 0x714   : > { %v11940_v10 = vpop.f32.mrb[86].mxu0 }
 0x715   : > { %v6204_v22 = vpack.c.bf16 %v11940_v10, %v11935_v57  ;;  %v5771_v20 = vpop.f32.mrb[87].mxu0 }
 0x716   : > { %9548 = vmatpush3.bf16.msra.mxu0 %v10459_v4  ;;  %v6203_v13 = vpack.c.bf16 %v5771_v20, %v5768_v6 }
 0x717   : > { %9565 = vmatprep.subr.bf16.mxu0 %v10462_v8 }
 0x719   : > { %9534 = vmatmul.mubr.msk.bf16.gmra.mrb[144].mxu0 %vm485_vm0, %v6188_v25 }
 0x71a   : > { %9537 = vmatprep.mubr.msk.bf16.mxu0 %vm485_vm0, %v6189_v39  ;;  %v11958_v27 = vpop.f32.mrb[88].mxu0  ;;  %v11973_v39 = vpop.f32.mrb[132].mxu1 }
 0x71b   : > { %v11964_v43 = vpop.f32.mrb[89].mxu0  ;;  %v11975_v44 = vpop.f32.mrb[133].mxu1 }
 0x71c   : > { %v11968_v24 = vpop.f32.mrb[90].mxu0  ;;  %v11981_v45 = vpop.f32.mrb[134].mxu1 }
 0x71d   : > { %v6206_v25 = vpack.c.bf16 %v11968_v24, %v11958_v27  ;;  %v5787_v32 = vpop.f32.mrb[91].mxu0  ;;  %v11988_v48 = vpop.f32.mrb[135].mxu1 }
 0x71e   : > { %v6205_v38 = vpack.c.bf16 %v5787_v32, %v11964_v43  ;;  %v12002_v9 = vpop.f32.mrb[136].mxu1 }
 0x71f   : > { %v12004_v11 = vpop.f32.mrb[137].mxu1 }
 0x720   : > { %v12007_v12 = vpop.f32.mrb[138].mxu1 }
 0x721   : > { %9538 = vmatmul.mubr.msk.bf16.gmra.mrb[148].mxu0 %vm485_vm0, %v6190_v36  ;;  %v12014_v19 = vpop.f32.mrb[139].mxu1 }
 0x722   : > { %9549 = vmatprep.mubr.msk.bf16.mxu0 %vm485_vm0, %v6199_v58  ;;  %v11984_v46 = vpop.f32.mrb[92].mxu0  ;;  %v12028_v33 = vpop.f32.mrb[140].mxu1 }
 0x723   : > { %v11990_v2 = vpop.f32.mrb[93].mxu0  ;;  %v12030_v35 = vpop.f32.mrb[141].mxu1 }
 0x724   : > { %v11994_v7 = vpop.f32.mrb[94].mxu0  ;;  %v12036_v54 = vpop.f32.mrb[142].mxu1 }
 0x725   : > { %v6208_v31 = vpack.c.bf16 %v11994_v7, %v11984_v46  ;;  %v5803_v34 = vpop.f32.mrb[95].mxu0  ;;  %v12043_v37 = vpop.f32.mrb[143].mxu1 }
 0x726   : > { %v6207_v36 = vpack.c.bf16 %v5803_v34, %v11990_v2  ;;  %v12057_v63 = vpop.f32.mrb[144].mxu1 }
 0x729   : > { %9550 = vmatmul.mubr.msk.bf16.vlgmr.msra.gmra.mrb[136].mxu0 %vm485_vm0, %v6200_v40 }
 0x72a   : > { %9553 = vmatprep.mubr.msk.bf16.mxu0 %vm485_vm0, %v6201_v3  ;;  %9566 = vmatpush3.bf16.msra.mxu0 %v10462_v8  ;;  %v12010_v14 = vpop.f32.mrb[96].mxu0 }
 0x72b   : > { %9567 = vmatprep.subr.bf16.mxu0 %v10463_v49  ;;  %v5816_v51 = vpop.f32.mrb[97].mxu0 }
 0x72c   : > { %v12021_v53 = vpop.f32.mrb[98].mxu0 }
 0x72d   : > { %v6210_v23 = vpack.c.bf16 %v12021_v53, %v12010_v14  ;;  %v5819_v26 = vpop.f32.mrb[99].mxu0  ;;  %v10470_v14 = vld [vmem:[%s12492_s7 + $0xa0] sm:$0xff]  }
 0x72e   : > { %9568 = vmatpush3.bf16.msra.mxu0 %v10463_v49  ;;  %v6209_v28 = vpack.c.bf16 %v5819_v26, %v5816_v51 }
 0x72f   : > { %9569 = vmatprep.subr.bf16.mxu0 %v10464_v50 }
 0x731   : > { %9554 = vmatmul.mubr.msk.bf16.gmra.mrb[140].mxu0 %vm485_vm0, %v6202_v0  ;;  %v12059_v0 = vpop.f32.mrb[145].mxu1 }
 0x732   : > { %9557 = vmatprep.mubr.msk.bf16.mxu0 %vm485_vm0, %v6203_v13  ;;  %9570 = vmatpush3.bf16.msra.mxu0 %v10464_v50  ;;  %v12039_v55 = vpop.f32.mrb[100].mxu0  ;;  %v12065_v1 = vpop.f32.mrb[146].mxu1 }
 0x733   : > { %9571 = vmatprep.subr.bf16.mxu0 %v10465_v30  ;;  %v12045_v40 = vpop.f32.mrb[101].mxu0  ;;  %v12072_v6 = vpop.f32.mrb[147].mxu1 }
 0x734   : > { %v12052_v59 = vpop.f32.mrb[102].mxu0  ;;  %v12083_v43 = vpop.f32.mrb[148].mxu1 }
 0x735   : > { %v6212_v60 = vpack.c.bf16 %v12052_v59, %v12039_v55  ;;  %v5835_v61 = vpop.f32.mrb[103].mxu0  ;;  %v12085_v32 = vpop.f32.mrb[149].mxu1 }
 0x736   : > { %9572 = vmatpush3.bf16.msra.mxu0 %v10465_v30  ;;  %v6211_v62 = vpack.c.bf16 %v5835_v61, %v12045_v40 }
 0x737   : > { %9589 = vmatprep.subr.bf16.mxu0 %v10466_v42 }
 0x739   : > { %9558 = vmatmul.mubr.msk.bf16.gmra.mrb[144].mxu0 %vm485_vm0, %v6204_v22 }
 0x73a   : > { %9561 = vmatprep.mubr.msk.bf16.mxu0 %vm485_vm0, %v6205_v38  ;;  %v12068_v3 = vpop.f32.mrb[104].mxu0  ;;  %v12091_v38 = vpop.f32.mrb[150].mxu1 }
 0x73b   : > { %v12074_v8 = vpop.f32.mrb[105].mxu0  ;;  %v12098_v49 = vpop.f32.mrb[151].mxu1 }
 0x73c   : > { %v12078_v13 = vpop.f32.mrb[106].mxu0  ;;  %v12112_v30 = vpop.f32.mrb[152].mxu1 }
 0x73d   : > { %v6214_v57 = vpack.c.bf16 %v12078_v13, %v12068_v3  ;;  %v5851_v10 = vpop.f32.mrb[107].mxu0  ;;  %v12114_v40 = vpop.f32.mrb[153].mxu1  ;;  %v10471_v13 = vld [vmem:[%s12492_s7 + $0xa8] sm:$0xff]  }
 0x73e   : > { %v6213_v22 = vpack.c.bf16 %v5851_v10, %v12074_v8  ;;  %v12120_v61 = vpop.f32.mrb[154].mxu1  ;;  %v10469_v10 = vld [vmem:[%s12492_s7 + $0x98] sm:$0xff]  }
 0x741   : > { %9562 = vmatmul.mubr.msk.bf16.gmra.mrb[148].mxu0 %vm485_vm0, %v6206_v25 }
 0x742   : > { %9573 = vmatprep.mubr.msk.bf16.mxu0 %vm485_vm0, %v6207_v36  ;;  %v12094_v2 = vpop.f32.mrb[108].mxu0  ;;  %v10467_v36 = vld [vmem:[%s12492_s7 + $0x88] sm:$0xff]  }
 0x743   : > { %v12100_v50 = vpop.f32.mrb[109].mxu0 }
 0x744   : > { %v12104_v26 = vpop.f32.mrb[110].mxu0 }
 0x745   : > { %v6216_v27 = vpack.c.bf16 %v12104_v26, %v12094_v2  ;;  %v5867_v24 = vpop.f32.mrb[111].mxu0 }
 0x746   : > { %v6215_v25 = vpack.c.bf16 %v5867_v24, %v12100_v50  ;;  %v12127_v50 = vpop.f32.mrb[155].mxu1  ;;  %v10468_v24 = vld [vmem:[%s12492_s7 + $0x90] sm:$0xff]  }
 0x747   : > { %v12141_v51 = vpop.f32.mrb[156].mxu1 }
 0x748   : > { %v12143_v4 = vpop.f32.mrb[157].mxu1 }
 0x749   : > { %9574 = vmatmul.mubr.msk.bf16.vlgmr.msra.gmra.mrb[136].mxu0 %vm485_vm0, %v6208_v31  ;;  %v12149_v7 = vpop.f32.mrb[158].mxu1 }
 0x74a   : > { %9577 = vmatprep.mubr.msk.bf16.mxu0 %vm485_vm0, %v6209_v28  ;;  %9590 = vmatpush3.bf16.msra.mxu0 %v10466_v42  ;;  %v12123_v8 = vpop.f32.mrb[112].mxu0 }
 0x74b   : > { %9591 = vmatprep.subr.bf16.mxu0 %v10467_v36  ;;  %v5880_v46 = vpop.f32.mrb[113].mxu0 }
 0x74c   : > { %v12134_v31 = vpop.f32.mrb[114].mxu0 }
 0x74d   : > { %v5883_v42 = vpop.f32.mrb[115].mxu0 }
 0x74e   : > { %9592 = vmatpush3.bf16.msra.mxu0 %v10467_v36  ;;  %v6217_v34 = vpack.c.bf16 %v5883_v42, %v5880_v46  ;;  %v12156_v42 = vpop.f32.mrb[159].mxu1 }
 0x74f   : > { %9593 = vmatprep.subr.bf16.mxu0 %v10468_v24  ;;  %v12170_v56 = vpop.f32.mrb[160].mxu1 }
 0x750   : > { %v12172_v58 = vpop.f32.mrb[161].mxu1 }
 0x751   : > { %9578 = vmatmul.mubr.msk.bf16.gmra.mrb[140].mxu0 %vm485_vm0, %v6210_v23  ;;  %v12178_v53 = vpop.f32.mrb[162].mxu1 }
 0x752   : > { %9581 = vmatprep.mubr.msk.bf16.mxu0 %vm485_vm0, %v6211_v62  ;;  %9594 = vmatpush3.bf16.msra.mxu0 %v10468_v24  ;;  %v12152_v36 = vpop.f32.mrb[116].mxu0 }
 0x753   : > { %9595 = vmatprep.subr.bf16.mxu0 %v10469_v10  ;;  %v12158_v20 = vpop.f32.mrb[117].mxu0 }
 0x754   : > { %v12165_v23 = vpop.f32.mrb[118].mxu0 }
 0x755   : > { %v5899_v24 = vpop.f32.mrb[119].mxu0 }
 0x756   : > { %9596 = vmatpush3.bf16.msra.mxu0 %v10469_v10  ;;  %v6219_v46 = vpack.c.bf16 %v5899_v24, %v12158_v20  ;;  %v12185_v20 = vpop.f32.mrb[163].mxu1 }
 0x757   : > { %9613 = vmatprep.subr.bf16.mxu0 %v10470_v14 }
 0x759   : > { %9582 = vmatmul.mubr.msk.bf16.gmra.mrb[144].mxu0 %vm485_vm0, %v6212_v60 }
 0x75a   : > { %9585 = vmatprep.mubr.msk.bf16.mxu0 %vm485_vm0, %v6213_v22  ;;  %v12181_v17 = vpop.f32.mrb[120].mxu0  ;;  %v12196_v22 = vpop.f32.mrb[164].mxu1 }
 0x75b   : > { %v12187_v24 = vpop.f32.mrb[121].mxu0  ;;  %12501 = vst [vmem:[#allocation2_spill] sm:$0xff] %v12196_v22  ;;  %v12198_v5 = vpop.f32.mrb[165].mxu1 }
 0x75c   : > { %v12191_v47 = vpop.f32.mrb[122].mxu0  ;;  %v12204_v10 = vpop.f32.mrb[166].mxu1 }
 0x75d   : > { %v5915_v59 = vpop.f32.mrb[123].mxu0  ;;  %v12209_v18 = vpop.f32.mrb[167].mxu1 }
 0x75e   : > { %v6221_v60 = vpack.c.bf16 %v5915_v59, %v12187_v24 }
 0x761   : > { %9586 = vmatmul.mubr.msk.bf16.gmra.mrb[148].mxu0 %vm485_vm0, %v6214_v57  ;;  %v12216_v57 = vpop.f32.mrb[168].mxu1 }
 0x762   : > { %9597 = vmatprep.mubr.msk.bf16.mxu0 %vm485_vm0, %v6215_v25  ;;  %v9431_v52 = vpop.f32.mrb[124].mxu0  ;;  %12502 = vst [vmem:[#allocation3_spill] sm:$0xff] %v12216_v57  ;;  %v12218_v25 = vpop.f32.mrb[169].mxu1 }
 0x763   : > { %v5928_v24 = vpop.f32.mrb[125].mxu0  ;;  %12503 = vst [vmem:[#allocation4_spill] sm:$0xff] %v12218_v25  ;;  %v12224_v29 = vpop.f32.mrb[170].mxu1 }
 0x764   : > { %v9432_v55 = vpop.f32.mrb[126].mxu0  ;;  %12504 = vst [vmem:[#allocation5_spill] sm:$0xff] %v12224_v29  ;;  %v12506_v29 = vpack.c.bf16 %v12134_v31, %v12123_v8 }
 0x765   : > { %v6224_v62 = vpack.c.bf16 %v9432_v55, %v9431_v52  ;;  %v5931_v28 = vpop.f32.mrb[127].mxu0  ;;  %v12229_v55 = vpop.f32.mrb[171].mxu1 }
 0x766   : > { %v6223_v3 = vpack.c.bf16 %v5931_v28, %v5928_v24  ;;  %v10472_v24 = vld [vmem:[%s12492_s7 + $0xb0] sm:$0xff]   ;;  %v12239_v28 = vpop.f32.mrb[172].mxu1 }
 0x767   : > { %12505 = vst [vmem:[#allocation6_spill] sm:$0xff] %v12239_v28  ;;  %v12241_v57 = vpop.f32.mrb[173].mxu1  ;;  %v12508_v28 = vpack.c.bf16 %v12165_v23, %v12152_v36  ;;  %v10475_v36 = vld [vmem:[%s12492_s7 + $0xc8] sm:$0xff]   ;;  %v10476_v23 = vld [vmem:[%s12492_s7 + $0xd0] sm:$0xff]  }
 0x768   : > { %v12247_v2 = vpop.f32.mrb[174].mxu1 }
 0x769   : > { %9598 = vmatmul.mubr.msk.bf16.vlgmr.msra.gmra.mrb[136].mxu0 %vm485_vm0, %v6216_v27  ;;  %12507 = vst [vmem:[#allocation7_spill] sm:$0xff] %v12247_v2 }
 0x76a   : > { %9601 = vmatprep.mubr.msk.bf16.mxu0 %vm485_vm0, %v6217_v34  ;;  %9614 = vmatpush3.bf16.msra.mxu0 %v10470_v14  ;;  %v9435_v52 = vpop.f32.mrb[128].mxu0  ;;  %v10473_v14 = vld [vmem:[%s12492_s7 + $0xb8] sm:$0xff]  }
 0x76b   : > { %9615 = vmatprep.subr.bf16.mxu0 %v10471_v13  ;;  %v5944_v59 = vpop.f32.mrb[129].mxu0 }
 0x76c   : > { %v9436_v26 = vpop.f32.mrb[130].mxu0 }
 0x76d   : > { %v6226_v27 = vpack.c.bf16 %v9436_v26, %v9435_v52  ;;  %v5947_v22 = vpop.f32.mrb[131].mxu0  ;;  %v10474_v26 = vld [vmem:[%s12492_s7 + $0xc0] sm:$0xff]  }
 0x76e   : > { %9616 = vmatpush3.bf16.msra.mxu0 %v10471_v13  ;;  %v6225_v34 = vpack.c.bf16 %v5947_v22, %v5944_v59  ;;  %v12252_v13 = vpop.f32.mrb[175].mxu1 }
 0x76f   : > { %9617 = vmatprep.subr.bf16.mxu0 %v10472_v24 }
 0x771   : > { %9602 = vmatmul.mubr.msk.bf16.gmra.mrb[140].mxu0 %vm485_vm0, %v12506_v29  ;;  %v6251_v29 = vpack.c.bf16 %v12252_v13, %v12241_v57 }
 0x772   : > { %9605 = vmatprep.mubr.msk.bf16.mxu0 %vm485_vm0, %v6219_v46  ;;  %9618 = vmatpush3.bf16.msra.mxu0 %v10472_v24  ;;  %v9439_v22 = vpop.f32.mrb[132].mxu0  ;;  %v12259_v24 = vpop.f32.mrb[176].mxu1 }
 0x773   : > { %9619 = vmatprep.subr.bf16.mxu0 %v10473_v14  ;;  %v5960_v52 = vpop.f32.mrb[133].mxu0  ;;  %v12261_v59 = vpop.f32.mrb[177].mxu1 }
 0x774   : > { %v9440_v8 = vpop.f32.mrb[134].mxu0  ;;  %v12267_v2 = vpop.f32.mrb[178].mxu1 }
 0x775   : > { %v6228_v31 = vpack.c.bf16 %v9440_v8, %v9439_v22  ;;  %v5963_v25 = vpop.f32.mrb[135].mxu0  ;;  %v6254_v22 = vpack.c.bf16 %v12267_v2, %v12259_v24  ;;  %v12272_v8 = vpop.f32.mrb[179].mxu1 }
 0x776   : > { %9620 = vmatpush3.bf16.msra.mxu0 %v10473_v14  ;;  %v6227_v46 = vpack.c.bf16 %v5963_v25, %v5960_v52  ;;  %v6253_v25 = vpack.c.bf16 %v12272_v8, %v12261_v59  ;;  %v12509_v14 = vpack.c.bf16 %v12191_v47, %v12181_v17  ;;  %v10477_v47 = vld [vmem:[%s12492_s7 + $0xd8] sm:$0xff]   ;;  %v10478_v17 = vld [vmem:[%s12492_s7 + $0xe0] sm:$0xff]  }
 0x777   : > { %9637 = vmatprep.subr.bf16.mxu0 %v10474_v26 }
 0x779   : > { %9606 = vmatmul.mubr.msk.bf16.gmra.mrb[144].mxu0 %vm485_vm0, %v12508_v28  ;;  %v10479_v28 = vld [vmem:[%s12492_s7 + $0xe8] sm:$0xff]  }
 0x77a   : > { %9609 = vmatprep.mubr.msk.bf16.mxu0 %vm485_vm0, %v6221_v60  ;;  %v12511_v60 = vpack.c.bf16 %v11952_v21, %v11944_v15  ;;  %v10480_v15 = vld [vmem:[%s12492_s7 + $0xf0] sm:$0xff]   ;;  %v10481_v21 = vld [vmem:[%s12492_s7 + $0xf8] sm:$0xff]  }
 0x781   : > { %9610 = vmatmul.mubr.msk.bf16.gmra.mrb[148].mxu0 %vm485_vm0, %v12509_v14 }
 0x782   : > { %9621 = vmatprep.mubr.msk.bf16.mxu0 %vm485_vm0, %v6223_v3  ;;  %v12512_v3 = vpack.c.bf16 %v11988_v48, %v11975_v44  ;;  %v10482_v44 = vld [vmem:[%s12492_s7 + $0x100] sm:$0xff]   ;;  %v12518_v48 = vpack.c.bf16 %v12072_v6, %v12059_v0  ;;  %v12525_v0 = vpack.c.bf16 %v12149_v7, %v12141_v51  ;;  %v12527_v6 = vpack.c.bf16 %v12178_v53, %v12170_v56  ;;  %v12534_v51 = vld [vmem:[#allocation3_spill] sm:$0xff] }
 0x789   : > { %9622 = vmatmul.mubr.msk.bf16.vlgmr.msra.gmra.mrb[136].mxu0 %vm485_vm0, %v6224_v62  ;;  %v12510_v62 = vpack.c.bf16 %v11962_v41, %v11946_v16  ;;  %v12514_v16 = vpack.c.bf16 %v12014_v19, %v12004_v11  ;;  %v12515_v41 = vpack.c.bf16 %v12007_v12, %v12002_v9  ;;  %v12519_v9 = vpack.c.bf16 %v12065_v1, %v12057_v63  ;;  %v10483_v12 = vld [vmem:[%s12492_s7 + $0x108] sm:$0xff]  }
 0x78a   : > { %9625 = vmatprep.mubr.msk.bf16.mxu0 %vm485_vm0, %v6225_v34  ;;  %9638 = vmatpush3.bf16.msra.mxu0 %v10474_v26  ;;  %v12520_v11 = vpack.c.bf16 %v12098_v49, %v12085_v32  ;;  %v12521_v19 = vpack.c.bf16 %v12091_v38, %v12083_v43  ;;  %v12524_v63 = vpack.c.bf16 %v12156_v42, %v12143_v4  ;;  %v12529_v43 = vld [vmem:[#allocation2_spill] sm:$0xff]  ;;  %v12531_v38 = vld [vmem:[#allocation4_spill] sm:$0xff]  ;;  %v12533_v49 = vld [vmem:[#allocation5_spill] sm:$0xff] }
 0x78b   : > { %9639 = vmatprep.subr.bf16.mxu0 %v10475_v36  ;;  %v12526_v1 = vpack.c.bf16 %v12185_v20, %v12172_v58  ;;  %v12528_v4 = vpack.c.bf16 %v12209_v18, %v12198_v5  ;;  %v12530_v32 = vpack.c.bf16 %v12204_v10, %v12529_v43  ;;  %v12532_v58 = vpack.c.bf16 %v12229_v55, %v12531_v38  ;;  %v12536_v18 = vld [vmem:[#allocation7_spill] sm:$0xff]  ;;  %v12537_v5 = vld [vmem:[#allocation6_spill] sm:$0xff] }
 0x78c   : > { %v12535_v56 = vpack.c.bf16 %v12533_v49, %v12534_v51 }
 0x78e   : > { %9640 = vmatpush3.bf16.msra.mxu0 %v10475_v36 }
 0x78f   : > { %9641 = vmatprep.subr.bf16.mxu0 %v10476_v23 }
 0x791   : > { %9626 = vmatmul.mubr.msk.bf16.gmra.mrb[140].mxu0 %vm485_vm0, %v6226_v27  ;;  %v12513_v27 = vpack.c.bf16 %v11981_v45, %v11973_v39  ;;  %v12516_v39 = vpack.c.bf16 %v12043_v37, %v12030_v35  ;;  %v12517_v45 = vpack.c.bf16 %v12036_v54, %v12028_v33  ;;  %v12522_v33 = vpack.c.bf16 %v12127_v50, %v12114_v40  ;;  %v10484_v35 = vld [vmem:[%s12492_s7 + $0x110] sm:$0xff]   ;;  %v10485_v54 = vld [vmem:[%s12492_s7 + $0x118] sm:$0xff]   ;;  %v12426_v40 = vld [vmem:[%s12493_s8] ss:$0 sm:$0xff] }
 0x792   : > { %9629 = vmatprep.mubr.msk.bf16.mxu0 %vm485_vm0, %v6227_v46  ;;  %9642 = vmatpush3.bf16.msra.mxu0 %v10476_v23  ;;  %v12523_v37 = vpack.c.bf16 %v12120_v61, %v12112_v30  ;;  %v12538_v30 = vpack.c.bf16 %v12536_v18, %v12537_v5 }
 0x793   : > { %9643 = vmatprep.subr.bf16.mxu0 %v10477_v47 }
 0x796   : > { %9644 = vmatpush3.bf16.msra.mxu0 %v10477_v47 }
 0x797   : > { %9661 = vmatprep.subr.bf16.mxu0 %v10478_v17 }
 0x799   : > { %9630 = vmatmul.mubr.msk.bf16.gmra.mrb[144].mxu0 %vm485_vm0, %v6228_v31 }
 0x79a   : > { %9633 = vmatprep.mubr.msk.bf16.mxu0 %vm485_vm0, %v12510_v62 }
 0x7a1   : > { %9634 = vmatmul.mubr.msk.bf16.gmra.mrb[148].mxu0 %vm485_vm0, %v12511_v60 }
 0x7a2   : > { %9645 = vmatprep.mubr.msk.bf16.mxu0 %vm485_vm0, %v12512_v3 }
 0x7a9   : > { %9646 = vmatmul.mubr.msk.bf16.vlgmr.msra.gmra.mrb[136].mxu0 %vm485_vm0, %v12513_v27 }
 0x7aa   : > { %9649 = vmatprep.mubr.msk.bf16.mxu0 %vm485_vm0, %v12514_v16  ;;  %9662 = vmatpush3.bf16.msra.mxu0 %v10478_v17 }
 0x7ab   : > { %9663 = vmatprep.subr.bf16.mxu0 %v10479_v28 }
 0x7ae   : > { %9664 = vmatpush3.bf16.msra.mxu0 %v10479_v28 }
 0x7af   : > { %9665 = vmatprep.subr.bf16.mxu0 %v10480_v15 }
 0x7b1   : > { %9650 = vmatmul.mubr.msk.bf16.gmra.mrb[140].mxu0 %vm485_vm0, %v12515_v41 }
 0x7b2   : > { %9653 = vmatprep.mubr.msk.bf16.mxu0 %vm485_vm0, %v12516_v39  ;;  %9666 = vmatpush3.bf16.msra.mxu0 %v10480_v15 }
 0x7b3   : > { %9667 = vmatprep.subr.bf16.mxu0 %v10481_v21 }
 0x7b6   : > { %9668 = vmatpush3.bf16.msra.mxu0 %v10481_v21 }
 0x7b7   : > { %9685 = vmatprep.subr.bf16.mxu0 %v10482_v44 }
 0x7b9   : > { %9654 = vmatmul.mubr.msk.bf16.gmra.mrb[144].mxu0 %vm485_vm0, %v12517_v45 }
 0x7ba   : > { %9657 = vmatprep.mubr.msk.bf16.mxu0 %vm485_vm0, %v12518_v48 }
 0x7c1   : > { %9658 = vmatmul.mubr.msk.bf16.gmra.mrb[148].mxu0 %vm485_vm0, %v12519_v9 }
 0x7c2   : > { %9669 = vmatprep.mubr.msk.bf16.mxu0 %vm485_vm0, %v12520_v11 }
 0x7c9   : > { %9670 = vmatmul.mubr.msk.bf16.vlgmr.msra.gmra.mrb[136].mxu0 %vm485_vm0, %v12521_v19 }
 0x7ca   : > { %9673 = vmatprep.mubr.msk.bf16.mxu0 %vm485_vm0, %v12522_v33  ;;  %9686 = vmatpush3.bf16.msra.mxu0 %v10482_v44 }
 0x7cb   : > { %9687 = vmatprep.subr.bf16.mxu0 %v10483_v12 }
 0x7ce   : > { %9688 = vmatpush3.bf16.msra.mxu0 %v10483_v12 }
 0x7cf   : > { %9689 = vmatprep.subr.bf16.mxu0 %v10484_v35 }
 0x7d1   : > { %9674 = vmatmul.mubr.msk.bf16.gmra.mrb[140].mxu0 %vm485_vm0, %v12523_v37 }
 0x7d2   : > { %9677 = vmatprep.mubr.msk.bf16.mxu0 %vm485_vm0, %v12524_v63  ;;  %9690 = vmatpush3.bf16.msra.mxu0 %v10484_v35 }
 0x7d3   : > { %9691 = vmatprep.subr.bf16.mxu0 %v10485_v54 }
 0x7d6   : > { %9692 = vmatpush3.bf16.msra.mxu0 %v10485_v54 }
 0x7d9   : > { %9678 = vmatmul.mubr.msk.bf16.gmra.mrb[144].mxu0 %vm485_vm0, %v12525_v0 }
 0x7da   : > { %9681 = vmatprep.mubr.msk.bf16.mxu0 %vm485_vm0, %v12526_v1 }
 0x7e1   : > { %9682 = vmatmul.mubr.msk.bf16.gmra.mrb[148].mxu0 %vm485_vm0, %v12527_v6 }
 0x7e2   : > { %9693 = vmatprep.mubr.msk.bf16.mxu0 %vm485_vm0, %v12528_v4 }
 0x7e9   : > { %9694 = vmatmul.mubr.msk.bf16.vlgmr.msra.gmra.mrb[136].mxu0 %vm485_vm0, %v12530_v32 }
 0x7ea   : > { %9697 = vmatprep.mubr.msk.bf16.mxu0 %vm485_vm0, %v12532_v58 }
 0x7f1   : > { %9698 = vmatmul.mubr.msk.bf16.gmra.mrb[140].mxu0 %vm485_vm0, %v12535_v56 }
 0x7f2   : > { %9701 = vmatprep.mubr.msk.bf16.mxu0 %vm485_vm0, %v6251_v29 }
 0x7f9   : > { %9702 = vmatmul.mubr.msk.bf16.gmra.mrb[144].mxu0 %vm485_vm0, %v12538_v30 }
 0x7fa   : > { %9705 = vmatprep.mubr.msk.bf16.mxu0 %vm485_vm0, %v6253_v25 }
 0x801   : > { %9706 = vmatmul.mubr.msk.bf16.gmra.mrb[148].mxu0 %vm485_vm0, %v6254_v22 }
 0x8bc   : > { %v9695_v61 = vpop.f32.mrb[136].mxu0 }
 0x8bd   : > { %v7761_v50 = vadd.f32 %v9695_v61, %v12426_v40  ;;  %v7673_v7 = vpop.f32.mrb[137].mxu0 }
 0x8be   : > { %v7759_v42 = vadd.f32 %v12426_v40, %v7673_v7  ;;  %v9696_v53 = vpop.f32.mrb[138].mxu0 }
 0x8bf   : > { %v7777_v10 = vmax.f32 %v7761_v50, 0.0  ;;  %v7762_v20 = vadd.f32 %v9696_v53, %v12426_v40  ;;  %v7676_v57 = vpop.f32.mrb[139].mxu0 }
 0x8c0   : > { %v7775_v55 = vmax.f32 %v7759_v42, 0.0  ;;  %v7760_v2 = vadd.f32 %v12426_v40, %v7676_v57 }
 0x8c1   : > { %v8693_v34 = vpack.c.bf16 %v7777_v10, %v7777_v10  ;;  %v7778_v59 = vmax.f32 %v7762_v20, 0.0 }
 0x8c2   : > { %v8691_v13 = vpack.c.bf16 %v7775_v55, %v7775_v55  ;;  %v7776_v52 = vmax.f32 %v7760_v2, 0.0 }
 0x8c3   : > { %7858 = vst.msk [vmem:[%s12435_s12 + $0x8] sm:$0xf] %vm7855_vm3, %v8693_v34  ;;  %v8694_v26 = vpack.c.bf16 %v7778_v59, %v7778_v59 }
 0x8c4   : > { %7856 = vst.msk [vmem:[%s12435_s12] sm:$0xf] %vm7855_vm3, %v8691_v13  ;;  %v8692_v29 = vpack.c.bf16 %v7776_v52, %v7776_v52  ;;  %v9699_v31 = vpop.f32.mrb[140].mxu0 }
 0x8c5   : > { %7859 = vst.msk [vmem:[%s12435_s12 + $0xc] sm:$0xf] %vm7855_vm3, %v8694_v26  ;;  %v7765_v46 = vadd.f32 %v9699_v31, %v12426_v40  ;;  %v7689_v24 = vpop.f32.mrb[141].mxu0 }
 0x8c6   : > { %7857 = vst.msk [vmem:[%s12435_s12 + $0x4] sm:$0xf] %vm7855_vm3, %v8692_v29  ;;  %v7763_v22 = vadd.f32 %v12426_v40, %v7689_v24  ;;  %v9700_v8 = vpop.f32.mrb[142].mxu0 }
 0x8c7   : > { %v7781_v25 = vmax.f32 %v7765_v46, 0.0  ;;  %v7766_v14 = vadd.f32 %v9700_v8, %v12426_v40  ;;  %v7692_v36 = vpop.f32.mrb[143].mxu0 }
 0x8c8   : > { %v7779_v23 = vmax.f32 %v7763_v22, 0.0  ;;  %v7764_v47 = vadd.f32 %v12426_v40, %v7692_v36 }
 0x8c9   : > { %v8697_v17 = vpack.c.bf16 %v7781_v25, %v7781_v25  ;;  %v7782_v62 = vmax.f32 %v7766_v14, 0.0 }
 0x8ca   : > { %v8695_v60 = vpack.c.bf16 %v7779_v23, %v7779_v23  ;;  %v7780_v3 = vmax.f32 %v7764_v47, 0.0 }
 0x8cb   : > { %7862 = vst.msk [vmem:[%s12435_s12 + $0x18] sm:$0xf] %vm7855_vm3, %v8697_v17  ;;  %v8698_v28 = vpack.c.bf16 %v7782_v62, %v7782_v62 }
 0x8cc   : > { %7860 = vst.msk [vmem:[%s12435_s12 + $0x10] sm:$0xf] %vm7855_vm3, %v8695_v60  ;;  %v8696_v27 = vpack.c.bf16 %v7780_v3, %v7780_v3  ;;  %v9703_v16 = vpop.f32.mrb[144].mxu0 }
 0x8cd   : > { %7863 = vst.msk [vmem:[%s12435_s12 + $0x1c] sm:$0xf] %vm7855_vm3, %v8698_v28  ;;  %v7769_v15 = vadd.f32 %v9703_v16, %v12426_v40  ;;  %v7705_v21 = vpop.f32.mrb[145].mxu0 }
 0x8ce   : > { %7861 = vst.msk [vmem:[%s12435_s12 + $0x14] sm:$0xf] %vm7855_vm3, %v8696_v27  ;;  %v7767_v41 = vadd.f32 %v12426_v40, %v7705_v21  ;;  %v9704_v39 = vpop.f32.mrb[146].mxu0 }
 0x8cf   : > { %v7785_v44 = vmax.f32 %v7769_v15, 0.0  ;;  %v7770_v45 = vadd.f32 %v9704_v39, %v12426_v40  ;;  %v7708_v48 = vpop.f32.mrb[147].mxu0 }
 0x8d0   : > { %v7783_v9 = vmax.f32 %v7767_v41, 0.0  ;;  %v7768_v11 = vadd.f32 %v12426_v40, %v7708_v48 }
 0x8d1   : > { %v8701_v12 = vpack.c.bf16 %v7785_v44, %v7785_v44  ;;  %v7786_v19 = vmax.f32 %v7770_v45, 0.0 }
 0x8d2   : > { %v8699_v33 = vpack.c.bf16 %v7783_v9, %v7783_v9  ;;  %v7784_v35 = vmax.f32 %v7768_v11, 0.0 }
 0x8d3   : > { %7866 = vst.msk [vmem:[%s12435_s12 + $0x28] sm:$0xf] %vm7855_vm3, %v8701_v12  ;;  %v8702_v54 = vpack.c.bf16 %v7786_v19, %v7786_v19 }
 0x8d4   : > { %7864 = vst.msk [vmem:[%s12435_s12 + $0x20] sm:$0xf] %vm7855_vm3, %v8699_v33  ;;  %v8700_v37 = vpack.c.bf16 %v7784_v35, %v7784_v35  ;;  %v9707_v63 = vpop.f32.mrb[148].mxu0 }
 0x8d5   : > { %7867 = vst.msk [vmem:[%s12435_s12 + $0x2c] sm:$0xf] %vm7855_vm3, %v8702_v54  ;;  %v7773_v0 = vadd.f32 %v9707_v63, %v12426_v40  ;;  %v7721_v1 = vpop.f32.mrb[149].mxu0 }
 0x8d6   : > { %7865 = vst.msk [vmem:[%s12435_s12 + $0x24] sm:$0xf] %vm7855_vm3, %v8700_v37  ;;  %v7771_v6 = vadd.f32 %v12426_v40, %v7721_v1  ;;  %v9708_v4 = vpop.f32.mrb[150].mxu0 }
 0x8d7   : > { %v7789_v43 = vmax.f32 %v7773_v0, 0.0  ;;  %v7774_v32 = vadd.f32 %v9708_v4, %v12426_v40  ;;  %v7724_v38 = vpop.f32.mrb[151].mxu0 }
 0x8d8   : > { %v7787_v58 = vmax.f32 %v7771_v6, 0.0  ;;  %v7772_v49 = vadd.f32 %v12426_v40, %v7724_v38 }
 0x8d9   : > { %v8705_v51 = vpack.c.bf16 %v7789_v43, %v7789_v43  ;;  %v7790_v56 = vmax.f32 %v7774_v32, 0.0 }
 0x8da   : > { %v8703_v18 = vpack.c.bf16 %v7787_v58, %v7787_v58  ;;  %v7788_v5 = vmax.f32 %v7772_v49, 0.0 }
 0x8db   : > { %7870 = vst.msk [vmem:[%s12435_s12 + $0x38] sm:$0xf] %vm7855_vm3, %v8705_v51  ;;  %v8706_v30 = vpack.c.bf16 %v7790_v56, %v7790_v56 }
 0x8dc   : > { %7868 = vst.msk [vmem:[%s12435_s12 + $0x30] sm:$0xf] %vm7855_vm3, %v8703_v18  ;;  %v8704_v61 = vpack.c.bf16 %v7788_v5, %v7788_v5 }
 0x8dd   : > { %7871 = vst.msk [vmem:[%s12435_s12 + $0x3c] sm:$0xf] %vm7855_vm3, %v8706_v30 }
 0x8de   : > { %7869 = vst.msk [vmem:[%s12435_s12 + $0x34] sm:$0xf] %vm7855_vm3, %v8704_v61 }
 0x8df PF: > { %s19_s30 = sadd.s32 1, %s10492_s30  }
 0x8e0   : > { %p16_p4 = scmp.ge.s32.totalorder %s19_s30, 4  }
 0x8e2   :  { %18 = sbr.rel (!%p16_p4) target bundleno = 1 (0x1), region = 109 }

</bundles_post_ra>
